<compile_context>
chip_gen: v6e
topology: v6e:2x2x1
jax: 0.10.0
libtpu: 0.0.40
codegen_flags: <defaults>
</compile_context>

<pallas_src>
import jax
import jax.numpy as jnp
from jax.experimental import pallas as pl
from jax.experimental.pallas import tpu as pltpu

BN_EPS = 1e-5
IN_F = 360
HID = 256
OUT_F = 3
OUT_PAD = 128                      # lane-dense output width (sliced to 3 in the wrapper)
VMEM_LIMIT = 32 * 1024 * 1024      # explicit headroom; actual footprint is a few MiB


def _bn_relu(h, g, be):
    """Training-mode BatchNorm (batch mean, biased batch var) fused to scale/shift, then ReLU.

    One-pass statistics: var = E[h^2] - E[h]^2 (f32; cancellation is benign at these magnitudes).
    """
    inv_n = 1.0 / h.shape[0]
    mean = jnp.sum(h, axis=0, keepdims=True) * inv_n
    ex2 = jnp.sum(h * h, axis=0, keepdims=True) * inv_n
    var = ex2 - mean * mean
    scale = g * jax.lax.rsqrt(var + BN_EPS)          # (1, F)
    shift = be - mean * scale                        # (1, F)
    return jnp.maximum(h * scale + shift, 0.0)       # one mul + one add per element


def mlp_kernel(x_ref, w1_ref, vec_ref, w2_hbm, w3_hbm, o_ref, w2_vmem, w3_vmem, dma_sem):
    """Gridless whole-batch forward with manual w2/w3 prefetch.

    x_ref:   (B, 360)   f32  (cast to bf16 in-kernel)
    w1_ref:  (360, 256) bf16
    vec_ref: (8, 256)   f32   rows: g1, be1, g2, be2, b3(first 128 lanes), padding
    w2_hbm:  (256, 256) bf16  HBM (memory_space=pl.ANY)
    w3_hbm:  (256, 128) bf16  HBM (cols 3:128 are zero)
    o_ref:   (B, 128)   f32
    """
    # Kick off w2/w3 HBM->VMEM copies now; they complete under fc1 + BN1.
    cp_w2 = pltpu.make_async_copy(w2_hbm, w2_vmem, dma_sem.at[0])
    cp_w3 = pltpu.make_async_copy(w3_hbm, w3_vmem, dma_sem.at[1])
    cp_w2.start()
    cp_w3.start()

    vecs = vec_ref[...]
    g1, be1 = vecs[0:1, :], vecs[1:2, :]
    g2, be2 = vecs[2:3, :], vecs[3:4, :]
    b3 = vecs[4:5, :OUT_PAD]

    # fc1 -> BN1 -> ReLU   (Linear bias b1 cancels exactly against the BN batch mean: dropped)
    h = jnp.dot(x_ref[...].astype(jnp.bfloat16), w1_ref[...],
                preferred_element_type=jnp.float32)
    h = _bn_relu(h, g1, be1)

    # fc2 -> BN2 -> ReLU   (b2 likewise dropped); w2 DMA was hidden behind fc1/BN1
    cp_w2.wait()
    h = jnp.dot(h.astype(jnp.bfloat16), w2_vmem[...], preferred_element_type=jnp.float32)
    h = _bn_relu(h, g2, be2)

    # fc3 (+ real bias b3), lane-dense 128-wide store
    cp_w3.wait()
    out = jnp.dot(h.astype(jnp.bfloat16), w3_vmem[...], preferred_element_type=jnp.float32) + b3
    o_ref[...] = out.astype(o_ref.dtype)


def mlp_batched_kernel(x_ref, w1_ref, w2_ref, w3_ref, vec_ref, o_ref):
    """One grid step = one full batch of B rows (BN stats exact per step); weights VMEM-resident."""
    vecs = vec_ref[...]
    g1, be1 = vecs[0:1, :], vecs[1:2, :]
    g2, be2 = vecs[2:3, :], vecs[3:4, :]
    b3 = vecs[4:5, :OUT_PAD]

    h = jnp.dot(x_ref[...].astype(jnp.bfloat16), w1_ref[...],
                preferred_element_type=jnp.float32)
    h = _bn_relu(h, g1, be1)
    h = jnp.dot(h.astype(jnp.bfloat16), w2_ref[...], preferred_element_type=jnp.float32)
    h = _bn_relu(h, g2, be2)
    out = jnp.dot(h.astype(jnp.bfloat16), w3_ref[...], preferred_element_type=jnp.float32) + b3
    o_ref[...] = out.astype(o_ref.dtype)


def _cost_estimate(num_batches, B):
    flops = 2 * num_batches * B * (IN_F * HID + HID * HID + HID * OUT_PAD)
    bytes_accessed = (
        num_batches * B * IN_F * 4      # x (f32)
        + IN_F * HID * 2                # w1 (bf16)
        + HID * HID * 2                 # w2 (bf16)
        + HID * OUT_PAD * 2             # w3 (bf16)
        + 8 * HID * 4                   # packed per-feature vectors
        + num_batches * B * OUT_PAD * 4 # out (f32)
    )
    return pl.CostEstimate(flops=flops, transcendentals=2 * HID * num_batches,
                           bytes_accessed=bytes_accessed)


def prepare_params(p):
    """One-time packing: cast weights to bf16, pad w3 to 128 lanes, pack per-feature vectors."""
    w1 = p["w1"].astype(jnp.bfloat16)                                            # (360, 256)
    w2 = p["w2"].astype(jnp.bfloat16)                                            # (256, 256)
    w3 = jnp.zeros((HID, OUT_PAD), jnp.float32).at[:, :OUT_F].set(p["w3"]).astype(jnp.bfloat16)
    vecs = jnp.zeros((8, HID), jnp.float32)
    vecs = vecs.at[0, :].set(p["g1"][0])
    vecs = vecs.at[1, :].set(p["be1"][0])
    vecs = vecs.at[2, :].set(p["g2"][0])
    vecs = vecs.at[3, :].set(p["be2"][0])
    vecs = vecs.at[4, :OUT_F].set(p["b3"][0])
    # b1 / b2 intentionally not packed: they cancel against the BN batch mean (training mode only).
    return dict(w1=w1, w2=w2, w3=w3, vecs=vecs)


@jax.jit
def mlp_forward(x, prep):
    """Single-batch forward: (B, 360) f32 -> (B, 3) f32."""
    B = x.shape[0]
    assert B >= 2, "training-mode BatchNorm needs a batch of at least 2 rows"
    vmem = pl.BlockSpec(memory_space=pltpu.MemorySpace.VMEM)
    hbm = pl.BlockSpec(memory_space=pl.ANY)
    out = pl.pallas_call(
        mlp_kernel,
        out_shape=jax.ShapeDtypeStruct((B, OUT_PAD), jnp.float32),
        in_specs=[vmem, vmem, vmem, hbm, hbm],
        out_specs=vmem,
        scratch_shapes=[
            pltpu.VMEM((HID, HID), jnp.bfloat16),      # w2 landing buffer
            pltpu.VMEM((HID, OUT_PAD), jnp.bfloat16),  # w3 landing buffer
            pltpu.SemaphoreType.DMA((2,)),
        ],
        compiler_params=pltpu.CompilerParams(vmem_limit_bytes=VMEM_LIMIT),
        cost_estimate=_cost_estimate(1, B),
    )(x, prep["w1"], prep["vecs"], prep["w2"], prep["w3"])
    return out[:, :OUT_F]


@jax.jit
def mlp_forward_batched(xb, prep):
    """Multi-batch forward: (num_batches, B, 360) f32 -> (num_batches, B, 3) f32.

    Weights are fetched once (constant index_map) and stay VMEM-resident while x/out stream with
    auto double-buffering; the batch axis is "parallel" so v7x shards it across both TensorCores.
    """
    NB, B, _ = xb.shape
    assert B >= 2, "training-mode BatchNorm needs a batch of at least 2 rows"
    out = pl.pallas_call(
        mlp_batched_kernel,
        out_shape=jax.ShapeDtypeStruct((NB, B, OUT_PAD), jnp.float32),
        grid_spec=pltpu.PrefetchScalarGridSpec(
            num_scalar_prefetch=0,
            grid=(NB,),
            in_specs=[
                pl.BlockSpec((None, B, IN_F), lambda i: (i, 0, 0)),   # x streams
                pl.BlockSpec((IN_F, HID), lambda i: (0, 0)),          # w1 resident
                pl.BlockSpec((HID, HID), lambda i: (0, 0)),           # w2 resident
                pl.BlockSpec((HID, OUT_PAD), lambda i: (0, 0)),       # w3 resident
                pl.BlockSpec((8, HID), lambda i: (0, 0)),             # vecs resident
            ],
            out_specs=pl.BlockSpec((None, B, OUT_PAD), lambda i: (i, 0, 0)),
        ),
        compiler_params=pltpu.CompilerParams(
            dimension_semantics=("parallel",),
            vmem_limit_bytes=VMEM_LIMIT,
        ),
        cost_estimate=_cost_estimate(NB, B),
    )(xb, prep["w1"], prep["w2"], prep["w3"], prep["vecs"])
    return out[:, :, :OUT_F]


def init_params(key):
    """Deterministic PyTorch-like init: Linear weights/bias ~ U(-1/sqrt(fan_in), +1/sqrt(fan_in))."""
    ks = jax.random.split(key, 10)

    def linear(kw, kb, fan_in, fan_out):
        bound = 1.0 / float(fan_in) ** 0.5
        w = jax.random.uniform(kw, (fan_in, fan_out), jnp.float32, -bound, bound)  # [in, out]
        b = jax.random.uniform(kb, (1, fan_out), jnp.float32, -bound, bound)
        return w, b

    w1, b1 = linear(ks[0], ks[1], IN_F, HID)
    w2, b2 = linear(ks[2], ks[3], HID, HID)
    w3, b3 = linear(ks[4], ks[5], HID, OUT_F)
    g1 = 1.0 + 0.1 * jax.random.normal(ks[6], (1, HID), jnp.float32)
    be1 = 0.1 * jax.random.normal(ks[7], (1, HID), jnp.float32)
    g2 = 1.0 + 0.1 * jax.random.normal(ks[8], (1, HID), jnp.float32)
    be2 = 0.1 * jax.random.normal(ks[9], (1, HID), jnp.float32)
    return dict(w1=w1, b1=b1, g1=g1, be1=be1,
                w2=w2, b2=b2, g2=g2, be2=be2,
                w3=w3, b3=b3)


def mlp_reference_kernel_math(x, p):
    """Pure-JAX replica of what the kernel computes (bf16 matmuls, f32 BN, no b1/b2)."""
    def bn_relu(h, g, be):
        m = jnp.mean(h, axis=0, keepdims=True)
        v = jnp.mean((h - m) ** 2, axis=0, keepdims=True)
        return jnp.maximum((h - m) / jnp.sqrt(v + BN_EPS) * g + be, 0.0)

    h = jnp.dot(x.astype(jnp.bfloat16), p["w1"].astype(jnp.bfloat16),
                preferred_element_type=jnp.float32)
    h = bn_relu(h, p["g1"], p["be1"])
    h = jnp.dot(h.astype(jnp.bfloat16), p["w2"].astype(jnp.bfloat16),
                preferred_element_type=jnp.float32)
    h = bn_relu(h, p["g2"], p["be2"])
    return jnp.dot(h.astype(jnp.bfloat16), p["w3"].astype(jnp.bfloat16),
                   preferred_element_type=jnp.float32) + p["b3"]


def mlp_reference_f32(x, p):
    """Full-precision replica of the original PyTorch module (including b1/b2, training-mode BN)."""
    def bn(h, g, be):
        m = jnp.mean(h, axis=0, keepdims=True)
        v = jnp.mean((h - m) ** 2, axis=0, keepdims=True)
        return (h - m) / jnp.sqrt(v + BN_EPS) * g + be

    h = jnp.maximum(bn(x @ p["w1"] + p["b1"], p["g1"], p["be1"]), 0.0)
    h = jnp.maximum(bn(h @ p["w2"] + p["b2"], p["g2"], p["be2"]), 0.0)
    return h @ p["w3"] + p["b3"]


if __name__ == "__main__":
    key = jax.random.PRNGKey(0)
    k_x, k_xb, k_p = jax.random.split(key, 3)

    params = init_params(k_p)
    prep = prepare_params(params)

    # Single-batch path. B=256 fills the 256-wide MXU M dim on v6e/v7x (v5e was already full at 128);
    # the whole batch stays in one VMEM tile so BN batch statistics are exact.
    B = 256
    x = jax.random.normal(k_x, (B, IN_F), jnp.float32)
    out = jax.block_until_ready(mlp_forward(x, prep))
    assert out.shape == (B, OUT_F)

    ref = mlp_reference_kernel_math(x, params)
    assert jnp.allclose(out, ref, atol=5e-3, rtol=5e-3), "mismatch vs kernel-math reference"
    ref32 = mlp_reference_f32(x, params)
    assert jnp.allclose(out, ref32, atol=1e-1, rtol=1e-1), "mismatch vs f32 module reference"

    # Multi-batch path: weights VMEM-resident across grid steps, batch axis parallel (2 TCs on v7x).
    NB = 4
    xb = jax.random.normal(k_xb, (NB, B, IN_F), jnp.float32)
    outb = jax.block_until_ready(mlp_forward_batched(xb, prep))
    assert outb.shape == (NB, B, OUT_F)
    refb = jax.vmap(lambda xi: mlp_reference_kernel_math(xi, params))(xb)
    assert jnp.allclose(outb, refb, atol=5e-3, rtol=5e-3), "mismatch vs batched reference"

    print("KERNEL_OK")
</pallas_src>

<mosaic_0001>
module attributes {stable_mosaic.version = 11 : i64} {
  func.func @mlp_kernel(%arg0: memref<256x360xf32, #tpu.memory_space<vmem>>, %arg1: memref<360x256xbf16, #tpu.memory_space<vmem>>, %arg2: memref<8x256xf32, #tpu.memory_space<vmem>>, %arg3: memref<256x256xbf16, #tpu.memory_space<any>>, %arg4: memref<256x128xbf16, #tpu.memory_space<any>>, %arg5: memref<256x128xf32, #tpu.memory_space<vmem>>, %arg6: memref<256x256xbf16, #tpu.memory_space<vmem>>, %arg7: memref<256x128xbf16, #tpu.memory_space<vmem>>, %arg8: memref<2x!tpu.dma_semaphore, #tpu.memory_space<semaphore_mem>>) attributes {dimension_semantics = [], scalar_prefetch = 0 : i64, scratch_operands = 3 : i64, tpu.core_type = #tpu.core_type<tc>} {
    %c0_i32 = arith.constant 0 : i32
    %0 = tpu.memref_slice %arg8[%c0_i32] : memref<2x!tpu.dma_semaphore, #tpu.memory_space<semaphore_mem>> -> memref<1x!tpu.dma_semaphore, #tpu.memory_space<semaphore_mem>>
    %1 = tpu.memref_squeeze %0 : memref<1x!tpu.dma_semaphore, #tpu.memory_space<semaphore_mem>> -> memref<!tpu.dma_semaphore, #tpu.memory_space<semaphore_mem>>
    tpu.enqueue_dma source(%arg3 : memref<256x256xbf16, #tpu.memory_space<any>>) target(%arg6 : memref<256x256xbf16, #tpu.memory_space<vmem>>) target_semaphore(%1 : memref<!tpu.dma_semaphore, #tpu.memory_space<semaphore_mem>>)
    %c1_i32 = arith.constant 1 : i32
    %2 = tpu.memref_slice %arg8[%c1_i32] : memref<2x!tpu.dma_semaphore, #tpu.memory_space<semaphore_mem>> -> memref<1x!tpu.dma_semaphore, #tpu.memory_space<semaphore_mem>>
    %3 = tpu.memref_squeeze %2 : memref<1x!tpu.dma_semaphore, #tpu.memory_space<semaphore_mem>> -> memref<!tpu.dma_semaphore, #tpu.memory_space<semaphore_mem>>
    tpu.enqueue_dma source(%arg4 : memref<256x128xbf16, #tpu.memory_space<any>>) target(%arg7 : memref<256x128xbf16, #tpu.memory_space<vmem>>) target_semaphore(%3 : memref<!tpu.dma_semaphore, #tpu.memory_space<semaphore_mem>>)
    %c0 = arith.constant 0 : index
    %c0_0 = arith.constant 0 : index
    %4 = vector.load %arg2[%c0, %c0_0] : memref<8x256xf32, #tpu.memory_space<vmem>>, vector<8x256xf32>
    %5 = vector.extract_strided_slice %4 {offsets = [0, 0], sizes = [1, 256], strides = [1, 1]} : vector<8x256xf32> to vector<1x256xf32>
    %6 = vector.extract_strided_slice %4 {offsets = [1, 0], sizes = [1, 256], strides = [1, 1]} : vector<8x256xf32> to vector<1x256xf32>
    %7 = vector.extract_strided_slice %4 {offsets = [2, 0], sizes = [1, 256], strides = [1, 1]} : vector<8x256xf32> to vector<1x256xf32>
    %8 = vector.extract_strided_slice %4 {offsets = [3, 0], sizes = [1, 256], strides = [1, 1]} : vector<8x256xf32> to vector<1x256xf32>
    %9 = vector.extract_strided_slice %4 {offsets = [4, 0], sizes = [1, 128], strides = [1, 1]} : vector<8x256xf32> to vector<1x128xf32>
    %c0_1 = arith.constant 0 : index
    %c0_2 = arith.constant 0 : index
    %10 = vector.load %arg0[%c0_1, %c0_2] : memref<256x360xf32, #tpu.memory_space<vmem>>, vector<256x360xf32>
    %11 = arith.truncf %10 : vector<256x360xf32> to vector<256x360xbf16>
    %c0_3 = arith.constant 0 : index
    %c0_4 = arith.constant 0 : index
    %12 = vector.load %arg1[%c0_3, %c0_4] : memref<360x256xbf16, #tpu.memory_space<vmem>>, vector<360x256xbf16>
    %cst = arith.constant dense<0.000000e+00> : vector<256x256xf32>
    %13 = tpu.matmul %11, %12, %cst {dimension_numbers = #tpu.dot_dimension_numbers<[1], [0], [0], [1], [0, 0, 1, 1], [], []>} : vector<256x360xbf16>, vector<360x256xbf16>, vector<256x256xf32> -> vector<256x256xf32>
    %cst_5 = arith.constant dense<0.000000e+00> : vector<256xf32>
    %14 = vector.multi_reduction <add>, %13, %cst_5 [0] : vector<256x256xf32> to vector<256xf32>
    %15 = vector.shape_cast %14 : vector<256xf32> to vector<1x256xf32>
    %cst_6 = arith.constant 3.906250e-03 : f32
    %16 = vector.broadcast %cst_6 : f32 to vector<1x256xf32>
    %17 = arith.mulf %15, %16 : vector<1x256xf32>
    %18 = arith.mulf %13, %13 : vector<256x256xf32>
    %cst_7 = arith.constant dense<0.000000e+00> : vector<256xf32>
    %19 = vector.multi_reduction <add>, %18, %cst_7 [0] : vector<256x256xf32> to vector<256xf32>
    %20 = vector.shape_cast %19 : vector<256xf32> to vector<1x256xf32>
    %cst_8 = arith.constant 3.906250e-03 : f32
    %21 = vector.broadcast %cst_8 : f32 to vector<1x256xf32>
    %22 = arith.mulf %20, %21 : vector<1x256xf32>
    %23 = arith.mulf %17, %17 : vector<1x256xf32>
    %24 = arith.subf %22, %23 : vector<1x256xf32>
    %cst_9 = arith.constant 9.99999974E-6 : f32
    %25 = vector.broadcast %cst_9 : f32 to vector<1x256xf32>
    %26 = arith.addf %24, %25 : vector<1x256xf32>
    %27 = math.rsqrt %26 : vector<1x256xf32>
    %28 = arith.mulf %5, %27 : vector<1x256xf32>
    %29 = arith.mulf %17, %28 : vector<1x256xf32>
    %30 = arith.subf %6, %29 : vector<1x256xf32>
    %31 = vector.broadcast %28 : vector<1x256xf32> to vector<256x256xf32>
    %32 = arith.mulf %13, %31 : vector<256x256xf32>
    %33 = vector.broadcast %30 : vector<1x256xf32> to vector<256x256xf32>
    %34 = arith.addf %32, %33 : vector<256x256xf32>
    %cst_10 = arith.constant 0.000000e+00 : f32
    %35 = vector.broadcast %cst_10 : f32 to vector<256x256xf32>
    %36 = arith.maximumf %34, %35 : vector<256x256xf32>
    %c0_i32_11 = arith.constant 0 : i32
    %37 = tpu.memref_slice %arg8[%c0_i32_11] : memref<2x!tpu.dma_semaphore, #tpu.memory_space<semaphore_mem>> -> memref<1x!tpu.dma_semaphore, #tpu.memory_space<semaphore_mem>>
    %38 = tpu.memref_squeeze %37 : memref<1x!tpu.dma_semaphore, #tpu.memory_space<semaphore_mem>> -> memref<!tpu.dma_semaphore, #tpu.memory_space<semaphore_mem>>
    tpu.wait_dma2 semaphore(%38 : memref<!tpu.dma_semaphore, #tpu.memory_space<semaphore_mem>>) src(%arg3 : memref<256x256xbf16, #tpu.memory_space<any>>) dst(%arg6 : memref<256x256xbf16, #tpu.memory_space<vmem>>)
    %39 = arith.truncf %36 : vector<256x256xf32> to vector<256x256xbf16>
    %c0_12 = arith.constant 0 : index
    %c0_13 = arith.constant 0 : index
    %40 = vector.load %arg6[%c0_12, %c0_13] : memref<256x256xbf16, #tpu.memory_space<vmem>>, vector<256x256xbf16>
    %cst_14 = arith.constant dense<0.000000e+00> : vector<256x256xf32>
    %41 = tpu.matmul %39, %40, %cst_14 {dimension_numbers = #tpu.dot_dimension_numbers<[1], [0], [0], [1], [0, 0, 1, 1], [], []>} : vector<256x256xbf16>, vector<256x256xbf16>, vector<256x256xf32> -> vector<256x256xf32>
    %cst_15 = arith.constant dense<0.000000e+00> : vector<256xf32>
    %42 = vector.multi_reduction <add>, %41, %cst_15 [0] : vector<256x256xf32> to vector<256xf32>
    %43 = vector.shape_cast %42 : vector<256xf32> to vector<1x256xf32>
    %cst_16 = arith.constant 3.906250e-03 : f32
    %44 = vector.broadcast %cst_16 : f32 to vector<1x256xf32>
    %45 = arith.mulf %43, %44 : vector<1x256xf32>
    %46 = arith.mulf %41, %41 : vector<256x256xf32>
    %cst_17 = arith.constant dense<0.000000e+00> : vector<256xf32>
    %47 = vector.multi_reduction <add>, %46, %cst_17 [0] : vector<256x256xf32> to vector<256xf32>
    %48 = vector.shape_cast %47 : vector<256xf32> to vector<1x256xf32>
    %cst_18 = arith.constant 3.906250e-03 : f32
    %49 = vector.broadcast %cst_18 : f32 to vector<1x256xf32>
    %50 = arith.mulf %48, %49 : vector<1x256xf32>
    %51 = arith.mulf %45, %45 : vector<1x256xf32>
    %52 = arith.subf %50, %51 : vector<1x256xf32>
    %cst_19 = arith.constant 9.99999974E-6 : f32
    %53 = vector.broadcast %cst_19 : f32 to vector<1x256xf32>
    %54 = arith.addf %52, %53 : vector<1x256xf32>
    %55 = math.rsqrt %54 : vector<1x256xf32>
    %56 = arith.mulf %7, %55 : vector<1x256xf32>
    %57 = arith.mulf %45, %56 : vector<1x256xf32>
    %58 = arith.subf %8, %57 : vector<1x256xf32>
    %59 = vector.broadcast %56 : vector<1x256xf32> to vector<256x256xf32>
    %60 = arith.mulf %41, %59 : vector<256x256xf32>
    %61 = vector.broadcast %58 : vector<1x256xf32> to vector<256x256xf32>
    %62 = arith.addf %60, %61 : vector<256x256xf32>
    %cst_20 = arith.constant 0.000000e+00 : f32
    %63 = vector.broadcast %cst_20 : f32 to vector<256x256xf32>
    %64 = arith.maximumf %62, %63 : vector<256x256xf32>
    %c1_i32_21 = arith.constant 1 : i32
    %65 = tpu.memref_slice %arg8[%c1_i32_21] : memref<2x!tpu.dma_semaphore, #tpu.memory_space<semaphore_mem>> -> memref<1x!tpu.dma_semaphore, #tpu.memory_space<semaphore_mem>>
    %66 = tpu.memref_squeeze %65 : memref<1x!tpu.dma_semaphore, #tpu.memory_space<semaphore_mem>> -> memref<!tpu.dma_semaphore, #tpu.memory_space<semaphore_mem>>
    tpu.wait_dma2 semaphore(%66 : memref<!tpu.dma_semaphore, #tpu.memory_space<semaphore_mem>>) src(%arg4 : memref<256x128xbf16, #tpu.memory_space<any>>) dst(%arg7 : memref<256x128xbf16, #tpu.memory_space<vmem>>)
    %67 = arith.truncf %64 : vector<256x256xf32> to vector<256x256xbf16>
    %c0_22 = arith.constant 0 : index
    %c0_23 = arith.constant 0 : index
    %68 = vector.load %arg7[%c0_22, %c0_23] : memref<256x128xbf16, #tpu.memory_space<vmem>>, vector<256x128xbf16>
    %cst_24 = arith.constant dense<0.000000e+00> : vector<256x128xf32>
    %69 = tpu.matmul %67, %68, %cst_24 {dimension_numbers = #tpu.dot_dimension_numbers<[1], [0], [0], [1], [0, 0, 1, 1], [], []>} : vector<256x256xbf16>, vector<256x128xbf16>, vector<256x128xf32> -> vector<256x128xf32>
    %70 = vector.broadcast %9 : vector<1x128xf32> to vector<256x128xf32>
    %71 = arith.addf %69, %70 : vector<256x128xf32>
    %c0_25 = arith.constant 0 : index
    %c0_26 = arith.constant 0 : index
    %72 = vector.load %arg5[%c0_25, %c0_26] : memref<256x128xf32, #tpu.memory_space<vmem>>, vector<256x128xf32>
    tpu.vector_store %arg5[%c0_25, %c0_26], %71 {strides = array<i32>} : memref<256x128xf32, #tpu.memory_space<vmem>>, vector<256x128xf32>,
    return
  }
}

</mosaic_0001>

<bundles_post_ra>
// kernel: mlp_forward.1
= control target key start
LH: loop header
LB: loop body
LE: loop exit
PB: predicated region body
PF: predicated region fallthrough
CT: control target
= control target key end

     0   :  { %s5743_s0 = inlined_call_operand.vmem [shape: f32[256,360], index: 0, kind: input, shape index: {}]   ;;  %s5744_s1 = inlined_call_operand.vmem [shape: bf16[360,256], index: 1, kind: input, shape index: {}]   ;;  %s5745_s2 = inlined_call_operand.vmem [shape: f32[8,256], index: 2, kind: input, shape index: {}]   ;;  %s5746_s3 = inlined_call_operand.vmem [shape: bf16[256,256], index: 3, kind: input, shape index: {}]   ;;  %s5747_s4 = inlined_call_operand.vmem [shape: bf16[256,128], index: 4, kind: input, shape index: {}]   ;;  %s5748_s5 = inlined_call_operand.vmem [shape: f32[256,128], index: 5, kind: output, shape index: {}]  }
   0x1   :  { %v3128_v0 = vld [vmem:[%s5746_s3] sm:$0xff]  ;;  %v3133_v1 = vld [vmem:[%s5746_s3 + $0x8] sm:$0xff]  ;;  %v3138_v2 = vld [vmem:[%s5746_s3 + $0x10] sm:$0xff] }
   0x2   :  { %5872 = vst [vmem:[#allocation9_spill] sm:$0xff] %v3128_v0  ;;  %5873 = vst [vmem:[#allocation10_spill] sm:$0xff] %v3133_v1  ;;  %v3143_v3 = vld [vmem:[%s5746_s3 + $0x18] sm:$0xff]  ;;  %v3148_v4 = vld [vmem:[%s5746_s3 + $0x20] sm:$0xff] }
   0x3   :  { %5874 = vst [vmem:[#allocation11_spill] sm:$0xff] %v3138_v2  ;;  %5875 = vst [vmem:[#allocation12_spill] sm:$0xff] %v3143_v3  ;;  %v3153_v5 = vld [vmem:[%s5746_s3 + $0x28] sm:$0xff]  ;;  %v3158_v6 = vld [vmem:[%s5746_s3 + $0x30] sm:$0xff] }
   0x4   :  { %5876 = vst [vmem:[#allocation13_spill] sm:$0xff] %v3148_v4  ;;  %5877 = vst [vmem:[#allocation14_spill] sm:$0xff] %v3153_v5  ;;  %v3163_v7 = vld [vmem:[%s5746_s3 + $0x38] sm:$0xff]  ;;  %v3168_v8 = vld [vmem:[%s5746_s3 + $0x40] sm:$0xff] }
   0x5   :  { %5878 = vst [vmem:[#allocation15_spill] sm:$0xff] %v3158_v6  ;;  %5879 = vst [vmem:[#allocation16_spill] sm:$0xff] %v3163_v7  ;;  %v3173_v9 = vld [vmem:[%s5746_s3 + $0x48] sm:$0xff]  ;;  %v3178_v10 = vld [vmem:[%s5746_s3 + $0x50] sm:$0xff] }
   0x6   :  { %5880 = vst [vmem:[#allocation17_spill] sm:$0xff] %v3168_v8  ;;  %5881 = vst [vmem:[#allocation18_spill] sm:$0xff] %v3173_v9  ;;  %v3183_v11 = vld [vmem:[%s5746_s3 + $0x58] sm:$0xff]  ;;  %v3188_v12 = vld [vmem:[%s5746_s3 + $0x60] sm:$0xff] }
   0x7   :  { %5882 = vst [vmem:[#allocation19_spill] sm:$0xff] %v3178_v10  ;;  %5883 = vst [vmem:[#allocation20_spill] sm:$0xff] %v3183_v11  ;;  %v3193_v13 = vld [vmem:[%s5746_s3 + $0x68] sm:$0xff]  ;;  %v3198_v14 = vld [vmem:[%s5746_s3 + $0x70] sm:$0xff] }
   0x8   :  { %5884 = vst [vmem:[#allocation21_spill] sm:$0xff] %v3188_v12  ;;  %5885 = vst [vmem:[#allocation22_spill] sm:$0xff] %v3193_v13  ;;  %v3203_v15 = vld [vmem:[%s5746_s3 + $0x78] sm:$0xff]  ;;  %v3208_v16 = vld [vmem:[%s5746_s3 + $0x80] sm:$0xff] }
   0x9   :  { %5886 = vst [vmem:[#allocation23_spill] sm:$0xff] %v3198_v14  ;;  %5887 = vst [vmem:[#allocation24_spill] sm:$0xff] %v3203_v15  ;;  %v3213_v17 = vld [vmem:[%s5746_s3 + $0x88] sm:$0xff]  ;;  %v3218_v18 = vld [vmem:[%s5746_s3 + $0x90] sm:$0xff] }
   0xa   :  { %5888 = vst [vmem:[#allocation25_spill] sm:$0xff] %v3208_v16  ;;  %5889 = vst [vmem:[#allocation26_spill] sm:$0xff] %v3213_v17  ;;  %v3223_v19 = vld [vmem:[%s5746_s3 + $0x98] sm:$0xff]  ;;  %v3228_v20 = vld [vmem:[%s5746_s3 + $0xa0] sm:$0xff] }
   0xb   :  { %5890 = vst [vmem:[#allocation27_spill] sm:$0xff] %v3218_v18  ;;  %5891 = vst [vmem:[#allocation28_spill] sm:$0xff] %v3223_v19  ;;  %v3233_v21 = vld [vmem:[%s5746_s3 + $0xa8] sm:$0xff]  ;;  %v3238_v22 = vld [vmem:[%s5746_s3 + $0xb0] sm:$0xff] }
   0xc   :  { %5892 = vst [vmem:[#allocation29_spill] sm:$0xff] %v3228_v20  ;;  %5893 = vst [vmem:[#allocation30_spill] sm:$0xff] %v3233_v21  ;;  %v3243_v23 = vld [vmem:[%s5746_s3 + $0xb8] sm:$0xff]  ;;  %v3248_v24 = vld [vmem:[%s5746_s3 + $0xc0] sm:$0xff] }
   0xd   :  { %5894 = vst [vmem:[#allocation31_spill] sm:$0xff] %v3238_v22  ;;  %5895 = vst [vmem:[#allocation32_spill] sm:$0xff] %v3243_v23  ;;  %v3253_v25 = vld [vmem:[%s5746_s3 + $0xc8] sm:$0xff]  ;;  %v3258_v26 = vld [vmem:[%s5746_s3 + $0xd0] sm:$0xff] }
   0xe   :  { %5896 = vst [vmem:[#allocation33_spill] sm:$0xff] %v3248_v24  ;;  %5897 = vst [vmem:[#allocation34_spill] sm:$0xff] %v3253_v25  ;;  %v3263_v27 = vld [vmem:[%s5746_s3 + $0xd8] sm:$0xff]  ;;  %v3268_v28 = vld [vmem:[%s5746_s3 + $0xe0] sm:$0xff] }
   0xf   :  { %5898 = vst [vmem:[#allocation35_spill] sm:$0xff] %v3258_v26  ;;  %5899 = vst [vmem:[#allocation36_spill] sm:$0xff] %v3263_v27  ;;  %v3273_v29 = vld [vmem:[%s5746_s3 + $0xe8] sm:$0xff]  ;;  %v3278_v30 = vld [vmem:[%s5746_s3 + $0xf0] sm:$0xff] }
  0x10   :  { %5900 = vst [vmem:[#allocation37_spill] sm:$0xff] %v3268_v28  ;;  %5901 = vst [vmem:[#allocation38_spill] sm:$0xff] %v3273_v29  ;;  %v3283_v31 = vld [vmem:[%s5746_s3 + $0xf8] sm:$0xff] }
  0x11   :  { %5902 = vst [vmem:[#allocation39_spill] sm:$0xff] %v3278_v30  ;;  %5903 = vst [vmem:[#allocation40_spill] sm:$0xff] %v3283_v31 }
  0x12   :  { %121 = vsyncadd [#allocation4], 4096  ;;  %v156_v32 = vld [vmem:[%s5747_s4] sm:$0xff]  ;;  %v158_v33 = vld [vmem:[%s5747_s4 + $0x8] sm:$0xff] }
  0x13   :  { %157 = vst [vmem:[#allocation3] sm:$0xff] %v156_v32  ;;  %159 = vst [vmem:[#allocation3 + $0x8] sm:$0xff] %v158_v33  ;;  %v160_v34 = vld [vmem:[%s5747_s4 + $0x10] sm:$0xff]  ;;  %v162_v35 = vld [vmem:[%s5747_s4 + $0x18] sm:$0xff] }
  0x14   :  { %v164_v36 = vld [vmem:[%s5747_s4 + $0x20] sm:$0xff]  ;;  %161 = vst [vmem:[#allocation3 + $0x10] sm:$0xff] %v160_v34  ;;  %163 = vst [vmem:[#allocation3 + $0x18] sm:$0xff] %v162_v35  ;;  %v166_v37 = vld [vmem:[%s5747_s4 + $0x28] sm:$0xff] }
  0x15   :  { %165 = vst [vmem:[#allocation3 + $0x20] sm:$0xff] %v164_v36  ;;  %v168_v38 = vld [vmem:[%s5747_s4 + $0x30] sm:$0xff]  ;;  %v170_v39 = vld [vmem:[%s5747_s4 + $0x38] sm:$0xff]  ;;  %167 = vst [vmem:[#allocation3 + $0x28] sm:$0xff] %v166_v37 }
  0x16   :  { %169 = vst [vmem:[#allocation3 + $0x30] sm:$0xff] %v168_v38  ;;  %171 = vst [vmem:[#allocation3 + $0x38] sm:$0xff] %v170_v39  ;;  %v172_v40 = vld [vmem:[%s5747_s4 + $0x40] sm:$0xff]  ;;  %v174_v41 = vld [vmem:[%s5747_s4 + $0x48] sm:$0xff] }
  0x17   :  { %v176_v42 = vld [vmem:[%s5747_s4 + $0x50] sm:$0xff]  ;;  %173 = vst [vmem:[#allocation3 + $0x40] sm:$0xff] %v172_v40  ;;  %175 = vst [vmem:[#allocation3 + $0x48] sm:$0xff] %v174_v41  ;;  %v178_v43 = vld [vmem:[%s5747_s4 + $0x58] sm:$0xff] }
  0x18   :  { %177 = vst [vmem:[#allocation3 + $0x50] sm:$0xff] %v176_v42  ;;  %v180_v44 = vld [vmem:[%s5747_s4 + $0x60] sm:$0xff]  ;;  %v182_v45 = vld [vmem:[%s5747_s4 + $0x68] sm:$0xff]  ;;  %179 = vst [vmem:[#allocation3 + $0x58] sm:$0xff] %v178_v43 }
  0x19   :  { %181 = vst [vmem:[#allocation3 + $0x60] sm:$0xff] %v180_v44  ;;  %183 = vst [vmem:[#allocation3 + $0x68] sm:$0xff] %v182_v45  ;;  %v184_v46 = vld [vmem:[%s5747_s4 + $0x70] sm:$0xff]  ;;  %v186_v47 = vld [vmem:[%s5747_s4 + $0x78] sm:$0xff] }
  0x1a   :  { %185 = vst [vmem:[#allocation3 + $0x70] sm:$0xff] %v184_v46  ;;  %187 = vst [vmem:[#allocation3 + $0x78] sm:$0xff] %v186_v47 }
  0x1b   :  { %195 = vsyncadd [#allocation4 + $0x1], 2048  ;;  %v2998_v48 = vld [vmem:[%s5744_s1 + $0x74] ss:$8 sps:$4 sm:$0xff]   ;;  %v3000_v49 = vld [vmem:[%s5744_s1 + $0x70] ss:$8 sps:$4 sm:$0xff]  }
  0x1c   :  { %v3094_v50 = vmov 0   ;;  %v3001_v51 = vld [vmem:[%s5744_s1 + $0x64] ss:$8 sps:$4 sm:$0xff]   ;;  %668 = vmatprep.subr.bf16.mxu0 %v2998_v48  ;;  %v3003_v52 = vld [vmem:[%s5744_s1 + $0x60] ss:$8 sps:$4 sm:$0xff]   ;;  %vm661_vm0 = vcmask 1043456  }
  0x1d   :  { %893 = vmatprep.mubr.bf16.mxu1 %v3094_v50  ;;  %669 = vmatpush1.bf16.msra.mxu0 %v3000_v49  ;;  %v3004_v53 = vld [vmem:[%s5744_s1 + $0x54] ss:$8 sps:$4 sm:$0xff]   ;;  %v3006_v54 = vld [vmem:[%s5744_s1 + $0x50] ss:$8 sps:$4 sm:$0xff]   ;;  %v3007_v55 = vld [vmem:[%s5744_s1 + $0x44] ss:$8 sps:$4 sm:$0xff]  }
  0x1e   :  { %670 = vmatprep.subr.bf16.mxu0 %v3001_v51  ;;  %v386_v56 = vld [vmem:[%s5744_s1 + $0x160] sm:$0xff]  ;;  %v3010_v60 = vld [vmem:[%s5744_s1 + $0x34] ss:$8 sps:$4 sm:$0xff]   ;;  %v3029_v63 = vld [vmem:[%s5744_s1 + $0x150] ss:$8 sps:$4 sm:$0xff]   ;;  %vm612_vm1 = vcmask 850944  }
  0x1f   :  { %v3009_v57 = vld [vmem:[%s5744_s1 + $0x40] ss:$8 sps:$4 sm:$0xff]   ;;  %v2801_v58 = vcombine.high %v386_v56, %v386_v56  ;;  %v2800_v59 = vcombine.low %v386_v56, %v386_v56  ;;  %v3027_v61 = vld [vmem:[%s5744_s1 + $0x154] ss:$8 sps:$4 sm:$0xff]   ;;  %v3012_v32 = vld [vmem:[%s5744_s1 + $0x30] ss:$8 sps:$4 sm:$0xff]  }
  0x20   :  { %v3033_v33 = vld [vmem:[%s5744_s1 + $0x144] ss:$8 sps:$4 sm:$0xff]   ;;  %v3035_v35 = vld [vmem:[%s5744_s1 + $0x140] ss:$8 sps:$4 sm:$0xff]   ;;  %v3039_v37 = vld [vmem:[%s5744_s1 + $0x134] ss:$8 sps:$4 sm:$0xff]  }
  0x21   :  { %671 = vmatpush1.bf16.msra.mxu0 %v3003_v52  ;;  %2802 = vmatprep.subr.msk.bf16.mxu1 %vm661_vm0, %v2801_v58  ;;  %v663_v62 = vsel %vm661_vm0, %v2800_v59, 0  ;;  %v3013_v34 = vld [vmem:[%s5744_s1 + $0x24] ss:$8 sps:$4 sm:$0xff]   ;;  %v3015_v36 = vld [vmem:[%s5744_s1 + $0x20] ss:$8 sps:$4 sm:$0xff]   ;;  %v200_v56 = vld [vmem:[%s5743_s0 + $0x10] sm:$0xff] }
  0x22   :  { %672 = vmatprep.subr.bf16.mxu0 %v3004_v53  ;;  %864 = vmatpush1.bf16.msra.mxu1 %v663_v62  ;;  %v3016_v38 = vld [vmem:[%s5744_s1 + $0x14] ss:$8 sps:$4 sm:$0xff]   ;;  %v3041_v39 = vld [vmem:[%s5744_s1 + $0x130] ss:$8 sps:$4 sm:$0xff]   ;;  %v3045_v41 = vld [vmem:[%s5744_s1 + $0x124] ss:$8 sps:$4 sm:$0xff]  }
  0x23   :  { %865 = vmatprep.subr.bf16.mxu1 %v3027_v61  ;;  %v3018_v40 = vld [vmem:[%s5744_s1 + $0x10] ss:$8 sps:$4 sm:$0xff]   ;;  %v3019_v42 = vld [vmem:[%s5744_s1 + $0x4] ss:$8 sps:$4 sm:$0xff]   ;;  %v3047_v43 = vld [vmem:[%s5744_s1 + $0x120] ss:$8 sps:$4 sm:$0xff]  }
  0x24   :  { %v3021_v44 = vld [vmem:[%s5744_s1] ss:$8 sps:$4 sm:$0xff]   ;;  %v3051_v45 = vld [vmem:[%s5744_s1 + $0x114] ss:$8 sps:$4 sm:$0xff]   ;;  %v3053_v48 = vld [vmem:[%s5744_s1 + $0x110] ss:$8 sps:$4 sm:$0xff]  }
  0x25   :  { %673 = vmatpush1.bf16.msra.mxu0 %v3006_v54  ;;  %v3024_v46 = vld [vmem:[%s5744_s1 + $0xf4] ss:$8 sps:$4 sm:$0xff]   ;;  %v199_v47 = vld [vmem:[%s5743_s0 + $0x8] sm:$0xff]  ;;  %v202_v49 = vld [vmem:[%s5743_s0 + $0x20] sm:$0xff] }
  0x26   :  { %674 = vmatprep.subr.bf16.mxu0 %v3007_v55  ;;  %866 = vmatpush1.bf16.msra.mxu1 %v3029_v63  ;;  %v3026_v51 = vld [vmem:[%s5744_s1 + $0xf0] ss:$8 sps:$4 sm:$0xff]   ;;  %v3057_v52 = vld [vmem:[%s5744_s1 + $0x104] ss:$8 sps:$4 sm:$0xff]   ;;  %v295_v53 = vpack.c.bf16 %v202_v49, %v199_v47  ;;  %v3059_v55 = vld [vmem:[%s5744_s1 + $0x100] ss:$8 sps:$4 sm:$0xff]  }
  0x27   :  { %867 = vmatprep.subr.bf16.mxu1 %v3033_v33  ;;  %v3030_v54 = vld [vmem:[%s5744_s1 + $0xe4] ss:$8 sps:$4 sm:$0xff]   ;;  %v3032_v58 = vld [vmem:[%s5744_s1 + $0xe0] ss:$8 sps:$4 sm:$0xff]   ;;  %v3036_v59 = vld [vmem:[%s5744_s1 + $0xd4] ss:$8 sps:$4 sm:$0xff]  }
  0x28   :  { %700 = vmatprep.mubr.bf16.mxu0 %v295_v53  ;;  %v3038_v61 = vld [vmem:[%s5744_s1 + $0xd0] ss:$8 sps:$4 sm:$0xff]   ;;  %v3042_v62 = vld [vmem:[%s5744_s1 + $0xc4] ss:$8 sps:$4 sm:$0xff]   ;;  %v3044_v33 = vld [vmem:[%s5744_s1 + $0xc0] ss:$8 sps:$4 sm:$0xff]  }
  0x29   :  { %675 = vmatpush1.bf16.msra.mxu0 %v3009_v57  ;;  %v203_v57 = vld [vmem:[%s5743_s0 + $0x28] sm:$0xff]  ;;  %v206_v63 = vld [vmem:[%s5743_s0 + $0x40] sm:$0xff]  ;;  %v201_v49 = vld [vmem:[%s5743_s0 + $0x18] sm:$0xff] }
  0x2a   :  { %676 = vmatprep.subr.bf16.mxu0 %v3010_v60  ;;  %868 = vmatpush1.bf16.msra.mxu1 %v3035_v35  ;;  %v296_v60 = vpack.c.bf16 %v203_v57, %v200_v56  ;;  %v3065_v47 = vld [vmem:[%s5744_s1 + $0x80] ss:$8 sps:$4 sm:$0xff]   ;;  %v224_v56 = vld [vmem:[%s5743_s0 + $0xd0] sm:$0xff] }
  0x2b   :  { %869 = vmatprep.subr.bf16.mxu1 %v3039_v37  ;;  %v3054_v37 = vld [vmem:[%s5744_s1 + $0xa4] ss:$8 sps:$4 sm:$0xff]  }
  0x2c   :  { %v227_v57 = vld [vmem:[%s5743_s0 + $0xe8] sm:$0xff] }
  0x2d   :  { %677 = vmatpush1.bf16.msra.mxu0 %v3012_v32  ;;  %v209_v32 = vld [vmem:[%s5743_s0 + $0x58] sm:$0xff] }
  0x2e   :  { %678 = vmatprep.subr.bf16.mxu0 %v3013_v34  ;;  %870 = vmatpush1.bf16.msra.mxu1 %v3041_v39  ;;  %v3048_v34 = vld [vmem:[%s5744_s1 + $0xb4] ss:$8 sps:$4 sm:$0xff]   ;;  %v299_v35 = vpack.c.bf16 %v209_v32, %v206_v63  ;;  %v215_v39 = vld [vmem:[%s5743_s0 + $0x88] sm:$0xff] }
  0x2f   :  { %871 = vmatprep.subr.bf16.mxu1 %v3045_v41  ;;  %v3060_v41 = vld [vmem:[%s5744_s1 + $0x94] ss:$8 sps:$4 sm:$0xff]  }
  0x31   :  { %679 = vmatpush1.bf16.msra.mxu0 %v3015_v36  ;;  %v3050_v36 = vld [vmem:[%s5744_s1 + $0xb0] ss:$8 sps:$4 sm:$0xff]  }
  0x32   :  { %680 = vmatprep.subr.bf16.mxu0 %v3016_v38  ;;  %872 = vmatpush1.bf16.msra.mxu1 %v3047_v43  ;;  %v212_v38 = vld [vmem:[%s5743_s0 + $0x70] sm:$0xff] }
  0x33   :  { %873 = vmatprep.subr.bf16.mxu1 %v3051_v45  ;;  %v3062_v43 = vld [vmem:[%s5744_s1 + $0x90] ss:$8 sps:$4 sm:$0xff]   ;;  %v218_v45 = vld [vmem:[%s5743_s0 + $0xa0] sm:$0xff] }
  0x35   :  { %681 = vmatpush1.bf16.msra.mxu0 %v3018_v40  ;;  %v3056_v40 = vld [vmem:[%s5744_s1 + $0xa0] ss:$8 sps:$4 sm:$0xff]  }
  0x36   :  { %682 = vmatprep.subr.bf16.mxu0 %v3019_v42  ;;  %874 = vmatpush1.bf16.msra.mxu1 %v3053_v48  ;;  %v302_v42 = vpack.c.bf16 %v215_v39, %v212_v38  ;;  %v198_v48 = vld [vmem:[%s5743_s0] sm:$0xff]  ;;  %v220_v38 = vld [vmem:[%s5743_s0 + $0xb0] sm:$0xff] }
  0x37   :  { %875 = vmatprep.subr.bf16.mxu1 %v3057_v52  ;;  %v208_v52 = vld [vmem:[%s5743_s0 + $0x50] sm:$0xff] }
  0x39   :  { %683 = vmatpush1.bf16.msra.mxu0 %v3021_v44  ;;  %v3063_v44 = vld [vmem:[%s5744_s1 + $0x84] ss:$8 sps:$4 sm:$0xff]  }
  0x3a   :  { %684 = vmatprep.subr.bf16.mxu0 %v3024_v46  ;;  %876 = vmatpush1.bf16.msra.mxu1 %v3059_v55  ;;  %v221_v46 = vld [vmem:[%s5743_s0 + $0xb8] sm:$0xff] }
  0x3b   :  { %v305_v53 = vpack.c.bf16 %v221_v46, %v218_v45  ;;  %v219_v45 = vld [vmem:[%s5743_s0 + $0xa8] sm:$0xff] }
  0x3c   :  { %v223_v46 = vld [vmem:[%s5743_s0 + $0xc8] sm:$0xff] }
  0x3d   :  { %685 = vmatpush2.bf16.msra.mxu0 %v3026_v51  ;;  %2803 = vmatmul.mubr.msk.bf16.vlgmr.msra.gmra.mxu1 %vm612_vm1, %v296_v60  ;;  %v205_v51 = vld [vmem:[%s5743_s0 + $0x38] sm:$0xff]  ;;  %v211_v60 = vld [vmem:[%s5743_s0 + $0x68] sm:$0xff] }
  0x3e   :  { %686 = vmatprep.subr.bf16.mxu0 %v3030_v54  ;;  %903 = vmatprep.mubr.bf16.mxu1 %v3094_v50  ;;  %v294_v54 = vpack.c.bf16 %v201_v49, %v198_v48  ;;  %v298_v55 = vpack.c.bf16 %v208_v52, %v205_v51  ;;  %v242_v52 = vld [vmem:[%s5743_s0 + $0x160] sm:$0xff] }
  0x41   :  { %687 = vmatpush2.bf16.msra.mxu0 %v3032_v58  ;;  %v204_v58 = vld [vmem:[%s5743_s0 + $0x30] sm:$0xff] }
  0x42   :  { %688 = vmatprep.subr.bf16.mxu0 %v3036_v59  ;;  %v207_v59 = vld [vmem:[%s5743_s0 + $0x48] sm:$0xff] }
  0x43   :  { %v297_v63 = vpack.c.bf16 %v207_v59, %v204_v58 }
  0x45   :  { %689 = vmatpush2.bf16.msra.mxu0 %v3038_v61  ;;  %2804 = vmatmul.mubr.msk.bf16.gmra.mxu1 %vm612_vm1, %v299_v35  ;;  %v214_v61 = vld [vmem:[%s5743_s0 + $0x80] sm:$0xff] }
  0x46   :  { %690 = vmatprep.subr.bf16.mxu0 %v3042_v62  ;;  %913 = vmatprep.mubr.bf16.mxu1 %v3094_v50  ;;  %v308_v62 = vpack.c.bf16 %v227_v57, %v224_v56  ;;  %v301_v32 = vpack.c.bf16 %v214_v61, %v211_v60  ;;  %v210_v35 = vld [vmem:[%s5743_s0 + $0x60] sm:$0xff]  ;;  %v229_v56 = vld [vmem:[%s5743_s0 + $0xf8] sm:$0xff]  ;;  %v232_v57 = vld [vmem:[%s5743_s0 + $0x110] sm:$0xff] }
  0x47   :  { %v310_v60 = vpack.c.bf16 %v232_v57, %v229_v56  ;;  %v248_v61 = vld [vmem:[%s5743_s0 + $0x190] sm:$0xff]  ;;  %v266_v57 = vld [vmem:[%s5743_s0 + $0x220] sm:$0xff] }
  0x49   :  { %691 = vmatpush2.bf16.msra.mxu0 %v3044_v33  ;;  %v230_v33 = vld [vmem:[%s5743_s0 + $0x100] sm:$0xff] }
  0x4a   :  { %692 = vmatprep.subr.bf16.mxu0 %v3048_v34  ;;  %v233_v34 = vld [vmem:[%s5743_s0 + $0x118] sm:$0xff] }
  0x4b   :  { %v311_v39 = vpack.c.bf16 %v233_v34, %v230_v33  ;;  %v235_v33 = vld [vmem:[%s5743_s0 + $0x128] sm:$0xff]  ;;  %v238_v34 = vld [vmem:[%s5743_s0 + $0x140] sm:$0xff] }
  0x4d   :  { %693 = vmatpush2.bf16.msra.mxu0 %v3050_v36  ;;  %2805 = vmatmul.mubr.msk.bf16.gmra.mxu1 %vm612_vm1, %v302_v42  ;;  %v213_v36 = vld [vmem:[%s5743_s0 + $0x78] sm:$0xff]  ;;  %v236_v42 = vld [vmem:[%s5743_s0 + $0x130] sm:$0xff] }
  0x4e   :  { %694 = vmatprep.subr.bf16.mxu0 %v3054_v37  ;;  %923 = vmatprep.mubr.bf16.mxu1 %v3094_v50  ;;  %v217_v37 = vld [vmem:[%s5743_s0 + $0x98] sm:$0xff] }
  0x51   :  { %695 = vmatpush2.bf16.msra.mxu0 %v3056_v40  ;;  %v300_v40 = vpack.c.bf16 %v213_v36, %v210_v35 }
  0x52   :  { %696 = vmatprep.subr.bf16.mxu0 %v3060_v41  ;;  %v304_v41 = vpack.c.bf16 %v220_v38, %v217_v37  ;;  %v313_v37 = vpack.c.bf16 %v238_v34, %v235_v33  ;;  %v254_v38 = vld [vmem:[%s5743_s0 + $0x1c0] sm:$0xff]  ;;  %v272_v34 = vld [vmem:[%s5743_s0 + $0x250] sm:$0xff] }
  0x55   :  { %697 = vmatpush2.bf16.msra.mxu0 %v3062_v43  ;;  %2806 = vmatmul.mubr.msk.bf16.gmra.mxu1 %vm612_vm1, %v305_v53  ;;  %v239_v43 = vld [vmem:[%s5743_s0 + $0x148] sm:$0xff]  ;;  %v245_v53 = vld [vmem:[%s5743_s0 + $0x178] sm:$0xff] }
  0x56   :  { %698 = vmatprep.subr.bf16.mxu0 %v3063_v44  ;;  %933 = vmatprep.mubr.bf16.mxu1 %v3094_v50  ;;  %v216_v44 = vld [vmem:[%s5743_s0 + $0x90] sm:$0xff]  ;;  %v314_v48 = vpack.c.bf16 %v239_v43, %v236_v42  ;;  %v317_v58 = vpack.c.bf16 %v245_v53, %v242_v52  ;;  %v241_v42 = vld [vmem:[%s5743_s0 + $0x158] sm:$0xff]  ;;  %v247_v52 = vld [vmem:[%s5743_s0 + $0x188] sm:$0xff] }
  0x57   :  { %v303_v49 = vpack.c.bf16 %v219_v45, %v216_v44  ;;  %v244_v43 = vld [vmem:[%s5743_s0 + $0x170] sm:$0xff]  ;;  %v250_v53 = vld [vmem:[%s5743_s0 + $0x1a0] sm:$0xff] }
  0x58   :  { %v319_v56 = vpack.c.bf16 %v250_v53, %v247_v52  ;;  %v284_v53 = vld [vmem:[%s5743_s0 + $0x2b0] sm:$0xff] }
  0x59   :  { %699 = vmatpush2.bf16.msra.mxu0 %v3065_v47  ;;  %v226_v47 = vld [vmem:[%s5743_s0 + $0xe0] sm:$0xff] }
  0x5a   :  { %v307_v51 = vpack.c.bf16 %v226_v47, %v223_v46  ;;  %v316_v46 = vpack.c.bf16 %v244_v43, %v241_v42  ;;  %v260_v47 = vld [vmem:[%s5743_s0 + $0x1f0] sm:$0xff]  ;;  %v278_v43 = vld [vmem:[%s5743_s0 + $0x280] sm:$0xff] }
  0x5c   :  { %701 = vmatmul.mubr.bf16.vlgmr.msra.gmra.mxu0 %v294_v54  ;;  %v222_v54 = vld [vmem:[%s5743_s0 + $0xc0] sm:$0xff] }
  0x5d   :  { %710 = vmatprep.mubr.bf16.mxu0 %v298_v55  ;;  %2807 = vmatmul.mubr.msk.bf16.gmra.mxu1 %vm612_vm1, %v308_v62  ;;  %v225_v55 = vld [vmem:[%s5743_s0 + $0xd8] sm:$0xff]  ;;  %v251_v62 = vld [vmem:[%s5743_s0 + $0x1a8] sm:$0xff] }
  0x5e   :  { %943 = vmatprep.mubr.bf16.mxu1 %v3094_v50  ;;  %v306_v59 = vpack.c.bf16 %v225_v55, %v222_v54  ;;  %v320_v35 = vpack.c.bf16 %v251_v62, %v248_v61  ;;  %v253_v61 = vld [vmem:[%s5743_s0 + $0x1b8] sm:$0xff]  ;;  %v256_v62 = vld [vmem:[%s5743_s0 + $0x1d0] sm:$0xff] }
  0x5f   :  { %v322_v33 = vpack.c.bf16 %v256_v62, %v253_v61  ;;  %v290_v62 = vld [vmem:[%s5743_s0 + $0x2e0] sm:$0xff] }
  0x64   :  { %711 = vmatmul.mubr.bf16.gmra.mxu0 %v297_v63  ;;  %v228_v63 = vld [vmem:[%s5743_s0 + $0xf0] sm:$0xff] }
  0x65   :  { %720 = vmatprep.mubr.bf16.mxu0 %v301_v32  ;;  %2808 = vmatmul.mubr.msk.bf16.gmra.mxu1 %vm612_vm1, %v311_v39  ;;  %v231_v32 = vld [vmem:[%s5743_s0 + $0x108] sm:$0xff]  ;;  %v257_v39 = vld [vmem:[%s5743_s0 + $0x1d8] sm:$0xff] }
  0x66   :  { %953 = vmatprep.mubr.bf16.mxu1 %v3094_v50  ;;  %v309_v36 = vpack.c.bf16 %v231_v32, %v228_v63  ;;  %v323_v44 = vpack.c.bf16 %v257_v39, %v254_v38  ;;  %v259_v38 = vld [vmem:[%s5743_s0 + $0x1e8] sm:$0xff]  ;;  %v262_v39 = vld [vmem:[%s5743_s0 + $0x200] sm:$0xff] }
  0x67   :  { %v325_v42 = vpack.c.bf16 %v262_v39, %v259_v38  ;;  %v276_v38 = vld [vmem:[%s5743_s0 + $0x270] sm:$0xff]  ;;  %v279_v39 = vld [vmem:[%s5743_s0 + $0x288] sm:$0xff] }
  0x6c   :  { %721 = vmatmul.mubr.bf16.gmra.mxu0 %v300_v40  ;;  %v234_v40 = vld [vmem:[%s5743_s0 + $0x120] sm:$0xff] }
  0x6d   :  { %730 = vmatprep.mubr.bf16.mxu0 %v304_v41  ;;  %2809 = vmatmul.mubr.msk.bf16.gmra.mxu1 %vm612_vm1, %v314_v48  ;;  %v237_v41 = vld [vmem:[%s5743_s0 + $0x138] sm:$0xff]  ;;  %v263_v48 = vld [vmem:[%s5743_s0 + $0x208] sm:$0xff] }
  0x6e   :  { %963 = vmatprep.mubr.bf16.mxu1 %v3094_v50  ;;  %v312_v45 = vpack.c.bf16 %v237_v41, %v234_v40  ;;  %v326_v54 = vpack.c.bf16 %v263_v48, %v260_v47  ;;  %v265_v47 = vld [vmem:[%s5743_s0 + $0x218] sm:$0xff]  ;;  %v268_v48 = vld [vmem:[%s5743_s0 + $0x230] sm:$0xff] }
  0x6f   :  { %v328_v52 = vpack.c.bf16 %v268_v48, %v265_v47  ;;  %v292_v47 = vld [vmem:[%s5743_s0 + $0x2f0] sm:$0xff] }
  0x74   :  { %731 = vmatmul.mubr.bf16.gmra.mxu0 %v303_v49  ;;  %v240_v49 = vld [vmem:[%s5743_s0 + $0x150] sm:$0xff] }
  0x75   :  { %740 = vmatprep.mubr.bf16.mxu0 %v307_v51  ;;  %2810 = vmatmul.mubr.msk.bf16.gmra.mxu1 %vm612_vm1, %v317_v58  ;;  %v243_v51 = vld [vmem:[%s5743_s0 + $0x168] sm:$0xff]  ;;  %v269_v58 = vld [vmem:[%s5743_s0 + $0x238] sm:$0xff] }
  0x76   :  { %973 = vmatprep.mubr.bf16.mxu1 %v3094_v50  ;;  %v315_v55 = vpack.c.bf16 %v243_v51, %v240_v49  ;;  %v329_v63 = vpack.c.bf16 %v269_v58, %v266_v57  ;;  %v271_v57 = vld [vmem:[%s5743_s0 + $0x248] sm:$0xff]  ;;  %v274_v58 = vld [vmem:[%s5743_s0 + $0x260] sm:$0xff] }
  0x77   :  { %v331_v61 = vpack.c.bf16 %v274_v58, %v271_v57 }
  0x7c   :  { %741 = vmatmul.mubr.bf16.gmra.mxu0 %v306_v59  ;;  %v246_v59 = vld [vmem:[%s5743_s0 + $0x180] sm:$0xff] }
  0x7d   :  { %750 = vmatprep.mubr.bf16.mxu0 %v310_v60  ;;  %2811 = vmatmul.mubr.msk.bf16.gmra.mxu1 %vm612_vm1, %v320_v35  ;;  %v249_v60 = vld [vmem:[%s5743_s0 + $0x198] sm:$0xff]  ;;  %v275_v35 = vld [vmem:[%s5743_s0 + $0x268] sm:$0xff] }
  0x7e   :  { %983 = vmatprep.mubr.bf16.mxu1 %v3094_v50  ;;  %v318_v32 = vpack.c.bf16 %v249_v60, %v246_v59  ;;  %v332_v40 = vpack.c.bf16 %v275_v35, %v272_v34  ;;  %v280_v34 = vld [vmem:[%s5743_s0 + $0x290] sm:$0xff] }
  0x84   :  { %751 = vmatmul.mubr.bf16.gmra.mxu0 %v309_v36  ;;  %v252_v36 = vld [vmem:[%s5743_s0 + $0x1b0] sm:$0xff] }
  0x85   :  { %760 = vmatprep.mubr.bf16.mxu0 %v313_v37  ;;  %2812 = vmatmul.mubr.msk.bf16.gmra.mxu1 %vm612_vm1, %v323_v44  ;;  %v255_v37 = vld [vmem:[%s5743_s0 + $0x1c8] sm:$0xff]  ;;  %v281_v44 = vld [vmem:[%s5743_s0 + $0x298] sm:$0xff] }
  0x86   :  { %993 = vmatprep.mubr.bf16.mxu1 %v3094_v50  ;;  %v321_v41 = vpack.c.bf16 %v255_v37, %v252_v36  ;;  %v335_v49 = vpack.c.bf16 %v281_v44, %v278_v43  ;;  %v282_v44 = vld [vmem:[%s5743_s0 + $0x2a0] sm:$0xff] }
  0x8c   :  { %761 = vmatmul.mubr.bf16.gmra.mxu0 %v312_v45  ;;  %v258_v45 = vld [vmem:[%s5743_s0 + $0x1e0] sm:$0xff] }
  0x8d   :  { %770 = vmatprep.mubr.bf16.mxu0 %v316_v46  ;;  %2813 = vmatmul.mubr.msk.bf16.gmra.mxu1 %vm612_vm1, %v326_v54  ;;  %v261_v46 = vld [vmem:[%s5743_s0 + $0x1f8] sm:$0xff]  ;;  %v287_v54 = vld [vmem:[%s5743_s0 + $0x2c8] sm:$0xff] }
  0x8e   :  { %1003 = vmatprep.mubr.bf16.mxu1 %v3094_v50  ;;  %v324_v51 = vpack.c.bf16 %v261_v46, %v258_v45  ;;  %v338_v59 = vpack.c.bf16 %v287_v54, %v284_v53  ;;  %v285_v45 = vld [vmem:[%s5743_s0 + $0x2b8] sm:$0xff] }
  0x8f   :  { %v289_v46 = vld [vmem:[%s5743_s0 + $0x2d8] sm:$0xff]  ;;  %v336_v48 = vpack.c.bf16 %v285_v45, %v282_v44 }
  0x94   :  { %771 = vmatmul.mubr.bf16.gmra.mxu0 %v315_v55  ;;  %v264_v55 = vld [vmem:[%s5743_s0 + $0x210] sm:$0xff] }
  0x95   :  { %780 = vmatprep.mubr.bf16.mxu0 %v319_v56  ;;  %2814 = vmatmul.mubr.msk.bf16.gmra.mxu1 %vm612_vm1, %v329_v63  ;;  %v267_v56 = vld [vmem:[%s5743_s0 + $0x228] sm:$0xff]  ;;  %v293_v63 = vld [vmem:[%s5743_s0 + $0x2f8] sm:$0xff] }
  0x96   :  { %1013 = vmatprep.mubr.bf16.mxu1 %v3094_v50  ;;  %v327_v60 = vpack.c.bf16 %v267_v56, %v264_v55  ;;  %v341_v35 = vpack.c.bf16 %v293_v63, %v290_v62 }
  0x9c   :  { %781 = vmatmul.mubr.bf16.gmra.mxu0 %v318_v32  ;;  %v270_v32 = vld [vmem:[%s5743_s0 + $0x240] sm:$0xff] }
  0x9d   :  { %790 = vmatprep.mubr.bf16.mxu0 %v322_v33  ;;  %2815 = vmatmul.mubr.msk.bf16.gmra.mxu1 %vm612_vm1, %v332_v40  ;;  %v273_v33 = vld [vmem:[%s5743_s0 + $0x258] sm:$0xff]  ;;  %v283_v40 = vld [vmem:[%s5743_s0 + $0x2a8] sm:$0xff] }
  0x9e   :  { %1023 = vmatprep.mubr.bf16.mxu1 %v3094_v50  ;;  %v330_v36 = vpack.c.bf16 %v273_v33, %v270_v32 }
  0xa4   :  { %791 = vmatmul.mubr.bf16.gmra.mxu0 %v321_v41  ;;  %v286_v41 = vld [vmem:[%s5743_s0 + $0x2c0] sm:$0xff] }
  0xa5   :  { %800 = vmatprep.mubr.bf16.mxu0 %v325_v42  ;;  %2816 = vmatmul.mubr.msk.bf16.gmra.mxu1 %vm612_vm1, %v335_v49  ;;  %v333_v42 = vpack.c.bf16 %v279_v39, %v276_v38  ;;  %v337_v43 = vpack.c.bf16 %v286_v41, %v283_v40  ;;  %v340_v49 = vpack.c.bf16 %v292_v47, %v289_v46 }
  0xa6   :  { %1033 = vmatprep.mubr.bf16.mxu1 %v3094_v50 }
  0xac   :  { %801 = vmatmul.mubr.bf16.gmra.mxu0 %v324_v51  ;;  %v288_v51 = vld [vmem:[%s5743_s0 + $0x2d0] sm:$0xff] }
  0xad   :  { %810 = vmatprep.mubr.bf16.mxu0 %v328_v52  ;;  %2817 = vmatmul.mubr.msk.bf16.gmra.mxu1 %vm612_vm1, %v338_v59  ;;  %v291_v52 = vld [vmem:[%s5743_s0 + $0x2e8] sm:$0xff] }
  0xae   :  { %1043 = vmatprep.mubr.bf16.mxu1 %v3094_v50  ;;  %v277_v50 = vld [vmem:[%s5743_s0 + $0x278] sm:$0xff]  ;;  %v339_v53 = vpack.c.bf16 %v291_v52, %v288_v51 }
  0xaf   :  { %v334_v37 = vpack.c.bf16 %v280_v34, %v277_v50 }
  0xb4   :  { %811 = vmatmul.mubr.bf16.gmra.mxu0 %v327_v60 }
  0xb5   :  { %820 = vmatprep.mubr.bf16.mxu0 %v331_v61  ;;  %2818 = vmatmul.mubr.msk.bf16.gmra.mxu1 %vm612_vm1, %v341_v35 }
  0xbc   :  { %821 = vmatmul.mubr.bf16.gmra.mxu0 %v330_v36 }
  0xbd   :  { %830 = vmatprep.mubr.bf16.mxu0 %v334_v37 }
  0xc4   :  { %831 = vmatmul.mubr.bf16.gmra.mxu0 %v333_v42 }
  0xc5   :  { %840 = vmatprep.mubr.bf16.mxu0 %v337_v43 }
  0xcc   :  { %841 = vmatmul.mubr.bf16.gmra.mxu0 %v336_v48 }
  0xcd   :  { %850 = vmatprep.mubr.bf16.mxu0 %v340_v49 }
  0xd4   :  { %851 = vmatmul.mubr.bf16.gmra.mxu0 %v339_v53 }
  0xfd   :  { %v895_v54 = vpop.f32.mrf.mxu1 }
  0xff   :  { %v897_v55 = vpop.f32.mrf.mxu1 }
 0x101   :  { %v3788_v56 = vpop.f32.mrf.mxu1 }
 0x103   :  { %v3790_v57 = vpop.f32.mrf.mxu1 }
 0x105   :  { %v3792_v58 = vpop.f32.mrf.mxu1 }
 0x107   :  { %v3794_v59 = vpop.f32.mrf.mxu1 }
 0x109   :  { %v3796_v60 = vpop.f32.mrf.mxu1 }
 0x10b   :  { %v3798_v61 = vpop.f32.mrf.mxu1 }
 0x10d   :  { %v3800_v62 = vpop.f32.mrf.mxu1 }
 0x10f   :  { %v3802_v63 = vpop.f32.mrf.mxu1 }
 0x111   :  { %v3804_v32 = vpop.f32.mrf.mxu1 }
 0x113   :  { %v3806_v33 = vpop.f32.mrf.mxu1 }
 0x115   :  { %v3808_v50 = vpop.f32.mrf.mxu1 }
 0x117   :  { %v3812_v36 = vpop.f32.mrf.mxu1 }
 0x119   :  { %v3816_v39 = vpop.f32.mrf.mxu1 }
 0x11b   :  { %v3818_v41 = vpop.f32.mrf.mxu1 }
 0x11c   :  { %v702_v34 = vpop.f32.mrf.mxu0 }
 0x11d   :  { %v3810_v35 = vadd.f32 %v895_v54, %v702_v34  ;;  %v3820_v43 = vpop.f32.mrf.mxu1 }
 0x11e   :  { %v704_v37 = vpop.f32.mrf.mxu0 }
 0x11f   :  { %5904 = vst [vmem:[#allocation41_spill] sm:$0xff] %v3810_v35  ;;  %v3814_v38 = vadd.f32 %v897_v55, %v704_v37  ;;  %v3822_v45 = vpop.f32.mrf.mxu1 }
 0x120   :  { %v706_v40 = vpop.f32.mrf.mxu0 }
 0x121   :  { %v3824_v47 = vpop.f32.mrf.mxu1 }
 0x122   :  { %v708_v42 = vpop.f32.mrf.mxu0 }
 0x123   :  { %v3826_v49 = vpop.f32.mrf.mxu1 }
 0x124   :  { %v712_v44 = vpop.f32.mrf.mxu0 }
 0x125   :  { %v3828_v52 = vpop.f32.mrf.mxu1 }
 0x126   :  { %v714_v46 = vpop.f32.mrf.mxu0 }
 0x127   :  { %v3830_v54 = vpop.f32.mrf.mxu1 }
 0x128   :  { %v716_v48 = vpop.f32.mrf.mxu0 }
 0x129   :  { %v3832_v34 = vpop.f32.mrf.mxu1 }
 0x12a   :  { %v718_v51 = vpop.f32.mrf.mxu0 }
 0x12b   :  { %v3836_v16 = vpop.f32.mrf.mxu1 }
 0x12c   :  { %v722_v53 = vpop.f32.mrf.mxu0 }
 0x12d   :  { %v3840_v18 = vpop.f32.mrf.mxu1 }
 0x12e   :  { %v724_v55 = vpop.f32.mrf.mxu0 }
 0x12f   :  { %v3844_v20 = vpop.f32.mrf.mxu1 }
 0x130   :  { %v3834_v37 = vpop.f32.mrf.mxu0 }
 0x131   :  { %v3848_v22 = vpop.f32.mrf.mxu1 }
 0x132   :  { %v3838_v17 = vpop.f32.mrf.mxu0 }
 0x133   :  { %v3852_v24 = vpop.f32.mrf.mxu1 }
 0x134   :  { %v3842_v19 = vpop.f32.mrf.mxu0 }
 0x135   :  { %v3856_v26 = vpop.f32.mrf.mxu1 }
 0x136   :  { %v3846_v21 = vpop.f32.mrf.mxu0  ;;  %5905 = vst [vmem:[#allocation42_spill] sm:$0xff] %v3856_v26  ;;  %v3928_v26 = vadd.f32 %v3794_v59, %v714_v46  ;;  %v1130_v59 = vmul.f32 %v3810_v35, %v3810_v35 }
 0x137   :  { %v3860_v28 = vpop.f32.mrf.mxu1 }
 0x138   :  { %v3850_v23 = vpop.f32.mrf.mxu0  ;;  %5906 = vst [vmem:[#allocation43_spill] sm:$0xff] %v3860_v28 }
 0x139   :  { %v3864_v30 = vpop.f32.mrf.mxu1 }
 0x13a   :  { %v3854_v25 = vpop.f32.mrf.mxu0  ;;  %5907 = vst [vmem:[#allocation44_spill] sm:$0xff] %v3864_v30 }
 0x13b   :  { %v3868_v0 = vpop.f32.mrf.mxu1 }
 0x13c   :  { %v3858_v27 = vpop.f32.mrf.mxu0  ;;  %5908 = vst [vmem:[#allocation45_spill] sm:$0xff] %v3868_v0 }
 0x13d   :  { %v3872_v2 = vpop.f32.mrf.mxu1 }
 0x13e   :  { %v3862_v29 = vpop.f32.mrf.mxu0  ;;  %5909 = vst [vmem:[#allocation46_spill] sm:$0xff] %v3872_v2 }
 0x13f   :  { %v3876_v4 = vpop.f32.mrf.mxu1 }
 0x140   :  { %v3866_v31 = vpop.f32.mrf.mxu0  ;;  %5910 = vst [vmem:[#allocation47_spill] sm:$0xff] %v3876_v4 }
 0x141   :  { %v3880_v6 = vpop.f32.mrf.mxu1 }
 0x142   :  { %v3870_v1 = vpop.f32.mrf.mxu0  ;;  %5911 = vst [vmem:[#allocation48_spill] sm:$0xff] %v3880_v6 }
 0x143   :  { %v3884_v8 = vpop.f32.mrf.mxu1 }
 0x144   :  { %v3874_v3 = vpop.f32.mrf.mxu0  ;;  %5912 = vst [vmem:[#allocation49_spill] sm:$0xff] %v3884_v8 }
 0x145   :  { %v3888_v10 = vpop.f32.mrf.mxu1 }
 0x146   :  { %v3878_v5 = vpop.f32.mrf.mxu0  ;;  %5913 = vst [vmem:[#allocation50_spill] sm:$0xff] %v3888_v10 }
 0x147   :  { %v3892_v12 = vpop.f32.mrf.mxu1 }
 0x148   :  { %v3882_v7 = vpop.f32.mrf.mxu0  ;;  %5914 = vst [vmem:[#allocation51_spill] sm:$0xff] %v3892_v12  ;;  %v3913_v12 = vadd.f32 %v3788_v56, %v706_v40  ;;  %v3935_v40 = vadd.f32 %v3796_v60, %v716_v48  ;;  %v1131_v48 = vmul.f32 %v3814_v38, %v3814_v38 }
 0x149   :  { %v3896_v14 = vpop.f32.mrf.mxu1 }
 0x14a   :  { %v3886_v9 = vpop.f32.mrf.mxu0  ;;  %5915 = vst [vmem:[#allocation52_spill] sm:$0xff] %v3896_v14  ;;  %5919 = vst [vmem:[#allocation56_spill] sm:$0xff] %v3913_v12  ;;  %v3918_v14 = vadd.f32 %v3790_v57, %v708_v42  ;;  %v1132_v56 = vmul.f32 %v3913_v12, %v3913_v12 }
 0x14b   :  { %v3900_v4 = vpop.f32.mrf.mxu1 }
 0x14c   :  { %v3890_v11 = vpop.f32.mrf.mxu0  ;;  %5916 = vst [vmem:[#allocation53_spill] sm:$0xff] %v3900_v4  ;;  %5921 = vst [vmem:[#allocation58_spill] sm:$0xff] %v3918_v14  ;;  %v3923_v4 = vadd.f32 %v3792_v58, %v712_v44  ;;  %v1133_v42 = vmul.f32 %v3918_v14, %v3918_v14  ;;  %v3942_v58 = vadd.f32 %v3798_v61, %v718_v51 }
 0x14d   :  { %v3904_v2 = vpop.f32.mrf.mxu1  ;;  %v1054_v61 = vadd.f32 %v3913_v12, %v3810_v35  ;;  %v1135_v51 = vmul.f32 %v3928_v26, %v3928_v26 }
 0x14e   :  { %v3894_v13 = vpop.f32.mrf.mxu0  ;;  %5917 = vst [vmem:[#allocation54_spill] sm:$0xff] %v3904_v2  ;;  %5925 = vst [vmem:[#allocation62_spill] sm:$0xff] %v3942_v58  ;;  %v1134_v46 = vmul.f32 %v3923_v4, %v3923_v4  ;;  %v1231_v35 = vadd.f32 %v1133_v42, %v1131_v48 }
 0x14f   :  { %v3908_v0 = vpop.f32.mrf.mxu1 }
 0x150   :  { %v3898_v15 = vpop.f32.mrf.mxu0  ;;  %5918 = vst [vmem:[#allocation55_spill] sm:$0xff] %v3908_v0  ;;  %v1232_v48 = vadd.f32 %v1231_v35, %v1135_v51 }
 0x151   :  { %v3915_v30 = vpop.f32.mrf.mxu1 }
 0x152   :  { %v3902_v6 = vpop.f32.mrf.mxu0  ;;  %5920 = vst [vmem:[#allocation57_spill] sm:$0xff] %v3915_v30 }
 0x153   :  { %v3925_v2 = vpop.f32.mrf.mxu1 }
 0x154   :  { %v3906_v8 = vpop.f32.mrf.mxu0  ;;  %5922 = vst [vmem:[#allocation59_spill] sm:$0xff] %v3925_v2  ;;  %v3951_v2 = vadd.f32 %v3800_v62, %v722_v53  ;;  %v1091_v62 = vadd.f32 %v3918_v14, %v3814_v38  ;;  %v1136_v53 = vmul.f32 %v3935_v40, %v3935_v40 }
 0x155   :  { %v3937_v57 = vpop.f32.mrf.mxu1 }
 0x156   :  { %v3910_v10 = vpop.f32.mrf.mxu0  ;;  %5924 = vst [vmem:[#allocation61_spill] sm:$0xff] %v3937_v57  ;;  %v3962_v57 = vadd.f32 %v3802_v63, %v724_v55  ;;  %v1137_v63 = vmul.f32 %v3942_v58, %v3942_v58  ;;  %v3981_v55 = vadd.f32 %v3806_v33, %v3838_v17  ;;  %v1092_v14 = vadd.f32 %v1091_v62, %v3928_v26 }
 0x157   :  { %v3953_v60 = vpop.f32.mrf.mxu1  ;;  %v3999_v33 = vadd.f32 %v3812_v36, %v3846_v21  ;;  %v4017_v36 = vadd.f32 %v3818_v41, %v3854_v25  ;;  %v4035_v41 = vadd.f32 %v3822_v45, %v3862_v29  ;;  %v4053_v45 = vadd.f32 %v3826_v49, %v3870_v1 }
 0x158   :  { %v3920_v28 = vpop.f32.mrf.mxu0  ;;  %5927 = vst [vmem:[#allocation64_spill] sm:$0xff] %v3953_v60  ;;  %5928 = vst [vmem:[#allocation65_spill] sm:$0xff] %v3962_v57  ;;  %v3972_v60 = vadd.f32 %v3804_v32, %v3834_v37  ;;  %v1138_v32 = vmul.f32 %v3951_v2, %v3951_v2  ;;  %v3990_v37 = vadd.f32 %v3808_v50, %v3842_v19 }
 0x159   :  { %v3974_v12 = vpop.f32.mrf.mxu1  ;;  %5929 = vst [vmem:[#allocation66_spill] sm:$0xff] %v3981_v55  ;;  %v1139_v17 = vmul.f32 %v3962_v57, %v3962_v57  ;;  %5930 = vst [vmem:[#allocation67_spill] sm:$0xff] %v3999_v33  ;;  %v1093_v62 = vadd.f32 %v1092_v14, %v3942_v58  ;;  %v4008_v50 = vadd.f32 %v3816_v39, %v3850_v23 }
 0x15a   :  { %v3930_v0 = vpop.f32.mrf.mxu0  ;;  %v1140_v19 = vmul.f32 %v3972_v60, %v3972_v60  ;;  %v1233_v35 = vadd.f32 %v1232_v48, %v1137_v63  ;;  %v1141_v21 = vmul.f32 %v3981_v55, %v3981_v55  ;;  %5931 = vst [vmem:[#allocation68_spill] sm:$0xff] %v4017_v36  ;;  %v1142_v23 = vmul.f32 %v3990_v37, %v3990_v37 }
 0x15b   :  { %5923 = vst [vmem:[#allocation60_spill] sm:$0xff] %v3930_v0  ;;  %v1055_v0 = vadd.f32 %v1054_v61, %v3923_v4  ;;  %v3992_v42 = vpop.f32.mrf.mxu1  ;;  %v4026_v39 = vadd.f32 %v3820_v43, %v3858_v27  ;;  %v1143_v25 = vmul.f32 %v3999_v33, %v3999_v33  ;;  %5932 = vst [vmem:[#allocation69_spill] sm:$0xff] %v4035_v41 }
 0x15c   :  { %v3944_v44 = vpop.f32.mrf.mxu0  ;;  %v1234_v48 = vadd.f32 %v1233_v35, %v1139_v17  ;;  %v1144_v27 = vmul.f32 %v4008_v50, %v4008_v50  ;;  %v4044_v43 = vadd.f32 %v3824_v47, %v3866_v31  ;;  %v1145_v29 = vmul.f32 %v4017_v36, %v4017_v36  ;;  %5933 = vst [vmem:[#allocation70_spill] sm:$0xff] %v4053_v45 }
 0x15d   :  { %5926 = vst [vmem:[#allocation63_spill] sm:$0xff] %v3944_v44  ;;  %v1194_v44 = vadd.f32 %v1132_v56, %v1130_v59  ;;  %v1056_v61 = vadd.f32 %v1055_v0, %v3935_v40  ;;  %v4010_v0 = vpop.f32.mrf.mxu1  ;;  %v1146_v31 = vmul.f32 %v4026_v39, %v4026_v39  ;;  %v4062_v47 = vadd.f32 %v3828_v52, %v3874_v3 }
 0x15e   :  { %v3964_v30 = vpop.f32.mrf.mxu0  ;;  %v1235_v35 = vadd.f32 %v1234_v48, %v1141_v21  ;;  %v4069_v1 = vadd.f32 %v3830_v54, %v3878_v5  ;;  %v1148_v3 = vmul.f32 %v4044_v43, %v4044_v43  ;;  %v4080_v52 = vadd.f32 %v3832_v34, %v3882_v7 }
 0x15f   :  { %v1195_v59 = vadd.f32 %v1194_v44, %v1134_v46  ;;  %v1057_v51 = vadd.f32 %v1056_v61, %v3951_v2  ;;  %v4028_v63 = vpop.f32.mrf.mxu1  ;;  %v1149_v5 = vmul.f32 %v4053_v45, %v4053_v45  ;;  %v4087_v54 = vadd.f32 %v3836_v16, %v3886_v9 }
 0x160   :  { %v3983_v56 = vpop.f32.mrf.mxu0  ;;  %v1236_v21 = vadd.f32 %v1235_v35, %v1143_v25  ;;  %5934 = vst [vmem:[#allocation71_spill] sm:$0xff] %v4069_v1  ;;  %v4096_v7 = vadd.f32 %v3840_v18, %v3890_v11  ;;  %v4103_v9 = vadd.f32 %v3844_v20, %v3894_v13  ;;  %v1152_v11 = vmul.f32 %v4080_v52, %v4080_v52 }
 0x161   :  { %v1196_v46 = vadd.f32 %v1195_v59, %v1136_v53  ;;  %v1094_v59 = vadd.f32 %v1093_v62, %v3962_v57  ;;  %v1058_v61 = vadd.f32 %v1057_v51, %v3972_v60  ;;  %v4046_v17 = vpop.f32.mrf.mxu1  ;;  %5935 = vst [vmem:[#allocation72_spill] sm:$0xff] %v4087_v54  ;;  %v4114_v18 = vadd.f32 %v3848_v22, %v3898_v15  ;;  %v5938_v15 = vld [vmem:[#allocation42_spill] sm:$0xff] }
 0x162   :  { %v4001_v44 = vpop.f32.mrf.mxu0  ;;  %v1237_v25 = vadd.f32 %v1236_v21, %v1145_v29  ;;  %v1151_v21 = vmul.f32 %v4069_v1, %v4069_v1  ;;  %5936 = vst [vmem:[#allocation73_spill] sm:$0xff] %v4103_v9  ;;  %v1153_v13 = vmul.f32 %v4087_v54, %v4087_v54  ;;  %v4121_v20 = vadd.f32 %v3852_v24, %v3902_v6  ;;  %v5939_v6 = vld [vmem:[#allocation43_spill] sm:$0xff] }
 0x163   :  { %v1197_v53 = vadd.f32 %v1196_v46, %v1138_v32  ;;  %v1095_v62 = vadd.f32 %v1094_v59, %v3981_v55  ;;  %v1059_v51 = vadd.f32 %v1058_v61, %v3990_v37  ;;  %v1147_v61 = vmul.f32 %v4035_v41, %v4035_v41 }
 0x164   :  { %v4019_v14 = vpop.f32.mrf.mxu0  ;;  %5937 = vst [vmem:[#allocation74_spill] sm:$0xff] %v4121_v20  ;;  %v4130_v22 = vadd.f32 %v5938_v15, %v3906_v8  ;;  %v4137_v24 = vadd.f32 %v5939_v6, %v3910_v10  ;;  %v1156_v8 = vmul.f32 %v4114_v18, %v4114_v18  ;;  %v1157_v10 = vmul.f32 %v4121_v20, %v4121_v20  ;;  %v5942_v6 = vld [vmem:[#allocation60_spill] sm:$0xff] }
 0x165   :  { %v1198_v46 = vadd.f32 %v1197_v53, %v1140_v19  ;;  %v1096_v59 = vadd.f32 %v1095_v62, %v3999_v33  ;;  %v1060_v48 = vadd.f32 %v1059_v51, %v4008_v50  ;;  %v1238_v34 = vadd.f32 %v1237_v25, %v1147_v61 }
 0x166   :  { %v4037_v32 = vpop.f32.mrf.mxu0  ;;  %5940 = vst [vmem:[#allocation42_spill] sm:$0xff] %v4137_v24 }
 0x167   :  { %v1199_v53 = vadd.f32 %v1198_v46, %v1142_v23  ;;  %v4073_v23 = vpop.f32.mrf.mxu1  ;;  %v1097_v62 = vadd.f32 %v1096_v59, %v4017_v36  ;;  %v1061_v35 = vadd.f32 %v1060_v48, %v4026_v39  ;;  %v1150_v59 = vmul.f32 %v4062_v47, %v4062_v47 }
 0x168   :  { %v4055_v19 = vpop.f32.mrf.mxu0  ;;  %v1239_v61 = vadd.f32 %v1238_v34, %v1149_v5  ;;  %v1155_v34 = vmul.f32 %v4103_v9, %v4103_v9 }
 0x169   :  { %v1200_v46 = vadd.f32 %v1199_v53, %v1144_v27  ;;  %v1098_v53 = vadd.f32 %v1097_v62, %v4035_v41  ;;  %v1062_v29 = vadd.f32 %v1061_v35, %v4044_v43  ;;  %v5945_v41 = vld [vmem:[#allocation63_spill] sm:$0xff] }
 0x16a   :  { %v4071_v49 = vpop.f32.mrf.mxu0  ;;  %v1240_v5 = vadd.f32 %v1239_v61, %v1151_v21  ;;  %v5941_v21 = vld [vmem:[#allocation44_spill] sm:$0xff] }
 0x16b   :  { %v1201_v51 = vadd.f32 %v1200_v46, %v1146_v31  ;;  %v4107_v31 = vpop.f32.mrf.mxu1  ;;  %v1099_v46 = vadd.f32 %v1098_v53, %v4053_v45  ;;  %v1063_v62 = vadd.f32 %v1062_v29, %v4062_v47  ;;  %v4148_v61 = vadd.f32 %v5941_v21, %v3920_v28  ;;  %v5946_v28 = vld [vmem:[#allocation46_spill] sm:$0xff] }
 0x16c   :  { %v4089_v27 = vpop.f32.mrf.mxu0  ;;  %v4162_v21 = vadd.f32 %v5946_v28, %v5945_v41 }
 0x16d   :  { %v1202_v48 = vadd.f32 %v1201_v51, %v1148_v3  ;;  %v1100_v35 = vadd.f32 %v1099_v46, %v4069_v1  ;;  %v1154_v51 = vmul.f32 %v4096_v7, %v4096_v7  ;;  %v1064_v53 = vadd.f32 %v1063_v62, %v4080_v52  ;;  %v4141_v29 = vpop.f32.mrf.mxu1  ;;  %v5943_v1 = vld [vmem:[#allocation45_spill] sm:$0xff] }
 0x16e   :  { %v4105_v16 = vpop.f32.mrf.mxu0  ;;  %v1241_v62 = vadd.f32 %v1240_v5, %v1153_v13  ;;  %v4155_v45 = vadd.f32 %v5943_v1, %v5942_v6  ;;  %v5947_v1 = vld [vmem:[#allocation47_spill] sm:$0xff]  ;;  %v1160_v41 = vmul.f32 %v4148_v61, %v4148_v61 }
 0x16f   :  { %v1203_v25 = vadd.f32 %v1202_v48, %v1150_v59  ;;  %v1101_v46 = vadd.f32 %v1100_v35, %v4087_v54  ;;  %v1065_v15 = vadd.f32 %v1064_v53, %v4096_v7  ;;  %v1158_v54 = vmul.f32 %v4130_v22, %v4130_v22 }
 0x170   :  { %v4123_v3 = vpop.f32.mrf.mxu0  ;;  %5944 = vst [vmem:[#allocation43_spill] sm:$0xff] %v4155_v45  ;;  %v1242_v13 = vadd.f32 %v1241_v62, %v1155_v34  ;;  %v1159_v53 = vmul.f32 %v4137_v24, %v4137_v24  ;;  %v4169_v6 = vadd.f32 %v5947_v1, %v3964_v30  ;;  %v5949_v34 = vld [vmem:[#allocation48_spill] sm:$0xff]  ;;  %v1161_v30 = vmul.f32 %v4155_v45, %v4155_v45  ;;  %v5950_v1 = vld [vmem:[#allocation49_spill] sm:$0xff] }
 0x171   :  { %v1204_v48 = vadd.f32 %v1203_v25, %v1152_v11  ;;  %v1102_v35 = vadd.f32 %v1101_v46, %v4103_v9  ;;  %v1066_v5 = vadd.f32 %v1065_v15, %v4114_v18  ;;  %v4178_v62 = vadd.f32 %v5949_v34, %v3983_v56  ;;  %v5952_v56 = vld [vmem:[#allocation50_spill] sm:$0xff] }
 0x172   :  { %v4139_v59 = vpop.f32.mrf.mxu0  ;;  %5948 = vst [vmem:[#allocation44_spill] sm:$0xff] %v4169_v6  ;;  %v1243_v15 = vadd.f32 %v1242_v13, %v1157_v10  ;;  %v4185_v36 = vadd.f32 %v5950_v1, %v4001_v44  ;;  %v4192_v34 = vadd.f32 %v5952_v56, %v4019_v14  ;;  %v5953_v44 = vld [vmem:[#allocation51_spill] sm:$0xff] }
 0x173   :  { %v1205_v25 = vadd.f32 %v1204_v48, %v1154_v51  ;;  %v4171_v48 = vpop.f32.mrf.mxu1  ;;  %v1103_v9 = vadd.f32 %v1102_v35, %v4121_v20  ;;  %v1067_v28 = vadd.f32 %v1066_v5, %v4130_v22  ;;  %v1162_v20 = vmul.f32 %v4162_v21, %v4162_v21 }
 0x174   :  { %v812_v11 = vpop.f32.mrf.mxu0  ;;  %5951 = vst [vmem:[#allocation60_spill] sm:$0xff] %v4185_v36  ;;  %v1244_v10 = vadd.f32 %v1243_v15, %v1159_v53  ;;  %v1163_v5 = vmul.f32 %v4169_v6, %v4169_v6  ;;  %v4199_v1 = vadd.f32 %v5953_v44, %v4037_v32  ;;  %v1164_v14 = vmul.f32 %v4178_v62, %v4178_v62  ;;  %v5955_v53 = vld [vmem:[#allocation52_spill] sm:$0xff]  ;;  %v5956_v44 = vld [vmem:[#allocation53_spill] sm:$0xff] }
 0x175   :  { %v1206_v46 = vadd.f32 %v1205_v25, %v1156_v8  ;;  %v1104_v35 = vadd.f32 %v1103_v9, %v4137_v24  ;;  %v1068_v13 = vadd.f32 %v1067_v28, %v4148_v61  ;;  %v4208_v15 = vadd.f32 %v5955_v53, %v4055_v19  ;;  %v5957_v19 = vld [vmem:[#allocation54_spill] sm:$0xff] }
 0x176   :  { %v814_v51 = vpop.f32.mrf.mxu0  ;;  %5954 = vst [vmem:[#allocation45_spill] sm:$0xff] %v4199_v1  ;;  %v1245_v28 = vadd.f32 %v1244_v10, %v1161_v30  ;;  %v1165_v32 = vmul.f32 %v4185_v36, %v4185_v36  ;;  %v4215_v33 = vadd.f32 %v5956_v44, %v4071_v49  ;;  %v4222_v53 = vadd.f32 %v5957_v19, %v4089_v27  ;;  %v5958_v49 = vld [vmem:[#allocation55_spill] sm:$0xff] }
 0x177   :  { %v1207_v25 = vadd.f32 %v1206_v46, %v1158_v54  ;;  %v4201_v46 = vpop.f32.mrf.mxu1  ;;  %v1105_v24 = vadd.f32 %v1104_v35, %v4155_v45  ;;  %v1069_v56 = vadd.f32 %v1068_v13, %v4162_v21  ;;  %v1166_v45 = vmul.f32 %v4192_v34, %v4192_v34 }
 0x178   :  { %v816_v8 = vpop.f32.mrf.mxu0  ;;  %v1246_v30 = vadd.f32 %v1245_v28, %v1163_v5  ;;  %v1167_v13 = vmul.f32 %v4199_v1, %v4199_v1  ;;  %v4229_v44 = vadd.f32 %v5958_v49, %v4105_v16  ;;  %v1168_v27 = vmul.f32 %v4208_v15, %v4208_v15  ;;  %v5959_v5 = vld [vmem:[#allocation57_spill] sm:$0xff]  ;;  %v5960_v49 = vld [vmem:[#allocation59_spill] sm:$0xff] }
 0x179   :  { %v1208_v9 = vadd.f32 %v1207_v25, %v1160_v41  ;;  %v1106_v35 = vadd.f32 %v1105_v24, %v4169_v6  ;;  %v1070_v10 = vadd.f32 %v1069_v56, %v4178_v62  ;;  %v4238_v28 = vadd.f32 %v5959_v5, %v4123_v3 }
 0x17a   :  { %v818_v54 = vpop.f32.mrf.mxu0  ;;  %v1247_v56 = vadd.f32 %v1246_v30, %v1165_v32  ;;  %v1169_v16 = vmul.f32 %v4215_v33, %v4215_v33  ;;  %v4245_v55 = vadd.f32 %v5960_v49, %v4139_v59 }
 0x17b   :  { %v1209_v25 = vadd.f32 %v1208_v9, %v1162_v20  ;;  %v4231_v9 = vpop.f32.mrf.mxu1  ;;  %v1107_v6 = vadd.f32 %v1106_v35, %v4185_v36  ;;  %v1071_v19 = vadd.f32 %v1070_v10, %v4192_v34  ;;  %v1170_v35 = vmul.f32 %v4222_v53, %v4222_v53  ;;  %v5961_v36 = vld [vmem:[#allocation61_spill] sm:$0xff] }
 0x17c   :  { %v822_v41 = vpop.f32.mrf.mxu0  ;;  %v4250_v57 = vadd.f32 %v5961_v36, %v812_v11  ;;  %v1248_v32 = vadd.f32 %v1247_v56, %v1167_v13  ;;  %v1171_v10 = vmul.f32 %v4229_v44, %v4229_v44  ;;  %v4262_v36 = vadd.f32 %v3974_v12, %v816_v8 }
 0x17d   :  { %v1210_v24 = vadd.f32 %v1209_v25, %v1164_v14  ;;  %v1108_v3 = vadd.f32 %v1107_v6, %v4199_v1  ;;  %v1072_v30 = vadd.f32 %v1071_v19, %v4208_v15  ;;  %v1037_v58 = vpop.f32.mrf.mxu1  ;;  %v1173_v56 = vmul.f32 %v4245_v55, %v4245_v55 }
 0x17e   :  { %v824_v20 = vpop.f32.mrf.mxu0  ;;  %v1249_v6 = vadd.f32 %v1248_v32, %v1169_v16 }
 0x17f   :  { %v1211_v25 = vadd.f32 %v1210_v24, %v1166_v45  ;;  %v1172_v45 = vmul.f32 %v4238_v28, %v4238_v28  ;;  %v5962_v24 = vld [vmem:[#allocation64_spill] sm:$0xff]  ;;  %v1109_v11 = vadd.f32 %v1108_v3, %v4215_v33  ;;  %v1073_v13 = vadd.f32 %v1072_v30, %v4222_v53  ;;  %v1039_v32 = vpop.f32.mrf.mxu1 }
 0x180   :  { %v826_v14 = vpop.f32.mrf.mxu0  ;;  %v4259_v49 = vadd.f32 %v5962_v24, %v814_v51  ;;  %v4274_v51 = vadd.f32 %v4010_v0, %v822_v41  ;;  %v1250_v8 = vadd.f32 %v1249_v6, %v1171_v10 }
 0x181   :  { %v1212_v59 = vadd.f32 %v1211_v25, %v1168_v27  ;;  %v1174_v27 = vmul.f32 %v4250_v57, %v4250_v57  ;;  %v4271_v25 = vadd.f32 %v3992_v42, %v818_v54  ;;  %v1110_v12 = vadd.f32 %v1109_v11, %v4229_v44 }
 0x182   :  { %v828_v5 = vpop.f32.mrf.mxu0  ;;  %v1074_v16 = vadd.f32 %v1073_v13, %v4238_v28  ;;  %v4283_v42 = vadd.f32 %v4028_v63, %v824_v20  ;;  %v1251_v54 = vadd.f32 %v1250_v8, %v1173_v56  ;;  %v4287_v41 = vadd.f32 %v4046_v17, %v826_v14  ;;  %v1041_v14 = vpop.f32.mrf.mxu1 }
 0x183   :  { %v1213_v1 = vadd.f32 %v1212_v59, %v1170_v35  ;;  %v1175_v35 = vmul.f32 %v4259_v49, %v4259_v49  ;;  %v1176_v59 = vmul.f32 %v4262_v36, %v4262_v36  ;;  %v1111_v0 = vadd.f32 %v1110_v12, %v4245_v55 }
 0x184   :  { %v832_v19 = vpop.f32.mrf.mxu0  ;;  %5963 = vst [vmem:[#allocation63_spill] sm:$0xff] %v4283_v42  ;;  %v1075_v24 = vadd.f32 %v1074_v16, %v4250_v57  ;;  %v4296_v63 = vadd.f32 %v4073_v23, %v828_v5  ;;  %v1179_v12 = vmul.f32 %v4283_v42, %v4283_v42  ;;  %v1180_v8 = vmul.f32 %v4287_v41, %v4287_v41 }
 0x185   :  { %v1214_v30 = vadd.f32 %v1213_v1, %v1172_v45  ;;  %v1177_v1 = vmul.f32 %v4271_v25, %v4271_v25  ;;  %v1178_v45 = vmul.f32 %v4274_v51, %v4274_v51  ;;  %v1112_v6 = vadd.f32 %v1111_v0, %v4259_v49 }
 0x186   :  { %v834_v3 = vpop.f32.mrf.mxu0  ;;  %5964 = vst [vmem:[#allocation46_spill] sm:$0xff] %v4296_v63  ;;  %v4299_v20 = vadd.f32 %v4107_v31, %v832_v19  ;;  %v1252_v13 = vadd.f32 %v1251_v54, %v1175_v35  ;;  %v1076_v56 = vadd.f32 %v1075_v24, %v4262_v36 }
 0x187   :  { %v1215_v11 = vadd.f32 %v1214_v30, %v1174_v27  ;;  %v4307_v16 = vadd.f32 %v4141_v29, %v834_v3  ;;  %v1113_v5 = vadd.f32 %v1112_v6, %v4271_v25  ;;  %v1045_v3 = vpop.f32.mrf.mxu1 }
 0x188   :  { %v836_v10 = vpop.f32.mrf.mxu0  ;;  %v1253_v19 = vadd.f32 %v1252_v13, %v1177_v1  ;;  %v1077_v30 = vadd.f32 %v1076_v56, %v4274_v51  ;;  %v1182_v0 = vmul.f32 %v4299_v20, %v4299_v20 }
 0x189   :  { %v1216_v27 = vadd.f32 %v1215_v11, %v1176_v59  ;;  %5965 = vst [vmem:[#allocation47_spill] sm:$0xff] %v4307_v16  ;;  %v4310_v23 = vadd.f32 %v4171_v48, %v836_v10  ;;  %v1181_v59 = vmul.f32 %v4296_v63, %v4296_v63  ;;  %v1114_v10 = vadd.f32 %v1113_v5, %v4283_v42  ;;  %v1047_v5 = vpop.f32.mrf.mxu1 }
 0x18a   :  { %v838_v17 = vpop.f32.mrf.mxu0  ;;  %v1254_v24 = vadd.f32 %v1253_v19, %v1179_v12  ;;  %v1078_v11 = vadd.f32 %v1077_v30, %v4287_v41 }
 0x18b   :  { %v1217_v35 = vadd.f32 %v1216_v27, %v1178_v45  ;;  %v4319_v54 = vadd.f32 %v4201_v46, %v838_v17  ;;  %v1183_v45 = vmul.f32 %v4307_v16, %v4307_v16  ;;  %v1184_v6 = vmul.f32 %v4310_v23, %v4310_v23 }
 0x18c   :  { %v842_v31 = vpop.f32.mrf.mxu0  ;;  %v1079_v17 = vadd.f32 %v1078_v11, %v4299_v20  ;;  %v1255_v27 = vadd.f32 %v1254_v24, %v1181_v59 }
 0x18d   :  { %5966 = vst [vmem:[#allocation48_spill] sm:$0xff] %v4319_v54  ;;  %v4322_v29 = vadd.f32 %v4231_v9, %v842_v31  ;;  %v1218_v1 = vadd.f32 %v1217_v35, %v1180_v8  ;;  %v1115_v9 = vadd.f32 %v1114_v10, %v4296_v63  ;;  %v1185_v8 = vmul.f32 %v4319_v54, %v4319_v54 }
 0x18e   :  { %v844_v48 = vpop.f32.mrf.mxu0  ;;  %v1080_v30 = vadd.f32 %v1079_v17, %v4310_v23 }
 0x18f   :  { %v4330_v13 = vadd.f32 %v1037_v58, %v844_v48  ;;  %v1219_v12 = vadd.f32 %v1218_v1, %v1182_v0  ;;  %v1186_v31 = vmul.f32 %v4322_v29, %v4322_v29  ;;  %v1116_v58 = vadd.f32 %v1115_v9, %v4307_v16 }
 0x190   :  { %v846_v46 = vpop.f32.mrf.mxu0  ;;  %v1256_v48 = vadd.f32 %v1255_v27, %v1183_v45  ;;  %v1081_v11 = vadd.f32 %v1080_v30, %v4322_v29  ;;  %v1049_v45 = vpop.f32.mrf.mxu1 }
 0x191   :  { %5967 = vst [vmem:[#allocation49_spill] sm:$0xff] %v4330_v13  ;;  %v4334_v56 = vadd.f32 %v1039_v32, %v846_v46  ;;  %v1220_v10 = vadd.f32 %v1219_v12, %v1184_v6  ;;  %v1187_v32 = vmul.f32 %v4330_v13, %v4330_v13  ;;  %v1117_v24 = vadd.f32 %v1116_v58, %v4319_v54 }
 0x192   :  { %v848_v19 = vpop.f32.mrf.mxu0  ;;  %v1257_v46 = vadd.f32 %v1256_v48, %v1185_v8 }
 0x193   :  { %v4342_v35 = vadd.f32 %v1041_v14, %v848_v19  ;;  %v1188_v59 = vmul.f32 %v4334_v56, %v4334_v56  ;;  %v1221_v9 = vadd.f32 %v1220_v10, %v1186_v31  ;;  %v1118_v17 = vadd.f32 %v1117_v24, %v4330_v13 }
 0x194   :  { %v852_v0 = vpop.f32.mrf.mxu0  ;;  %v1082_v27 = vadd.f32 %v1081_v11, %v4334_v56  ;;  %v1258_v58 = vadd.f32 %v1257_v46, %v1187_v32  ;;  %v1051_v11 = vpop.f32.mrf.mxu1 }
 0x195   :  { %5968 = vst [vmem:[#allocation50_spill] sm:$0xff] %v4342_v35  ;;  %v4350_v1 = vadd.f32 %v1045_v3, %v852_v0  ;;  %v1189_v14 = vmul.f32 %v4342_v35, %v4342_v35  ;;  %v1222_v30 = vadd.f32 %v1221_v9, %v1188_v59  ;;  %v1119_v8 = vadd.f32 %v1118_v17, %v4342_v35 }
 0x196   :  { %v854_v6 = vpop.f32.mrf.mxu0 }
 0x197   :  { %v1190_v12 = vmul.f32 %v4350_v1, %v4350_v1  ;;  %v4358_v19 = vadd.f32 %v1047_v5, %v854_v6  ;;  %v1083_v31 = vadd.f32 %v1082_v27, %v4350_v1  ;;  %v1259_v0 = vadd.f32 %v1258_v58, %v1189_v14 }
 0x198   :  { %v856_v3 = vpop.f32.mrf.mxu0 }
 0x199   :  { %5969 = vst [vmem:[#allocation51_spill] sm:$0xff] %v4358_v19  ;;  %v1191_v48 = vmul.f32 %v4358_v19, %v4358_v19  ;;  %v4364_v10 = vadd.f32 %v1049_v45, %v856_v3  ;;  %v1223_v24 = vadd.f32 %v1222_v30, %v1190_v12  ;;  %v1120_v54 = vadd.f32 %v1119_v8, %v4358_v19 }
 0x19a   :  { %v858_v13 = vpop.f32.mrf.mxu0 }
 0x19b   :  { %v1084_v5 = vadd.f32 %v1083_v31, %v4364_v10  ;;  %v1192_v32 = vmul.f32 %v4364_v10, %v4364_v10  ;;  %v4370_v59 = vadd.f32 %v1051_v11, %v858_v13  ;;  %v1260_v46 = vadd.f32 %v1259_v0, %v1191_v48 }
 0x19d   :  { %5970 = vst [vmem:[#allocation52_spill] sm:$0xff] %v4370_v59  ;;  %v1085_v9 = vrot.slane %v1084_v5, 4  ;;  %v1224_v6 = vadd.f32 %v1223_v24, %v1192_v32  ;;  %v1121_v17 = vadd.f32 %v1120_v54, %v4370_v59  ;;  %v1193_v14 = vmul.f32 %v4370_v59, %v4370_v59 }
 0x19f   :  { %v1086_v45 = vadd.f32 %v1085_v9, %v1084_v5  ;;  %v1225_v27 = vrot.slane %v1224_v6, 4  ;;  %v1122_v12 = vrot.slane %v1121_v17, 4  ;;  %v1261_v58 = vadd.f32 %v1260_v46, %v1193_v14 }
 0x1a1   :  { %v1087_v30 = vrot.slane %v1086_v45, 2  ;;  %v1226_v3 = vadd.f32 %v1225_v27, %v1224_v6  ;;  %v1123_v8 = vadd.f32 %v1122_v12, %v1121_v17  ;;  %v1262_v31 = vrot.slane %v1261_v58, 4 }
 0x1a3   :  { %v1088_v19 = vadd.f32 %v1087_v30, %v1086_v45  ;;  %v1227_v35 = vrot.slane %v1226_v3, 2  ;;  %v1124_v13 = vrot.slane %v1123_v8, 2  ;;  %v1263_v11 = vadd.f32 %v1262_v31, %v1261_v58 }
 0x1a5   :  { %v1089_v48 = vrot.slane %v1088_v19, 1  ;;  %v1228_v0 = vadd.f32 %v1227_v35, %v1226_v3  ;;  %v1125_v24 = vadd.f32 %v1124_v13, %v1123_v8  ;;  %v1264_v32 = vrot.slane %v1263_v11, 2  ;;  %v4387_v13 = vld [vmem:[%s5745_s2 + $0x8] sm:$0xff] }
 0x1a6   :  { %5973 = vst [vmem:[#allocation55_spill] sm:$0xff] %v4387_v13 }
 0x1a7   :  { %v1090_v54 = vadd.f32 %v1089_v48, %v1088_v19  ;;  %v1229_v16 = vrot.slane %v1228_v0, 1  ;;  %v1126_v63 = vrot.slane %v1125_v24, 1  ;;  %v1265_v59 = vadd.f32 %v1264_v32, %v1263_v11 }
 0x1a8   :  { %v1290_v19 = vlaneseq }
 0x1a9   :  { %v1128_v5 = vmul.f32 0.00390625, %v1090_v54  ;;  %v1230_v9 = vadd.f32 %v1229_v16, %v1228_v0  ;;  %v1127_v42 = vadd.f32 %v1126_v63, %v1125_v24  ;;  %v1266_v46 = vrot.slane %v1265_v59, 1  ;;  %v4380_v63 = vld [vmem:[%s5745_s2] sm:$0xff] }
 0x1aa   :  { %v4375_v3 = vshrl.u32 %v1290_v19, 7  ;;  %5972 = vst [vmem:[#allocation54_spill] sm:$0xff] %v4380_v63  ;;  %v5974_v54 = vld [vmem:[#allocation41_spill] sm:$0xff] }
 0x1ab   :  { %v1268_v14 = vmul.f32 0.00390625, %v1230_v9  ;;  %v1270_v6 = vmul.f32 %v1128_v5, %v1128_v5  ;;  %v1129_v17 = vmul.f32 0.00390625, %v1127_v42  ;;  %v1267_v27 = vadd.f32 %v1266_v46, %v1265_v59  ;;  %v5975_v46 = vld [vmem:[#allocation56_spill] sm:$0xff] }
 0x1ac   :  { %5971 = vst [vmem:[#allocation53_spill] sm:$0xff] %v4375_v3  ;;  %v1292_v16 = vsub.s32 0, %v4375_v3  ;;  %v5808_v24 = vsub.s32 1, %v4375_v3 }
 0x1ad   :  { %v1272_v45 = vsub.f32 %v1268_v14, %v1270_v6  ;;  %v1269_v12 = vmul.f32 0.00390625, %v1267_v27  ;;  %v1271_v30 = vmul.f32 %v1129_v17, %v1129_v17 }
 0x1af   :  { %v1274_v58 = vadd.f32 1e-05, %v1272_v45  ;;  %v1273_v31 = vsub.f32 %v1269_v12, %v1271_v30 }
 0x1b1   :  { %3066 = vrsqrt.f32 %v1274_v58  ;;  %v1275_v35 = vadd.f32 1e-05, %v1273_v31 }
 0x1b3   :  { %3068 = vrsqrt.f32 %v1275_v35 }
 0x1be   :  { %v3067_v42 = vpop.eup %3066 }
 0x1bf   :  { %v1278_v59 = vmul.f32 %v3067_v42, %v4380_v63 }
 0x1c0   :  { %v3069_v8 = vpop.eup %3068 }
 0x1c1   :  { %v1280_v11 = vmul.f32 %v1278_v59, %v1128_v5  ;;  %v1293_v48 = vrot.slane %v1278_v59, %v1292_v16  ;;  %v1279_v32 = vmul.f32 %v3069_v8, %v4387_v13 }
 0x1c3   :  { %v1284_v0 = vrot.slane %v1280_v11, 7  ;;  %v1298_v9 = vmul.f32 %v1293_v48, %v5974_v54  ;;  %v1300_v14 = vmul.f32 %v1293_v48, %v5975_v46  ;;  %v1302_v6 = vmul.f32 %v1293_v48, %v3923_v4 }
 0x1c4   :  { %v1304_v27 = vmul.f32 %v1293_v48, %v3935_v40  ;;  %v1306_v12 = vmul.f32 %v1293_v48, %v3951_v2  ;;  %v1308_v5 = vmul.f32 %v1293_v48, %v3972_v60  ;;  %v1310_v30 = vmul.f32 %v1293_v48, %v3990_v37 }
 0x1c5   :  { %v1288_v45 = vsub.f32 %v4380_v63, %v1284_v0  ;;  %v1312_v58 = vmul.f32 %v1293_v48, %v4008_v50  ;;  %v1314_v31 = vmul.f32 %v1293_v48, %v4026_v39  ;;  %v1316_v35 = vmul.f32 %v1293_v48, %v4044_v43  ;;  %v6003_v63 = vld [vmem:[#allocation44_spill] sm:$0xff] }
 0x1c6   :  { %v1318_v19 = vmul.f32 %v1293_v48, %v4062_v47  ;;  %v1320_v4 = vmul.f32 %v1293_v48, %v4080_v52  ;;  %v1322_v40 = vmul.f32 %v1293_v48, %v4096_v7  ;;  %v1324_v42 = vmul.f32 %v1293_v48, %v4114_v18 }
 0x1c7   :  { %v1326_v2 = vmul.f32 %v1293_v48, %v4130_v22  ;;  %v1328_v60 = vmul.f32 %v1293_v48, %v4148_v61  ;;  %v1330_v37 = vmul.f32 %v1293_v48, %v4162_v21  ;;  %v1332_v50 = vmul.f32 %v1293_v48, %v4178_v62 }
 0x1c8   :  { %v1334_v39 = vmul.f32 %v1293_v48, %v4192_v34  ;;  %v1336_v43 = vmul.f32 %v1293_v48, %v4208_v15  ;;  %v1338_v47 = vmul.f32 %v1293_v48, %v4222_v53  ;;  %v1340_v52 = vmul.f32 %v1293_v48, %v4238_v28 }
 0x1c9   :  { %v1342_v7 = vmul.f32 %v1293_v48, %v4250_v57  ;;  %v1344_v18 = vmul.f32 %v1293_v48, %v4262_v36  ;;  %v1346_v22 = vmul.f32 %v1293_v48, %v4274_v51  ;;  %v1348_v61 = vmul.f32 %v1293_v48, %v4287_v41 }
 0x1ca   :  { %v1350_v21 = vmul.f32 %v1293_v48, %v4299_v20  ;;  %v1352_v62 = vmul.f32 %v1293_v48, %v4310_v23  ;;  %v1354_v34 = vmul.f32 %v1293_v48, %v4322_v29  ;;  %v1356_v15 = vmul.f32 %v1293_v48, %v4334_v56 }
 0x1cb   :  { %v1365_v53 = vrot.slane %v1288_v45, %v5808_v24  ;;  %v1358_v28 = vmul.f32 %v1293_v48, %v4350_v1  ;;  %v1360_v57 = vmul.f32 %v1293_v48, %v4364_v10  ;;  %v4426_v36 = vmul.f32 %v1279_v32, %v1129_v17  ;;  %v6001_v24 = vld [vmem:[#allocation42_spill] sm:$0xff] }
 0x1cc   :  { %v4428_v51 = vrot.slane %v1279_v32, %v1292_v16 }
 0x1cd   :  { %v4430_v41 = vadd.f32 %v1365_v53, %v1298_v9  ;;  %v4432_v20 = vadd.f32 %v1365_v53, %v1300_v14  ;;  %v4434_v23 = vadd.f32 %v1365_v53, %v1302_v6  ;;  %v4436_v29 = vadd.f32 %v1365_v53, %v1304_v27 }
 0x1ce   :  { %v4438_v56 = vadd.f32 %v1365_v53, %v1306_v12  ;;  %v4440_v59 = vadd.f32 %v1365_v53, %v1308_v5  ;;  %v4442_v8 = vadd.f32 %v1365_v53, %v1310_v30  ;;  %v4444_v1 = vadd.f32 %v1365_v53, %v1312_v58 }
 0x1cf   :  { %v4446_v10 = vadd.f32 %v1365_v53, %v1314_v31  ;;  %v4448_v17 = vadd.f32 %v1365_v53, %v1316_v35  ;;  %v4450_v16 = vadd.f32 %v1365_v53, %v1318_v19  ;;  %v4452_v11 = vadd.f32 %v1365_v53, %v1320_v4 }
 0x1d0   :  { %v4454_v48 = vadd.f32 %v1365_v53, %v1322_v40  ;;  %v4456_v0 = vadd.f32 %v1365_v53, %v1324_v42  ;;  %v4458_v32 = vadd.f32 %v1365_v53, %v1326_v2  ;;  %v4460_v54 = vadd.f32 %v1365_v53, %v1328_v60  ;;  %v5999_v60 = vld [vmem:[#allocation73_spill] sm:$0xff]  ;;  %v6000_v2 = vld [vmem:[#allocation74_spill] sm:$0xff] }
 0x1d1   :  { %v4462_v9 = vadd.f32 %v1365_v53, %v1330_v37  ;;  %v4464_v46 = vadd.f32 %v1365_v53, %v1332_v50  ;;  %v4466_v14 = vadd.f32 %v1365_v53, %v1334_v39  ;;  %v4468_v6 = vadd.f32 %v1365_v53, %v1336_v43  ;;  %v5995_v43 = vld [vmem:[#allocation69_spill] sm:$0xff]  ;;  %v5996_v39 = vld [vmem:[#allocation70_spill] sm:$0xff]  ;;  %v5997_v50 = vld [vmem:[#allocation71_spill] sm:$0xff] }
 0x1d2   :  { %v4470_v27 = vadd.f32 %v1365_v53, %v1338_v47  ;;  %v4472_v45 = vadd.f32 %v1365_v53, %v1340_v52  ;;  %v4474_v12 = vadd.f32 %v1365_v53, %v1342_v7  ;;  %v4476_v5 = vadd.f32 %v1365_v53, %v1344_v18  ;;  %v5991_v7 = vld [vmem:[#allocation65_spill] sm:$0xff]  ;;  %v5993_v52 = vld [vmem:[#allocation67_spill] sm:$0xff]  ;;  %v5994_v47 = vld [vmem:[#allocation68_spill] sm:$0xff] }
 0x1d3   :  { %5976 = vst [vmem:[#allocation57_spill] sm:$0xff] %v4468_v6  ;;  %v4478_v30 = vadd.f32 %v1365_v53, %v1346_v22  ;;  %v4480_v58 = vadd.f32 %v1365_v53, %v1348_v61  ;;  %v4482_v31 = vadd.f32 %v1365_v53, %v1350_v21  ;;  %v4484_v35 = vadd.f32 %v1365_v53, %v1352_v62  ;;  %v5992_v22 = vld [vmem:[#allocation66_spill] sm:$0xff]  ;;  %v5998_v37 = vld [vmem:[#allocation72_spill] sm:$0xff] }
 0x1d4   :  { %5977 = vst [vmem:[#allocation59_spill] sm:$0xff] %v4470_v27  ;;  %5978 = vst [vmem:[#allocation61_spill] sm:$0xff] %v4472_v45  ;;  %v4486_v19 = vadd.f32 %v1365_v53, %v1354_v34  ;;  %v4488_v4 = vadd.f32 %v1365_v53, %v1356_v15  ;;  %v4490_v40 = vadd.f32 %v1365_v53, %v1358_v28  ;;  %v1285_v21 = vrot.slane %v4426_v36, 7  ;;  %v5989_v34 = vld [vmem:[#allocation58_spill] sm:$0xff]  ;;  %v6014_v45 = vld [vmem:[#allocation52_spill] sm:$0xff] }
 0x1d5   :  { %5979 = vst [vmem:[#allocation64_spill] sm:$0xff] %v4474_v12  ;;  %5980 = vst [vmem:[#allocation41_spill] sm:$0xff] %v4476_v5  ;;  %v4492_v42 = vadd.f32 %v1365_v53, %v1360_v57  ;;  %v1299_v62 = vmul.f32 %v4428_v51, %v3814_v38  ;;  %v1301_v15 = vmul.f32 %v4428_v51, %v5989_v34  ;;  %v5990_v28 = vld [vmem:[#allocation62_spill] sm:$0xff]  ;;  %v6013_v12 = vld [vmem:[#allocation51_spill] sm:$0xff] }
 0x1d6   :  { %5981 = vst [vmem:[#allocation56_spill] sm:$0xff] %v4478_v30  ;;  %5982 = vst [vmem:[#allocation75_spill] sm:$0xff] %v4480_v58  ;;  %v1303_v53 = vmul.f32 %v4428_v51, %v3928_v26  ;;  %v1305_v57 = vmul.f32 %v4428_v51, %v5990_v28  ;;  %v1307_v18 = vmul.f32 %v4428_v51, %v5991_v7  ;;  %v6011_v30 = vld [vmem:[#allocation49_spill] sm:$0xff]  ;;  %v6012_v5 = vld [vmem:[#allocation50_spill] sm:$0xff] }
 0x1d7   :  { %5983 = vst [vmem:[#allocation76_spill] sm:$0xff] %v4482_v31  ;;  %5984 = vst [vmem:[#allocation77_spill] sm:$0xff] %v4484_v35  ;;  %v1309_v61 = vmul.f32 %v4428_v51, %v5992_v22  ;;  %v1289_v36 = vsub.f32 %v4387_v13, %v1285_v21  ;;  %v1311_v38 = vmul.f32 %v4428_v51, %v5993_v52  ;;  %v6002_v13 = vld [vmem:[#allocation43_spill] sm:$0xff]  ;;  %v6009_v31 = vld [vmem:[#allocation48_spill] sm:$0xff] }
 0x1d8   :  { %5985 = vst [vmem:[#allocation78_spill] sm:$0xff] %v4486_v19  ;;  %5986 = vst [vmem:[#allocation79_spill] sm:$0xff] %v4488_v4  ;;  %v1313_v34 = vmul.f32 %v4428_v51, %v5994_v47  ;;  %v1315_v26 = vmul.f32 %v4428_v51, %v5995_v43  ;;  %v1317_v28 = vmul.f32 %v4428_v51, %v5996_v39  ;;  %v6006_v4 = vld [vmem:[#allocation63_spill] sm:$0xff]  ;;  %v6007_v19 = vld [vmem:[#allocation46_spill] sm:$0xff] }
 0x1d9   :  { %5987 = vst [vmem:[#allocation80_spill] sm:$0xff] %v4490_v40  ;;  %5988 = vst [vmem:[#allocation81_spill] sm:$0xff] %v4492_v42  ;;  %v1319_v7 = vmul.f32 %v4428_v51, %v5997_v50  ;;  %v1321_v22 = vmul.f32 %v4428_v51, %v5998_v37  ;;  %v1323_v21 = vmul.f32 %v4428_v51, %v5999_v60  ;;  %v6004_v42 = vld [vmem:[#allocation60_spill] sm:$0xff]  ;;  %v6005_v40 = vld [vmem:[#allocation45_spill] sm:$0xff] }
 0x1da   :  { %v1325_v52 = vmul.f32 %v4428_v51, %v6000_v2  ;;  %v1327_v47 = vmul.f32 %v4428_v51, %v6001_v24  ;;  %v1329_v43 = vmul.f32 %v4428_v51, %v6002_v13  ;;  %v1331_v39 = vmul.f32 %v4428_v51, %v6003_v63  ;;  %v6008_v35 = vld [vmem:[#allocation47_spill] sm:$0xff] }
 0x1db   :  { %v1333_v50 = vmul.f32 %v4428_v51, %v6004_v42  ;;  %v1335_v37 = vmul.f32 %v4428_v51, %v6005_v40  ;;  %v1337_v60 = vmul.f32 %v4428_v51, %v4215_v33  ;;  %v1339_v2 = vmul.f32 %v4428_v51, %v4229_v44 }
 0x1dc   :  { %v1341_v24 = vmul.f32 %v4428_v51, %v4245_v55  ;;  %v1343_v13 = vmul.f32 %v4428_v51, %v4259_v49  ;;  %v1345_v63 = vmul.f32 %v4428_v51, %v4271_v25  ;;  %v1347_v42 = vmul.f32 %v4428_v51, %v6006_v4 }
 0x1dd   :  { %v1349_v40 = vmul.f32 %v4428_v51, %v6007_v19  ;;  %v1351_v33 = vmul.f32 %v4428_v51, %v6008_v35  ;;  %v1353_v44 = vmul.f32 %v4428_v51, %v6009_v31  ;;  %v6010_v55 = vsub.s32 1, %v4375_v3 }
 0x1de   :  { %v1355_v49 = vmul.f32 %v4428_v51, %v6011_v30  ;;  %v1357_v25 = vmul.f32 %v4428_v51, %v6012_v5  ;;  %v1359_v4 = vmul.f32 %v4428_v51, %v6013_v12  ;;  %v1361_v19 = vmul.f32 %v4428_v51, %v6014_v45 }
 0x1df   :  { %v1369_v58 = vrot.slane %v1289_v36, %v6010_v55 }
 0x1e1   :  { %v4594_v27 = vadd.f32 %v1369_v58, %v1299_v62  ;;  %v4596_v35 = vadd.f32 %v1369_v58, %v1301_v15  ;;  %v4598_v31 = vadd.f32 %v1369_v58, %v1303_v53  ;;  %v4600_v3 = vadd.f32 %v1369_v58, %v1305_v57 }
 0x1e2   :  { %v4602_v36 = vadd.f32 %v1369_v58, %v1307_v18  ;;  %v4604_v30 = vadd.f32 %v1369_v58, %v1309_v61  ;;  %v4606_v55 = vadd.f32 %v1369_v58, %v1311_v38  ;;  %v4608_v5 = vadd.f32 %v1369_v58, %v1313_v34 }
 0x1e3   :  { %v4610_v12 = vadd.f32 %v1369_v58, %v1315_v26  ;;  %v4612_v6 = vadd.f32 %v1369_v58, %v1317_v28  ;;  %v4614_v51 = vadd.f32 %v1369_v58, %v1319_v7  ;;  %v4616_v45 = vadd.f32 %v1369_v58, %v1321_v22 }
 0x1e4   :  { %v4618_v62 = vadd.f32 %v1369_v58, %v1323_v21  ;;  %v4620_v15 = vadd.f32 %v1369_v58, %v1325_v52  ;;  %v4622_v18 = vadd.f32 %v1369_v58, %v1327_v47  ;;  %v4624_v61 = vadd.f32 %v1369_v58, %v1329_v43 }
 0x1e5   :  { %v4626_v53 = vadd.f32 %v1369_v58, %v1331_v39  ;;  %v4628_v57 = vadd.f32 %v1369_v58, %v1333_v50  ;;  %v4630_v38 = vadd.f32 %v1369_v58, %v1335_v37  ;;  %v4632_v34 = vadd.f32 %v1369_v58, %v1337_v60 }
 0x1e6   :  { %v4634_v26 = vadd.f32 %v1369_v58, %v1339_v2  ;;  %v4636_v28 = vadd.f32 %v1369_v58, %v1341_v24  ;;  %v4638_v7 = vadd.f32 %v1369_v58, %v1343_v13  ;;  %v4640_v22 = vadd.f32 %v1369_v58, %v1345_v63 }
 0x1e7   :  { %v4642_v21 = vadd.f32 %v1369_v58, %v1347_v42  ;;  %v4644_v52 = vadd.f32 %v1369_v58, %v1349_v40  ;;  %v4646_v47 = vadd.f32 %v1369_v58, %v1351_v33  ;;  %v4648_v43 = vadd.f32 %v1369_v58, %v1353_v44  ;;  %v6016_v42 = vld [vmem:[#allocation24_spill] sm:$0xff]  ;;  %v6019_v40 = vld [vmem:[#allocation21_spill] sm:$0xff] }
 0x1e8   :  { %v4650_v39 = vadd.f32 %v1369_v58, %v1355_v49  ;;  %v4652_v50 = vadd.f32 %v1369_v58, %v1357_v25  ;;  %v4654_v37 = vadd.f32 %v1369_v58, %v1359_v4  ;;  %v4656_v60 = vadd.f32 %v1369_v58, %v1361_v19  ;;  %v6017_v4 = vld [vmem:[#allocation23_spill] sm:$0xff]  ;;  %v6018_v19 = vld [vmem:[#allocation22_spill] sm:$0xff] }
 0x1e9   :  { %v1435_v2 = vmax.f32 %v4594_v27, 0.0  ;;  %v1437_v24 = vmax.f32 %v4596_v35, 0.0  ;;  %v2834_v63 = vcombine.high %v6017_v4, %v6016_v42  ;;  %v2833_v35 = vcombine.low %v6017_v4, %v6016_v42 }
 0x1ea   :  { %6015 = vst [vmem:[#allocation58_spill] sm:$0xff] %v4656_v60  ;;  %v2832_v13 = vcombine.high %v6019_v40, %v6018_v19 }
 0x1eb   :  { %3090 = dma.done.wait [#allocation4], 4096 }
 0x1ec   :  { %3091 = vsyncadd [#allocation4], 4294963200  ;;  %1726 = vmatprep.subr.bf16.mxu1 %v2834_v63  ;;  %v2831_v58 = vcombine.low %v6019_v40, %v6018_v19  ;;  %v6020_v27 = vld [vmem:[#allocation20_spill] sm:$0xff]  ;;  %v6021_v49 = vld [vmem:[#allocation19_spill] sm:$0xff]  ;;  %v1503_v60 = vpack.c.bf16 %v1437_v24, %v1435_v2 }
 0x1ed   :  { %1727 = vmatpush1.bf16.msra.mxu1 %v2833_v35  ;;  %v2830_v25 = vcombine.high %v6021_v49, %v6020_v27  ;;  %v2829_v44 = vcombine.low %v6021_v49, %v6020_v27  ;;  %v6022_v42 = vld [vmem:[#allocation18_spill] sm:$0xff]  ;;  %v6023_v4 = vld [vmem:[#allocation17_spill] sm:$0xff]  ;;  %v6024_v40 = vld [vmem:[#allocation16_spill] sm:$0xff] }
 0x1ee   :  { %1728 = vmatprep.subr.bf16.mxu1 %v2832_v13  ;;  %v2828_v33 = vcombine.high %v6023_v4, %v6022_v42  ;;  %1758 = vmatprep.mubr.bf16.mxu1 %v1503_v60  ;;  %v2827_v63 = vcombine.low %v6023_v4, %v6022_v42  ;;  %v6025_v13 = vld [vmem:[#allocation15_spill] sm:$0xff]  ;;  %v6026_v49 = vld [vmem:[#allocation14_spill] sm:$0xff]  ;;  %v6027_v27 = vld [vmem:[#allocation13_spill] sm:$0xff] }
 0x1ef   :  { %v2826_v19 = vcombine.high %v6025_v13, %v6024_v40  ;;  %v2823_v60 = vcombine.low %v6027_v27, %v6026_v49  ;;  %v6028_v2 = vld [vmem:[#allocation12_spill] sm:$0xff]  ;;  %v6029_v24 = vld [vmem:[#allocation11_spill] sm:$0xff]  ;;  %v6030_v35 = vld [vmem:[#allocation10_spill] sm:$0xff] }
 0x1f0   :  { %v6031_v42 = vld [vmem:[#allocation9_spill] sm:$0xff] }
 0x1f1   :  { %1729 = vmatpush1.bf16.msra.mxu1 %v2831_v58  ;;  %v2825_v58 = vcombine.low %v6025_v13, %v6024_v40  ;;  %v2820_v4 = vcombine.high %v6031_v42, %v6030_v35  ;;  %v6032_v40 = vld [vmem:[#allocation40_spill] sm:$0xff]  ;;  %v6033_v13 = vld [vmem:[#allocation39_spill] sm:$0xff] }
 0x1f2   :  { %1730 = vmatprep.subr.bf16.mxu1 %v2830_v25  ;;  %v2824_v25 = vcombine.high %v6027_v27, %v6026_v49  ;;  %v6034_v49 = vld [vmem:[#allocation38_spill] sm:$0xff]  ;;  %v6035_v27 = vld [vmem:[#allocation37_spill] sm:$0xff] }
 0x1f5   :  { %1731 = vmatpush1.bf16.msra.mxu1 %v2829_v44  ;;  %v2822_v44 = vcombine.high %v6029_v24, %v6028_v2 }
 0x1f6   :  { %1732 = vmatprep.subr.bf16.mxu1 %v2828_v33  ;;  %v2821_v33 = vcombine.low %v6029_v24, %v6028_v2  ;;  %v6036_v2 = vld [vmem:[#allocation36_spill] sm:$0xff]  ;;  %v6037_v24 = vld [vmem:[#allocation35_spill] sm:$0xff] }
 0x1f9   :  { %1733 = vmatpush1.bf16.msra.mxu1 %v2827_v63  ;;  %v2819_v63 = vcombine.low %v6031_v42, %v6030_v35  ;;  %v6038_v35 = vld [vmem:[#allocation34_spill] sm:$0xff]  ;;  %v6039_v42 = vld [vmem:[#allocation33_spill] sm:$0xff] }
 0x1fa   :  { %1734 = vmatprep.subr.bf16.mxu1 %v2826_v19  ;;  %v2850_v19 = vcombine.high %v6033_v13, %v6032_v40 }
 0x1fd   :  { %1735 = vmatpush1.bf16.msra.mxu1 %v2825_v58  ;;  %v2849_v58 = vcombine.low %v6033_v13, %v6032_v40  ;;  %v6040_v40 = vld [vmem:[#allocation32_spill] sm:$0xff]  ;;  %v6041_v13 = vld [vmem:[#allocation31_spill] sm:$0xff] }
 0x1fe   :  { %1736 = vmatprep.subr.bf16.mxu1 %v2824_v25  ;;  %v2848_v25 = vcombine.high %v6035_v27, %v6034_v49 }
 0x201   :  { %1737 = vmatpush1.bf16.msra.mxu1 %v2823_v60  ;;  %v2847_v60 = vcombine.low %v6035_v27, %v6034_v49  ;;  %v6042_v49 = vld [vmem:[#allocation30_spill] sm:$0xff]  ;;  %v6043_v27 = vld [vmem:[#allocation29_spill] sm:$0xff] }
 0x202   :  { %1738 = vmatprep.subr.bf16.mxu1 %v2822_v44  ;;  %v2846_v44 = vcombine.high %v6037_v24, %v6036_v2 }
 0x205   :  { %1739 = vmatpush1.bf16.msra.mxu1 %v2821_v33  ;;  %v2845_v33 = vcombine.low %v6037_v24, %v6036_v2  ;;  %v6044_v2 = vld [vmem:[#allocation28_spill] sm:$0xff]  ;;  %v6045_v24 = vld [vmem:[#allocation27_spill] sm:$0xff] }
 0x206   :  { %1740 = vmatprep.subr.bf16.mxu1 %v2820_v4  ;;  %v2844_v4 = vcombine.high %v6039_v42, %v6038_v35 }
 0x209   :  { %1741 = vmatpush1.bf16.msra.mxu1 %v2819_v63  ;;  %v2843_v63 = vcombine.low %v6039_v42, %v6038_v35  ;;  %v6046_v35 = vld [vmem:[#allocation26_spill] sm:$0xff]  ;;  %v6047_v42 = vld [vmem:[#allocation25_spill] sm:$0xff] }
 0x20a   :  { %1742 = vmatprep.subr.bf16.mxu1 %v2850_v19  ;;  %v2842_v19 = vcombine.high %v6041_v13, %v6040_v40 }
 0x20d   :  { %1743 = vmatpush2.bf16.msra.mxu1 %v2849_v58  ;;  %v2841_v58 = vcombine.low %v6041_v13, %v6040_v40  ;;  %v6048_v40 = vmax.f32 %v4430_v41, 0.0  ;;  %v6049_v13 = vmax.f32 %v4432_v20, 0.0  ;;  %v6055_v41 = vmax.f32 %v4604_v30, 0.0 }
 0x20e   :  { %1744 = vmatprep.subr.bf16.mxu1 %v2848_v25  ;;  %v2840_v25 = vcombine.high %v6043_v27, %v6042_v49  ;;  %v6056_v20 = vmax.f32 %v4438_v56, 0.0 }
 0x211   :  { %1745 = vmatpush2.bf16.msra.mxu1 %v2847_v60  ;;  %v2839_v60 = vcombine.low %v6043_v27, %v6042_v49  ;;  %v6051_v49 = vmax.f32 %v4600_v3, 0.0 }
 0x212   :  { %1746 = vmatprep.subr.bf16.mxu1 %v2846_v44  ;;  %v2838_v44 = vcombine.high %v6045_v24, %v6044_v2 }
 0x215   :  { %1747 = vmatpush2.bf16.msra.mxu1 %v2845_v33  ;;  %v2837_v33 = vcombine.low %v6045_v24, %v6044_v2  ;;  %v6054_v24 = vmax.f32 %v4602_v36, 0.0  ;;  %v6061_v36 = vmax.f32 %v4444_v1, 0.0  ;;  %v6068_v1 = vmax.f32 %v4450_v16, 0.0 }
 0x216   :  { %1748 = vmatprep.subr.bf16.mxu1 %v2844_v4  ;;  %v2836_v4 = vcombine.high %v6047_v42, %v6046_v35 }
 0x219   :  { %1749 = vmatpush2.bf16.msra.mxu1 %v2843_v63  ;;  %v2835_v63 = vcombine.low %v6047_v42, %v6046_v35  ;;  %v6059_v35 = vmax.f32 %v4608_v5, 0.0  ;;  %v6062_v42 = vmax.f32 %v4610_v12, 0.0  ;;  %v6069_v12 = vmax.f32 %v4452_v11, 0.0 }
 0x21a   :  { %1750 = vmatprep.subr.bf16.mxu1 %v2842_v19  ;;  %v1502_v19 = vpack.c.bf16 %v6049_v13, %v6048_v40  ;;  %v6067_v40 = vmax.f32 %v4616_v45, 0.0  ;;  %v6070_v13 = vmax.f32 %v4618_v62, 0.0  ;;  %v6076_v11 = vmax.f32 %v4458_v32, 0.0 }
 0x21b   :  { %v6077_v62 = vmax.f32 %v4460_v54, 0.0  ;;  %v6084_v54 = vmax.f32 %v4466_v14, 0.0 }
 0x21d   :  { %1751 = vmatpush2.bf16.msra.mxu1 %v2841_v58  ;;  %v6050_v58 = vmax.f32 %v4598_v31, 0.0  ;;  %v6057_v31 = vmax.f32 %v4440_v59, 0.0  ;;  %v6064_v59 = vmax.f32 %v4446_v10, 0.0 }
 0x21e   :  { %1752 = vmatprep.subr.bf16.mxu1 %v2840_v25  ;;  %v6052_v25 = vmax.f32 %v4434_v23, 0.0 }
 0x21f   :  { %v1505_v27 = vpack.c.bf16 %v6051_v49, %v6050_v58  ;;  %v1506_v3 = vpack.c.bf16 %v6057_v31, %v6056_v20  ;;  %v6074_v58 = vmax.f32 %v4622_v18, 0.0  ;;  %v6075_v49 = vmax.f32 %v4624_v61, 0.0 }
 0x220   :  { %v6081_v18 = vmax.f32 %v4464_v46, 0.0  ;;  %v6089_v46 = vld [vmem:[#allocation59_spill] sm:$0xff] }
 0x221   :  { %1753 = vmatpush2.bf16.msra.mxu1 %v2839_v60  ;;  %v6053_v60 = vmax.f32 %v4436_v29, 0.0  ;;  %v6060_v29 = vmax.f32 %v4442_v8, 0.0  ;;  %v1517_v16 = vpack.c.bf16 %v6075_v49, %v6074_v58  ;;  %v6090_v20 = vmax.f32 %v6089_v46, 0.0 }
 0x222   :  { %1754 = vmatprep.subr.bf16.mxu1 %v2838_v44  ;;  %v1507_v44 = vpack.c.bf16 %v6055_v41, %v6054_v24  ;;  %v6087_v41 = vmax.f32 %v4634_v26, 0.0  ;;  %v6097_v26 = vld [vmem:[#allocation41_spill] sm:$0xff] }
 0x223   :  { %v1504_v2 = vpack.c.bf16 %v6053_v60, %v6052_v25  ;;  %v1508_v30 = vpack.c.bf16 %v6061_v36, %v6060_v29  ;;  %v6079_v25 = vmax.f32 %v4628_v57, 0.0  ;;  %v6082_v60 = vmax.f32 %v4630_v38, 0.0  ;;  %v6091_v38 = vld [vmem:[#allocation61_spill] sm:$0xff] }
 0x224   :  { %v6092_v31 = vmax.f32 %v6091_v38, 0.0  ;;  %v6098_v29 = vmax.f32 %v6097_v26, 0.0  ;;  %v6099_v36 = vmax.f32 %v4642_v21, 0.0  ;;  %v6109_v21 = vld [vmem:[#allocation77_spill] sm:$0xff] }
 0x225   :  { %1755 = vmatpush2.bf16.msra.mxu1 %v2837_v33  ;;  %v6058_v33 = vmax.f32 %v4606_v55, 0.0  ;;  %v6065_v55 = vmax.f32 %v4448_v17, 0.0  ;;  %v6072_v17 = vmax.f32 %v4454_v48, 0.0 }
 0x226   :  { %1756 = vmatprep.subr.bf16.mxu1 %v2836_v4  ;;  %v6063_v4 = vmax.f32 %v4612_v6, 0.0  ;;  %v1512_v6 = vpack.c.bf16 %v6069_v12, %v6068_v1  ;;  %v6110_v1 = vmax.f32 %v6109_v21, 0.0  ;;  %v6111_v12 = vmax.f32 %v4650_v39, 0.0  ;;  %v6122_v39 = vld [vmem:[#allocation81_spill] sm:$0xff] }
 0x227   :  { %v1509_v23 = vpack.c.bf16 %v6059_v35, %v6058_v33  ;;  %v1510_v5 = vpack.c.bf16 %v6065_v55, %v6064_v59  ;;  %v6094_v33 = vmax.f32 %v4640_v22, 0.0  ;;  %v6095_v35 = vld [vmem:[#allocation64_spill] sm:$0xff]  ;;  %v6105_v55 = vmax.f32 %v4646_v47, 0.0  ;;  %v6115_v47 = vld [vmem:[#allocation79_spill] sm:$0xff] }
 0x228   :  { %v1511_v56 = vpack.c.bf16 %v6063_v4, %v6062_v42  ;;  %v6101_v4 = vld [vmem:[#allocation56_spill] sm:$0xff] }
 0x229   :  { %1757 = vmatpush2.bf16.msra.mxu1 %v2835_v63  ;;  %v6066_v63 = vmax.f32 %v4614_v51, 0.0  ;;  %v6073_v51 = vmax.f32 %v4456_v0, 0.0  ;;  %v6080_v0 = vmax.f32 %v4462_v9, 0.0 }
 0x22b   :  { %v1513_v8 = vpack.c.bf16 %v6067_v40, %v6066_v63  ;;  %v1514_v45 = vpack.c.bf16 %v6073_v51, %v6072_v17  ;;  %v1518_v61 = vpack.c.bf16 %v6081_v18, %v6080_v0  ;;  %v6107_v40 = vld [vmem:[#allocation76_spill] sm:$0xff]  ;;  %v6116_v17 = vmax.f32 %v6115_v47, 0.0 }
 0x22c   :  { %1759 = vmatmul.mubr.bf16.vlgmr.msra.gmra.mxu1 %v1502_v19  ;;  %v6071_v19 = vmax.f32 %v4620_v15, 0.0  ;;  %v1516_v15 = vpack.c.bf16 %v6077_v62, %v6076_v11  ;;  %v6117_v51 = vmax.f32 %v4654_v37, 0.0  ;;  %v6123_v62 = vmax.f32 %v6122_v39, 0.0 }
 0x22d   :  { %1768 = vmatprep.mubr.bf16.mxu1 %v1505_v27  ;;  %v6078_v27 = vmax.f32 %v4626_v53, 0.0  ;;  %v6085_v53 = vld [vmem:[#allocation57_spill] sm:$0xff] }
 0x22e   :  { %v1515_v10 = vpack.c.bf16 %v6071_v19, %v6070_v13  ;;  %v6086_v24 = vmax.f32 %v6085_v53, 0.0  ;;  %v6113_v19 = vld [vmem:[#allocation78_spill] sm:$0xff] }
 0x22f   :  { %v1519_v48 = vpack.c.bf16 %v6079_v25, %v6078_v27 }
 0x230   :  { %v1520_v57 = vpack.c.bf16 %v6086_v24, %v6084_v54 }
 0x234   :  { %1769 = vmatmul.mubr.bf16.gmra.mxu1 %v1504_v2  ;;  %v6083_v2 = vmax.f32 %v4632_v34, 0.0  ;;  %v1522_v34 = vpack.c.bf16 %v6092_v31, %v6090_v20 }
 0x235   :  { %1778 = vmatprep.mubr.bf16.mxu1 %v1507_v44  ;;  %v6088_v44 = vmax.f32 %v4636_v28, 0.0 }
 0x236   :  { %v1521_v32 = vpack.c.bf16 %v6083_v2, %v6082_v60 }
 0x237   :  { %v1523_v9 = vpack.c.bf16 %v6088_v44, %v6087_v41 }
 0x23c   :  { %1779 = vmatmul.mubr.bf16.gmra.mxu1 %v1506_v3  ;;  %v6093_v3 = vmax.f32 %v4638_v7, 0.0  ;;  %v6103_v7 = vld [vmem:[#allocation75_spill] sm:$0xff] }
 0x23d   :  { %1788 = vmatprep.mubr.bf16.mxu1 %v1509_v23  ;;  %v6096_v23 = vmax.f32 %v6095_v35, 0.0  ;;  %v6104_v59 = vmax.f32 %v6103_v7, 0.0 }
 0x23e   :  { %v1525_v14 = vpack.c.bf16 %v6094_v33, %v6093_v3 }
 0x23f   :  { %v1524_v28 = vpack.c.bf16 %v6098_v29, %v6096_v23 }
 0x244   :  { %1789 = vmatmul.mubr.bf16.gmra.mxu1 %v1508_v30  ;;  %v6100_v30 = vmax.f32 %v4644_v52, 0.0 }
 0x245   :  { %1798 = vmatprep.mubr.bf16.mxu1 %v1511_v56  ;;  %v6102_v56 = vmax.f32 %v6101_v4, 0.0 }
 0x246   :  { %v1527_v42 = vpack.c.bf16 %v6100_v30, %v6099_v36 }
 0x247   :  { %v1526_v22 = vpack.c.bf16 %v6104_v59, %v6102_v56 }
 0x24c   :  { %1799 = vmatmul.mubr.bf16.gmra.mxu1 %v1510_v5  ;;  %v6106_v5 = vmax.f32 %v4648_v43, 0.0 }
 0x24d   :  { %1808 = vmatprep.mubr.bf16.mxu1 %v1513_v8  ;;  %v6108_v8 = vmax.f32 %v6107_v40, 0.0 }
 0x24e   :  { %v1529_v63 = vpack.c.bf16 %v6106_v5, %v6105_v55 }
 0x24f   :  { %v1528_v52 = vpack.c.bf16 %v6110_v1, %v6108_v8 }
 0x254   :  { %1809 = vmatmul.mubr.bf16.gmra.mxu1 %v1512_v6  ;;  %v6112_v6 = vmax.f32 %v4652_v50, 0.0 }
 0x255   :  { %1818 = vmatprep.mubr.bf16.mxu1 %v1515_v10  ;;  %v6114_v10 = vmax.f32 %v6113_v19, 0.0 }
 0x256   :  { %v1531_v13 = vpack.c.bf16 %v6112_v6, %v6111_v12 }
 0x257   :  { %v1530_v43 = vpack.c.bf16 %v6116_v17, %v6114_v10 }
 0x25c   :  { %1819 = vmatmul.mubr.bf16.gmra.mxu1 %v1514_v45  ;;  %v6118_v45 = vld [vmem:[#allocation58_spill] sm:$0xff] }
 0x25d   :  { %1828 = vmatprep.mubr.bf16.mxu1 %v1517_v16  ;;  %v6119_v58 = vmax.f32 %v6118_v45, 0.0  ;;  %v6120_v16 = vld [vmem:[#allocation80_spill] sm:$0xff] }
 0x25e   :  { %v6121_v11 = vmax.f32 %v6120_v16, 0.0 }
 0x25f   :  { %v1533_v49 = vpack.c.bf16 %v6119_v58, %v6117_v51 }
 0x260   :  { %v1532_v50 = vpack.c.bf16 %v6123_v62, %v6121_v11 }
 0x264   :  { %1829 = vmatmul.mubr.bf16.gmra.mxu1 %v1516_v15 }
 0x265   :  { %1838 = vmatprep.mubr.bf16.mxu1 %v1519_v48 }
 0x26c   :  { %1839 = vmatmul.mubr.bf16.gmra.mxu1 %v1518_v61 }
 0x26d   :  { %1848 = vmatprep.mubr.bf16.mxu1 %v1521_v32 }
 0x274   :  { %1849 = vmatmul.mubr.bf16.gmra.mxu1 %v1520_v57 }
 0x275   :  { %1858 = vmatprep.mubr.bf16.mxu1 %v1523_v9 }
 0x27c   :  { %1859 = vmatmul.mubr.bf16.gmra.mxu1 %v1522_v34 }
 0x27d   :  { %1868 = vmatprep.mubr.bf16.mxu1 %v1525_v14 }
 0x284   :  { %1869 = vmatmul.mubr.bf16.gmra.mxu1 %v1524_v28 }
 0x285   :  { %1878 = vmatprep.mubr.bf16.mxu1 %v1527_v42 }
 0x28c   :  { %1879 = vmatmul.mubr.bf16.gmra.mxu1 %v1526_v22 }
 0x28d   :  { %1888 = vmatprep.mubr.bf16.mxu1 %v1529_v63 }
 0x294   :  { %1889 = vmatmul.mubr.bf16.gmra.mxu1 %v1528_v52 }
 0x295   :  { %1898 = vmatprep.mubr.bf16.mxu1 %v1531_v13 }
 0x29c   :  { %1899 = vmatmul.mubr.bf16.gmra.mxu1 %v1530_v43 }
 0x29d   :  { %1908 = vmatprep.mubr.bf16.mxu1 %v1533_v49 }
 0x2a4   :  { %1909 = vmatmul.mubr.bf16.gmra.mxu1 %v1532_v50 }
 0x2ec   :  { %v4878_v15 = vpop.f32.mrf.mxu1 }
 0x2ed   :  { %v1995_v56 = vmul.f32 %v4878_v15, %v4878_v15 }
 0x2ee   :  { %v4880_v27 = vpop.f32.mrf.mxu1 }
 0x2ef   :  { %v1996_v22 = vmul.f32 %v4880_v27, %v4880_v27 }
 0x2f0   :  { %v4882_v25 = vpop.f32.mrf.mxu1 }
 0x2f1   :  { %v1997_v30 = vmul.f32 %v4882_v25, %v4882_v25  ;;  %v1919_v7 = vadd.f32 %v4882_v25, %v4878_v15 }
 0x2f2   :  { %v4884_v48 = vpop.f32.mrf.mxu1 }
 0x2f3   :  { %v1998_v42 = vmul.f32 %v4884_v48, %v4884_v48  ;;  %v2059_v63 = vadd.f32 %v1997_v30, %v1995_v56  ;;  %v1956_v40 = vadd.f32 %v4884_v48, %v4880_v27 }
 0x2f4   :  { %v4886_v37 = vpop.f32.mrf.mxu1 }
 0x2f5   :  { %v1999_v59 = vmul.f32 %v4886_v37, %v4886_v37  ;;  %v1920_v8 = vadd.f32 %v1919_v7, %v4886_v37  ;;  %v2096_v1 = vadd.f32 %v1998_v42, %v1996_v22 }
 0x2f6   :  { %v4888_v0 = vpop.f32.mrf.mxu1 }
 0x2f7   :  { %v2000_v55 = vmul.f32 %v4888_v0, %v4888_v0  ;;  %v2060_v6 = vadd.f32 %v2059_v63, %v1999_v59  ;;  %v1957_v13 = vadd.f32 %v1956_v40, %v4888_v0 }
 0x2f8   :  { %v4890_v18 = vpop.f32.mrf.mxu1 }
 0x2f9   :  { %v2001_v21 = vmul.f32 %v4890_v18, %v4890_v18  ;;  %v1921_v19 = vadd.f32 %v1920_v8, %v4890_v18  ;;  %v2097_v47 = vadd.f32 %v2096_v1, %v2000_v55 }
 0x2fa   :  { %v4892_v61 = vpop.f32.mrf.mxu1 }
 0x2fb   :  { %v2002_v52 = vmul.f32 %v4892_v61, %v4892_v61  ;;  %v2061_v51 = vadd.f32 %v2060_v6, %v2001_v21  ;;  %v1958_v45 = vadd.f32 %v1957_v13, %v4892_v61 }
 0x2fc   :  { %v4894_v60 = vpop.f32.mrf.mxu1 }
 0x2fd   :  { %v2003_v10 = vmul.f32 %v4894_v60, %v4894_v60  ;;  %v1922_v58 = vadd.f32 %v1921_v19, %v4894_v60  ;;  %v2098_v16 = vadd.f32 %v2097_v47, %v2002_v52 }
 0x2fe   :  { %v4896_v2 = vpop.f32.mrf.mxu1 }
 0x2ff   :  { %v2004_v17 = vmul.f32 %v4896_v2, %v4896_v2  ;;  %v2062_v62 = vadd.f32 %v2061_v51, %v2003_v10  ;;  %v1959_v50 = vadd.f32 %v1958_v45, %v4896_v2 }
 0x300   :  { %v4898_v32 = vpop.f32.mrf.mxu1 }
 0x301   :  { %v2005_v49 = vmul.f32 %v4898_v32, %v4898_v32  ;;  %v1923_v30 = vadd.f32 %v1922_v58, %v4898_v32  ;;  %v2099_v56 = vadd.f32 %v2098_v16, %v2004_v17 }
 0x302   :  { %v4900_v54 = vpop.f32.mrf.mxu1 }
 0x303   :  { %6124 = vst [vmem:[#allocation62_spill] sm:$0xff] %v4900_v54  ;;  %v2006_v11 = vmul.f32 %v4900_v54, %v4900_v54  ;;  %v2063_v22 = vadd.f32 %v2062_v62, %v2005_v49  ;;  %v1960_v55 = vadd.f32 %v1959_v50, %v4900_v54 }
 0x304   :  { %v4902_v53 = vpop.f32.mrf.mxu1 }
 0x305   :  { %v2007_v42 = vmul.f32 %v4902_v53, %v4902_v53  ;;  %v1924_v63 = vadd.f32 %v1923_v30, %v4902_v53  ;;  %v2100_v8 = vadd.f32 %v2099_v56, %v2006_v11 }
 0x306   :  { %v4904_v24 = vpop.f32.mrf.mxu1 }
 0x307   :  { %6125 = vst [vmem:[#allocation65_spill] sm:$0xff] %v4904_v24  ;;  %v2008_v7 = vmul.f32 %v4904_v24, %v4904_v24  ;;  %v2064_v52 = vadd.f32 %v2063_v22, %v2007_v42  ;;  %v1961_v6 = vadd.f32 %v1960_v55, %v4904_v24 }
 0x308   :  { %v4906_v57 = vpop.f32.mrf.mxu1 }
 0x309   :  { %v2009_v40 = vmul.f32 %v4906_v57, %v4906_v57  ;;  %v1925_v13 = vadd.f32 %v1924_v63, %v4906_v57  ;;  %v2101_v10 = vadd.f32 %v2100_v8, %v2008_v7 }
 0x30a   :  { %v4908_v41 = vpop.f32.mrf.mxu1 }
 0x30b   :  { %6126 = vst [vmem:[#allocation66_spill] sm:$0xff] %v4908_v41  ;;  %v2010_v21 = vmul.f32 %v4908_v41, %v4908_v41  ;;  %v2065_v51 = vadd.f32 %v2064_v52, %v2009_v40  ;;  %v1962_v45 = vadd.f32 %v1961_v6, %v4908_v41 }
 0x30c   :  { %v4910_v44 = vpop.f32.mrf.mxu1 }
 0x30d   :  { %v2011_v19 = vmul.f32 %v4910_v44, %v4910_v44  ;;  %v1926_v58 = vadd.f32 %v1925_v13, %v4910_v44  ;;  %v2102_v16 = vadd.f32 %v2101_v10, %v2010_v21 }
 0x30e   :  { %v4912_v9 = vpop.f32.mrf.mxu1 }
 0x30f   :  { %6127 = vst [vmem:[#allocation67_spill] sm:$0xff] %v4912_v9  ;;  %v2012_v47 = vmul.f32 %v4912_v9, %v4912_v9  ;;  %v2066_v50 = vadd.f32 %v2065_v51, %v2011_v19  ;;  %v1963_v30 = vadd.f32 %v1962_v45, %v4912_v9 }
 0x310   :  { %v4914_v46 = vpop.f32.mrf.mxu1 }
 0x311   :  { %v2013_v49 = vmul.f32 %v4914_v46, %v4914_v46  ;;  %v1927_v42 = vadd.f32 %v1926_v58, %v4914_v46  ;;  %v2103_v7 = vadd.f32 %v2102_v16, %v2012_v47 }
 0x312   :  { %v4916_v20 = vpop.f32.mrf.mxu1 }
 0x313   :  { %6128 = vst [vmem:[#allocation68_spill] sm:$0xff] %v4916_v20  ;;  %v2014_v11 = vmul.f32 %v4916_v20, %v4916_v20  ;;  %v2067_v63 = vadd.f32 %v2066_v50, %v2013_v49  ;;  %v1964_v40 = vadd.f32 %v1963_v30, %v4916_v20 }
 0x314   :  { %v4918_v38 = vpop.f32.mrf.mxu1 }
 0x315   :  { %v2015_v56 = vmul.f32 %v4918_v38, %v4918_v38  ;;  %v1928_v8 = vadd.f32 %v1927_v42, %v4918_v38  ;;  %v2104_v52 = vadd.f32 %v2103_v7, %v2014_v11 }
 0x316   :  { %v4920_v31 = vpop.f32.mrf.mxu1 }
 0x317   :  { %6129 = vst [vmem:[#allocation69_spill] sm:$0xff] %v4920_v31  ;;  %v2016_v22 = vmul.f32 %v4920_v31, %v4920_v31  ;;  %v2068_v19 = vadd.f32 %v2067_v63, %v2015_v56  ;;  %v1965_v10 = vadd.f32 %v1964_v40, %v4920_v31 }
 0x318   :  { %v4922_v34 = vpop.f32.mrf.mxu1 }
 0x319   :  { %v2017_v21 = vmul.f32 %v4922_v34, %v4922_v34  ;;  %v1929_v47 = vadd.f32 %v1928_v8, %v4922_v34  ;;  %v2105_v45 = vadd.f32 %v2104_v52, %v2016_v22 }
 0x31a   :  { %v4924_v3 = vpop.f32.mrf.mxu1 }
 0x31b   :  { %6130 = vst [vmem:[#allocation70_spill] sm:$0xff] %v4924_v3  ;;  %v2018_v6 = vmul.f32 %v4924_v3, %v4924_v3  ;;  %v2069_v16 = vadd.f32 %v2068_v19, %v2017_v21  ;;  %v1966_v11 = vadd.f32 %v1965_v10, %v4924_v3 }
 0x31c   :  { %v4926_v33 = vpop.f32.mrf.mxu1 }
 0x31d   :  { %v2019_v51 = vmul.f32 %v4926_v33, %v4926_v33  ;;  %v1930_v50 = vadd.f32 %v1929_v47, %v4926_v33  ;;  %v2106_v42 = vadd.f32 %v2105_v45, %v2018_v6 }
 0x31e   :  { %v4928_v14 = vpop.f32.mrf.mxu1 }
 0x31f   :  { %6131 = vst [vmem:[#allocation71_spill] sm:$0xff] %v4928_v14  ;;  %v2020_v58 = vmul.f32 %v4928_v14, %v4928_v14  ;;  %v2070_v22 = vadd.f32 %v2069_v16, %v2019_v51  ;;  %v1967_v63 = vadd.f32 %v1966_v11, %v4928_v14 }
 0x320   :  { %v4930_v35 = vpop.f32.mrf.mxu1 }
 0x321   :  { %v2021_v30 = vmul.f32 %v4930_v35, %v4930_v35  ;;  %v1931_v40 = vadd.f32 %v1930_v50, %v4930_v35  ;;  %v2107_v21 = vadd.f32 %v2106_v42, %v2020_v58 }
 0x322   :  { %v4932_v23 = vpop.f32.mrf.mxu1 }
 0x323   :  { %6132 = vst [vmem:[#allocation72_spill] sm:$0xff] %v4932_v23  ;;  %v2022_v56 = vmul.f32 %v4932_v23, %v4932_v23  ;;  %v2071_v6 = vadd.f32 %v2070_v22, %v2021_v30  ;;  %v1968_v10 = vadd.f32 %v1967_v63, %v4932_v23 }
 0x324   :  { %v4934_v26 = vpop.f32.mrf.mxu1 }
 0x325   :  { %v2023_v8 = vmul.f32 %v4934_v26, %v4934_v26  ;;  %v1932_v47 = vadd.f32 %v1931_v40, %v4934_v26  ;;  %v2108_v45 = vadd.f32 %v2107_v21, %v2022_v56 }
 0x326   :  { %v4936_v29 = vpop.f32.mrf.mxu1 }
 0x327   :  { %6133 = vst [vmem:[#allocation73_spill] sm:$0xff] %v4936_v29  ;;  %v2024_v52 = vmul.f32 %v4936_v29, %v4936_v29  ;;  %v2072_v58 = vadd.f32 %v2071_v6, %v2023_v8  ;;  %v1969_v50 = vadd.f32 %v1968_v10, %v4936_v29 }
 0x328   :  { %v4938_v28 = vpop.f32.mrf.mxu1 }
 0x329   :  { %v2025_v51 = vmul.f32 %v4938_v28, %v4938_v28  ;;  %v1933_v42 = vadd.f32 %v1932_v47, %v4938_v28  ;;  %v2109_v22 = vadd.f32 %v2108_v45, %v2024_v52 }
 0x32a   :  { %v4940_v36 = vpop.f32.mrf.mxu1 }
 0x32b   :  { %6134 = vst [vmem:[#allocation74_spill] sm:$0xff] %v4940_v36  ;;  %v2026_v16 = vmul.f32 %v4940_v36, %v4940_v36  ;;  %v2073_v56 = vadd.f32 %v2072_v58, %v2025_v51  ;;  %v1970_v21 = vadd.f32 %v1969_v50, %v4940_v36 }
 0x32c   :  { %v4946_v4 = vpop.f32.mrf.mxu1 }
 0x32d   :  { %v2027_v30 = vmul.f32 %v4946_v4, %v4946_v4  ;;  %v1934_v23 = vadd.f32 %v1933_v42, %v4946_v4  ;;  %v2110_v6 = vadd.f32 %v2109_v22, %v2026_v16 }
 0x32e   :  { %v4958_v5 = vpop.f32.mrf.mxu1 }
 0x32f   :  { %6135 = vst [vmem:[#allocation42_spill] sm:$0xff] %v4958_v5  ;;  %v2028_v63 = vmul.f32 %v4958_v5, %v4958_v5  ;;  %v2074_v52 = vadd.f32 %v2073_v56, %v2027_v30  ;;  %v1971_v45 = vadd.f32 %v1970_v21, %v4958_v5 }
 0x330   :  { %v4967_v12 = vpop.f32.mrf.mxu1 }
 0x331   :  { %v2029_v8 = vmul.f32 %v4967_v12, %v4967_v12  ;;  %v1935_v29 = vadd.f32 %v1934_v23, %v4967_v12  ;;  %v2111_v58 = vadd.f32 %v2110_v6, %v2028_v63 }
 0x332   :  { %v4975_v43 = vpop.f32.mrf.mxu1 }
 0x333   :  { %6136 = vst [vmem:[#allocation43_spill] sm:$0xff] %v4975_v43  ;;  %v2030_v10 = vmul.f32 %v4975_v43, %v4975_v43  ;;  %v2075_v16 = vadd.f32 %v2074_v52, %v2029_v8  ;;  %v1972_v22 = vadd.f32 %v1971_v45, %v4975_v43 }
 0x334   :  { %v4983_v39 = vpop.f32.mrf.mxu1 }
 0x335   :  { %v2031_v51 = vmul.f32 %v4983_v39, %v4983_v39  ;;  %v1936_v36 = vadd.f32 %v1935_v29, %v4983_v39  ;;  %v2112_v56 = vadd.f32 %v2111_v58, %v2030_v10 }
 0x336   :  { %v4991_v59 = vpop.f32.mrf.mxu1 }
 0x337   :  { %6137 = vst [vmem:[#allocation44_spill] sm:$0xff] %v4991_v59  ;;  %v2032_v50 = vmul.f32 %v4991_v59, %v4991_v59  ;;  %v2076_v63 = vadd.f32 %v2075_v16, %v2031_v51  ;;  %v1973_v6 = vadd.f32 %v1972_v22, %v4991_v59 }
 0x338   :  { %v4999_v1 = vpop.f32.mrf.mxu1 }
 0x339   :  { %v2033_v30 = vmul.f32 %v4999_v1, %v4999_v1  ;;  %v1937_v5 = vadd.f32 %v1936_v36, %v4999_v1  ;;  %v2113_v52 = vadd.f32 %v2112_v56, %v2032_v50 }
 0x33a   :  { %v5007_v17 = vpop.f32.mrf.mxu1 }
 0x33b   :  { %6138 = vst [vmem:[#allocation60_spill] sm:$0xff] %v5007_v17  ;;  %v2034_v23 = vmul.f32 %v5007_v17, %v5007_v17  ;;  %v2077_v10 = vadd.f32 %v2076_v63, %v2033_v30  ;;  %v1974_v58 = vadd.f32 %v1973_v6, %v5007_v17 }
 0x33c   :  { %v5015_v62 = vpop.f32.mrf.mxu1 }
 0x33d   :  { %v2035_v8 = vmul.f32 %v5015_v62, %v5015_v62  ;;  %v1938_v43 = vadd.f32 %v1937_v5, %v5015_v62  ;;  %v2114_v16 = vadd.f32 %v2113_v52, %v2034_v23 }
 0x33e   :  { %v5023_v55 = vpop.f32.mrf.mxu1 }
 0x33f   :  { %6139 = vst [vmem:[#allocation45_spill] sm:$0xff] %v5023_v55  ;;  %v2036_v29 = vmul.f32 %v5023_v55, %v5023_v55  ;;  %v2078_v50 = vadd.f32 %v2077_v10, %v2035_v8  ;;  %v1975_v56 = vadd.f32 %v1974_v58, %v5023_v55 }
 0x340   :  { %v5031_v13 = vpop.f32.mrf.mxu1 }
 0x341   :  { %v2037_v51 = vmul.f32 %v5031_v13, %v5031_v13  ;;  %v1939_v59 = vadd.f32 %v1938_v43, %v5031_v13  ;;  %v2115_v63 = vadd.f32 %v2114_v16, %v2036_v29 }
 0x342   :  { %v5039_v49 = vpop.f32.mrf.mxu1 }
 0x343   :  { %6140 = vst [vmem:[#allocation63_spill] sm:$0xff] %v5039_v49  ;;  %v2038_v36 = vmul.f32 %v5039_v49, %v5039_v49  ;;  %v2079_v23 = vadd.f32 %v2078_v50, %v2037_v51  ;;  %v1976_v52 = vadd.f32 %v1975_v56, %v5039_v49 }
 0x344   :  { %v5047_v7 = vpop.f32.mrf.mxu1 }
 0x345   :  { %v2039_v30 = vmul.f32 %v5047_v7, %v5047_v7  ;;  %v1940_v17 = vadd.f32 %v1939_v59, %v5047_v7  ;;  %v2116_v10 = vadd.f32 %v2115_v63, %v2038_v36 }
 0x346   :  { %v5055_v19 = vpop.f32.mrf.mxu1 }
 0x347   :  { %6141 = vst [vmem:[#allocation46_spill] sm:$0xff] %v5055_v19  ;;  %v2040_v5 = vmul.f32 %v5055_v19, %v5055_v19  ;;  %v2080_v29 = vadd.f32 %v2079_v23, %v2039_v30  ;;  %v1977_v16 = vadd.f32 %v1976_v52, %v5055_v19 }
 0x348   :  { %v5063_v11 = vpop.f32.mrf.mxu1 }
 0x349   :  { %v2041_v8 = vmul.f32 %v5063_v11, %v5063_v11  ;;  %v1941_v55 = vadd.f32 %v1940_v17, %v5063_v11  ;;  %v2117_v50 = vadd.f32 %v2116_v10, %v2040_v5 }
 0x34a   :  { %v5071_v40 = vpop.f32.mrf.mxu1 }
 0x34b   :  { %6142 = vst [vmem:[#allocation47_spill] sm:$0xff] %v5071_v40  ;;  %v2042_v43 = vmul.f32 %v5071_v40, %v5071_v40  ;;  %v2081_v36 = vadd.f32 %v2080_v29, %v2041_v8  ;;  %v1978_v63 = vadd.f32 %v1977_v16, %v5071_v40 }
 0x34c   :  { %v5079_v47 = vpop.f32.mrf.mxu1 }
 0x34d   :  { %v2043_v51 = vmul.f32 %v5079_v47, %v5079_v47  ;;  %v1942_v49 = vadd.f32 %v1941_v55, %v5079_v47  ;;  %v2118_v23 = vadd.f32 %v2117_v50, %v2042_v43 }
 0x34e   :  { %v5087_v42 = vpop.f32.mrf.mxu1 }
 0x34f   :  { %6143 = vst [vmem:[#allocation48_spill] sm:$0xff] %v5087_v42  ;;  %v2044_v59 = vmul.f32 %v5087_v42, %v5087_v42  ;;  %v2082_v5 = vadd.f32 %v2081_v36, %v2043_v51  ;;  %v1979_v10 = vadd.f32 %v1978_v63, %v5087_v42 }
 0x350   :  { %v5095_v21 = vpop.f32.mrf.mxu1 }
 0x351   :  { %v2045_v30 = vmul.f32 %v5095_v21, %v5095_v21  ;;  %v1943_v19 = vadd.f32 %v1942_v49, %v5095_v21  ;;  %v2119_v29 = vadd.f32 %v2118_v23, %v2044_v59 }
 0x352   :  { %v5103_v45 = vpop.f32.mrf.mxu1 }
 0x353   :  { %6144 = vst [vmem:[#allocation49_spill] sm:$0xff] %v5103_v45  ;;  %v2046_v17 = vmul.f32 %v5103_v45, %v5103_v45  ;;  %v2083_v43 = vadd.f32 %v2082_v5, %v2045_v30  ;;  %v1980_v50 = vadd.f32 %v1979_v10, %v5103_v45 }
 0x354   :  { %v5111_v22 = vpop.f32.mrf.mxu1 }
 0x355   :  { %v2047_v8 = vmul.f32 %v5111_v22, %v5111_v22  ;;  %v1944_v40 = vadd.f32 %v1943_v19, %v5111_v22  ;;  %v2120_v36 = vadd.f32 %v2119_v29, %v2046_v17 }
 0x356   :  { %v5119_v6 = vpop.f32.mrf.mxu1 }
 0x357   :  { %6145 = vst [vmem:[#allocation50_spill] sm:$0xff] %v5119_v6  ;;  %v2048_v55 = vmul.f32 %v5119_v6, %v5119_v6  ;;  %v2084_v59 = vadd.f32 %v2083_v43, %v2047_v8  ;;  %v1981_v23 = vadd.f32 %v1980_v50, %v5119_v6 }
 0x358   :  { %v5127_v58 = vpop.f32.mrf.mxu1 }
 0x359   :  { %v2049_v51 = vmul.f32 %v5127_v58, %v5127_v58  ;;  %v1945_v42 = vadd.f32 %v1944_v40, %v5127_v58  ;;  %v2121_v5 = vadd.f32 %v2120_v36, %v2048_v55 }
 0x35a   :  { %v5135_v56 = vpop.f32.mrf.mxu1 }
 0x35b   :  { %6146 = vst [vmem:[#allocation51_spill] sm:$0xff] %v5135_v56  ;;  %v2050_v49 = vmul.f32 %v5135_v56, %v5135_v56  ;;  %v2085_v17 = vadd.f32 %v2084_v59, %v2049_v51  ;;  %v1982_v29 = vadd.f32 %v1981_v23, %v5135_v56 }
 0x35c   :  { %v5143_v52 = vpop.f32.mrf.mxu1 }
 0x35d   :  { %v2051_v30 = vmul.f32 %v5143_v52, %v5143_v52  ;;  %v1946_v45 = vadd.f32 %v1945_v42, %v5143_v52  ;;  %v2122_v43 = vadd.f32 %v2121_v5, %v2050_v49 }
 0x35e   :  { %v5151_v16 = vpop.f32.mrf.mxu1 }
 0x35f   :  { %6147 = vst [vmem:[#allocation52_spill] sm:$0xff] %v5151_v16  ;;  %v2052_v19 = vmul.f32 %v5151_v16, %v5151_v16  ;;  %v2086_v55 = vadd.f32 %v2085_v17, %v2051_v30  ;;  %v1983_v36 = vadd.f32 %v1982_v29, %v5151_v16 }
 0x360   :  { %v5159_v63 = vpop.f32.mrf.mxu1 }
 0x361   :  { %v2053_v8 = vmul.f32 %v5159_v63, %v5159_v63  ;;  %v1947_v6 = vadd.f32 %v1946_v45, %v5159_v63  ;;  %v2123_v59 = vadd.f32 %v2122_v43, %v2052_v19 }
 0x362   :  { %v5167_v10 = vpop.f32.mrf.mxu1 }
 0x363   :  { %6148 = vst [vmem:[#allocation24_spill] sm:$0xff] %v5167_v10  ;;  %v2054_v40 = vmul.f32 %v5167_v10, %v5167_v10  ;;  %v2087_v42 = vadd.f32 %v2086_v55, %v2053_v8  ;;  %v1984_v56 = vadd.f32 %v1983_v36, %v5167_v10 }
 0x364   :  { %v5175_v50 = vpop.f32.mrf.mxu1 }
 0x365   :  { %v2055_v51 = vmul.f32 %v5175_v50, %v5175_v50  ;;  %v1948_v49 = vadd.f32 %v1947_v6, %v5175_v50  ;;  %v2124_v14 = vadd.f32 %v2123_v59, %v2054_v40 }
 0x366   :  { %v5181_v23 = vpop.f32.mrf.mxu1 }
 0x367   :  { %6149 = vst [vmem:[#allocation23_spill] sm:$0xff] %v5181_v23  ;;  %v2056_v5 = vmul.f32 %v5181_v23, %v5181_v23  ;;  %v2088_v17 = vadd.f32 %v2087_v42, %v2055_v51  ;;  %v1985_v45 = vadd.f32 %v1984_v56, %v5181_v23 }
 0x368   :  { %v5187_v30 = vpop.f32.mrf.mxu1 }
 0x369   :  { %v1949_v29 = vadd.f32 %v1948_v49, %v5187_v30  ;;  %v2057_v19 = vmul.f32 %v5187_v30, %v5187_v30  ;;  %v2125_v43 = vadd.f32 %v2124_v14, %v2056_v5 }
 0x36a   :  { %v5193_v8 = vpop.f32.mrf.mxu1 }
 0x36b   :  { %6150 = vst [vmem:[#allocation22_spill] sm:$0xff] %v5193_v8  ;;  %v1950_v55 = vrot.slane %v1949_v29, 4  ;;  %v2089_v36 = vadd.f32 %v2088_v17, %v2057_v19  ;;  %v1986_v6 = vadd.f32 %v1985_v45, %v5193_v8  ;;  %v2058_v40 = vmul.f32 %v5193_v8, %v5193_v8 }
 0x36d   :  { %v1951_v59 = vadd.f32 %v1950_v55, %v1949_v29  ;;  %v2090_v10 = vrot.slane %v2089_v36, 4  ;;  %v1987_v51 = vrot.slane %v1986_v6, 4  ;;  %v2126_v42 = vadd.f32 %v2125_v43, %v2058_v40 }
 0x36f   :  { %v1952_v56 = vrot.slane %v1951_v59, 2  ;;  %v2091_v23 = vadd.f32 %v2090_v10, %v2089_v36  ;;  %v1988_v49 = vadd.f32 %v1987_v51, %v1986_v6  ;;  %v2127_v16 = vrot.slane %v2126_v42, 4 }
 0x371   :  { %v1953_v3 = vadd.f32 %v1952_v56, %v1951_v59  ;;  %v2092_v31 = vrot.slane %v2091_v23, 2  ;;  %v1989_v14 = vrot.slane %v1988_v49, 2  ;;  %v2128_v5 = vadd.f32 %v2127_v16, %v2126_v42 }
 0x373   :  { %v1954_v20 = vrot.slane %v1953_v3, 1  ;;  %v2093_v9 = vadd.f32 %v2092_v31, %v2091_v23  ;;  %v1990_v17 = vadd.f32 %v1989_v14, %v1988_v49  ;;  %v2129_v19 = vrot.slane %v2128_v5, 2  ;;  %v6152_v49 = vld [vmem:[#allocation54_spill] sm:$0xff] }
 0x375   :  { %v1955_v45 = vadd.f32 %v1954_v20, %v1953_v3  ;;  %v2094_v41 = vrot.slane %v2093_v9, 1  ;;  %v1991_v24 = vrot.slane %v1990_v17, 1  ;;  %v2130_v8 = vadd.f32 %v2129_v19, %v2128_v5  ;;  %v6151_v20 = vld [vmem:[#allocation53_spill] sm:$0xff] }
 0x376   :  { %v2157_v3 = vsub.s32 2, %v6151_v20 }
 0x377   :  { %v1993_v29 = vmul.f32 0.00390625, %v1955_v45  ;;  %v2095_v55 = vadd.f32 %v2094_v41, %v2093_v9  ;;  %v1992_v54 = vadd.f32 %v1991_v24, %v1990_v17  ;;  %v2131_v43 = vrot.slane %v2130_v8, 1 }
 0x379   :  { %v2133_v40 = vmul.f32 0.00390625, %v2095_v55  ;;  %v2135_v10 = vmul.f32 %v1993_v29, %v1993_v29  ;;  %v1994_v36 = vmul.f32 0.00390625, %v1992_v54  ;;  %v2132_v6 = vadd.f32 %v2131_v43, %v2130_v8  ;;  %v6153_v8 = vld [vmem:[#allocation55_spill] sm:$0xff] }
 0x37a   :  { %v5856_v54 = vsub.s32 3, %v6151_v20 }
 0x37b   :  { %v2137_v59 = vsub.f32 %v2133_v40, %v2135_v10  ;;  %v2134_v51 = vmul.f32 0.00390625, %v2132_v6  ;;  %v2136_v56 = vmul.f32 %v1994_v36, %v1994_v36 }
 0x37d   :  { %v2139_v16 = vadd.f32 1e-05, %v2137_v59  ;;  %v2138_v42 = vsub.f32 %v2134_v51, %v2136_v56 }
 0x37f   :  { %3070 = vrsqrt.f32 %v2139_v16  ;;  %v2140_v31 = vadd.f32 1e-05, %v2138_v42 }
 0x381   :  { %3072 = vrsqrt.f32 %v2140_v31 }
 0x38c   :  { %v3071_v23 = vpop.eup %3070 }
 0x38d   :  { %v2143_v14 = vmul.f32 %v3071_v23, %v6152_v49 }
 0x38e   :  { %v3073_v41 = vpop.eup %3072 }
 0x38f   :  { %v2145_v24 = vmul.f32 %v2143_v14, %v1993_v29  ;;  %v2158_v9 = vrot.slane %v2143_v14, %v2157_v3  ;;  %v2144_v17 = vmul.f32 %v3073_v41, %v6153_v8 }
 0x391   :  { %v2149_v5 = vrot.slane %v2145_v24, 7  ;;  %v2163_v19 = vmul.f32 %v2158_v9, %v4878_v15  ;;  %v2165_v45 = vmul.f32 %v2158_v9, %v4882_v25  ;;  %v2167_v55 = vmul.f32 %v2158_v9, %v4886_v37 }
 0x392   :  { %v2169_v43 = vmul.f32 %v2158_v9, %v4890_v18  ;;  %v2171_v10 = vmul.f32 %v2158_v9, %v4894_v60  ;;  %v2173_v29 = vmul.f32 %v2158_v9, %v4898_v32  ;;  %v2175_v6 = vmul.f32 %v2158_v9, %v4902_v53 }
 0x393   :  { %v2153_v40 = vsub.f32 %v6152_v49, %v2149_v5  ;;  %v2177_v59 = vmul.f32 %v2158_v9, %v4906_v57  ;;  %v2179_v51 = vmul.f32 %v2158_v9, %v4910_v44  ;;  %v2181_v15 = vmul.f32 %v2158_v9, %v4914_v46  ;;  %v6183_v49 = vld [vmem:[#allocation63_spill] sm:$0xff] }
 0x394   :  { %v2183_v25 = vmul.f32 %v2158_v9, %v4918_v38  ;;  %v2185_v37 = vmul.f32 %v2158_v9, %v4922_v34  ;;  %v2187_v18 = vmul.f32 %v2158_v9, %v4926_v33  ;;  %v2189_v56 = vmul.f32 %v2158_v9, %v4930_v35 }
 0x395   :  { %v2191_v60 = vmul.f32 %v2158_v9, %v4934_v26  ;;  %v2193_v32 = vmul.f32 %v2158_v9, %v4938_v28  ;;  %v2195_v53 = vmul.f32 %v2158_v9, %v4946_v4  ;;  %v2197_v57 = vmul.f32 %v2158_v9, %v4967_v12 }
 0x396   :  { %v2199_v44 = vmul.f32 %v2158_v9, %v4983_v39  ;;  %v2201_v46 = vmul.f32 %v2158_v9, %v4999_v1  ;;  %v2203_v38 = vmul.f32 %v2158_v9, %v5015_v62  ;;  %v2205_v34 = vmul.f32 %v2158_v9, %v5031_v13 }
 0x397   :  { %v2207_v33 = vmul.f32 %v2158_v9, %v5047_v7  ;;  %v2209_v35 = vmul.f32 %v2158_v9, %v5063_v11  ;;  %v2211_v26 = vmul.f32 %v2158_v9, %v5079_v47  ;;  %v2213_v28 = vmul.f32 %v2158_v9, %v5095_v21 }
 0x398   :  { %v2215_v4 = vmul.f32 %v2158_v9, %v5111_v22  ;;  %v2217_v12 = vmul.f32 %v2158_v9, %v5127_v58  ;;  %v2219_v39 = vmul.f32 %v2158_v9, %v5143_v52  ;;  %v2221_v1 = vmul.f32 %v2158_v9, %v5159_v63 }
 0x399   :  { %v2230_v62 = vrot.slane %v2153_v40, %v5856_v54  ;;  %v2223_v13 = vmul.f32 %v2158_v9, %v5175_v50  ;;  %v2225_v7 = vmul.f32 %v2158_v9, %v5187_v30  ;;  %v5237_v11 = vmul.f32 %v2144_v17, %v1994_v36  ;;  %v6182_v54 = vld [vmem:[#allocation45_spill] sm:$0xff] }
 0x39a   :  { %v5239_v47 = vrot.slane %v2144_v17, %v2157_v3 }
 0x39b   :  { %v5241_v21 = vadd.f32 %v2230_v62, %v2163_v19  ;;  %v5243_v22 = vadd.f32 %v2230_v62, %v2165_v45  ;;  %v5245_v58 = vadd.f32 %v2230_v62, %v2167_v55  ;;  %v5247_v52 = vadd.f32 %v2230_v62, %v2169_v43 }
 0x39c   :  { %v5249_v63 = vadd.f32 %v2230_v62, %v2171_v10  ;;  %v5251_v16 = vadd.f32 %v2230_v62, %v2173_v29  ;;  %v5253_v42 = vadd.f32 %v2230_v62, %v2175_v6  ;;  %v5255_v50 = vadd.f32 %v2230_v62, %v2177_v59 }
 0x39d   :  { %v5257_v30 = vadd.f32 %v2230_v62, %v2179_v51  ;;  %v5259_v36 = vadd.f32 %v2230_v62, %v2181_v15  ;;  %v5261_v31 = vadd.f32 %v2230_v62, %v2183_v25  ;;  %v5263_v3 = vadd.f32 %v2230_v62, %v2185_v37 }
 0x39e   :  { %v5265_v23 = vadd.f32 %v2230_v62, %v2187_v18  ;;  %v5267_v14 = vadd.f32 %v2230_v62, %v2189_v56  ;;  %v5269_v41 = vadd.f32 %v2230_v62, %v2191_v60  ;;  %v5271_v24 = vadd.f32 %v2230_v62, %v2193_v32  ;;  %v6176_v32 = vld [vmem:[#allocation73_spill] sm:$0xff]  ;;  %v6177_v60 = vld [vmem:[#allocation74_spill] sm:$0xff]  ;;  %v6180_v56 = vld [vmem:[#allocation44_spill] sm:$0xff] }
 0x39f   :  { %v5273_v9 = vadd.f32 %v2230_v62, %v2195_v53  ;;  %v5275_v5 = vadd.f32 %v2230_v62, %v2197_v57  ;;  %v5277_v17 = vadd.f32 %v2230_v62, %v2199_v44  ;;  %v5279_v19 = vadd.f32 %v2230_v62, %v2201_v46  ;;  %v6169_v46 = vld [vmem:[#allocation66_spill] sm:$0xff]  ;;  %v6170_v44 = vld [vmem:[#allocation67_spill] sm:$0xff]  ;;  %v6171_v57 = vld [vmem:[#allocation68_spill] sm:$0xff] }
 0x3a0   :  { %6154 = vst [vmem:[#allocation21_spill] sm:$0xff] %v5271_v24  ;;  %v5281_v45 = vadd.f32 %v2230_v62, %v2203_v38  ;;  %v5283_v55 = vadd.f32 %v2230_v62, %v2205_v34  ;;  %v5285_v43 = vadd.f32 %v2230_v62, %v2207_v33  ;;  %v5287_v40 = vadd.f32 %v2230_v62, %v2209_v35  ;;  %v6167_v33 = vld [vmem:[#allocation62_spill] sm:$0xff]  ;;  %v6168_v38 = vld [vmem:[#allocation65_spill] sm:$0xff]  ;;  %v6181_v18 = vld [vmem:[#allocation60_spill] sm:$0xff] }
 0x3a1   :  { %6155 = vst [vmem:[#allocation20_spill] sm:$0xff] %v5273_v9  ;;  %6156 = vst [vmem:[#allocation19_spill] sm:$0xff] %v5275_v5  ;;  %v5289_v10 = vadd.f32 %v2230_v62, %v2211_v26  ;;  %v5291_v29 = vadd.f32 %v2230_v62, %v2213_v28  ;;  %v5293_v6 = vadd.f32 %v2230_v62, %v2215_v4  ;;  %v2150_v26 = vrot.slane %v5237_v11, 7  ;;  %v6172_v53 = vld [vmem:[#allocation69_spill] sm:$0xff]  ;;  %v6173_v35 = vld [vmem:[#allocation70_spill] sm:$0xff] }
 0x3a2   :  { %6157 = vst [vmem:[#allocation18_spill] sm:$0xff] %v5277_v17  ;;  %6158 = vst [vmem:[#allocation17_spill] sm:$0xff] %v5279_v19  ;;  %v5295_v59 = vadd.f32 %v2230_v62, %v2217_v12  ;;  %v5297_v51 = vadd.f32 %v2230_v62, %v2219_v39  ;;  %v5299_v15 = vadd.f32 %v2230_v62, %v2221_v1  ;;  %v6192_v19 = vld [vmem:[#allocation24_spill] sm:$0xff]  ;;  %v6193_v17 = vld [vmem:[#allocation23_spill] sm:$0xff] }
 0x3a3   :  { %6159 = vst [vmem:[#allocation16_spill] sm:$0xff] %v5281_v45  ;;  %6160 = vst [vmem:[#allocation15_spill] sm:$0xff] %v5283_v55  ;;  %v5301_v25 = vadd.f32 %v2230_v62, %v2223_v13  ;;  %v5303_v37 = vadd.f32 %v2230_v62, %v2225_v7  ;;  %v2164_v28 = vmul.f32 %v5239_v47, %v4880_v27  ;;  %v6174_v7 = vld [vmem:[#allocation71_spill] sm:$0xff]  ;;  %v6178_v13 = vld [vmem:[#allocation42_spill] sm:$0xff] }
 0x3a4   :  { %6161 = vst [vmem:[#allocation14_spill] sm:$0xff] %v5285_v43  ;;  %6162 = vst [vmem:[#allocation13_spill] sm:$0xff] %v5287_v40  ;;  %v2166_v12 = vmul.f32 %v5239_v47, %v4884_v48  ;;  %v2168_v39 = vmul.f32 %v5239_v47, %v4888_v0  ;;  %v2170_v1 = vmul.f32 %v5239_v47, %v4892_v61  ;;  %v6179_v62 = vld [vmem:[#allocation43_spill] sm:$0xff]  ;;  %v6188_v40 = vld [vmem:[#allocation50_spill] sm:$0xff] }
 0x3a5   :  { %6163 = vst [vmem:[#allocation12_spill] sm:$0xff] %v5289_v10  ;;  %6164 = vst [vmem:[#allocation11_spill] sm:$0xff] %v5291_v29  ;;  %v2172_v4 = vmul.f32 %v5239_v47, %v4896_v2  ;;  %v2174_v34 = vmul.f32 %v5239_v47, %v6167_v33  ;;  %v2154_v11 = vsub.f32 %v6153_v8, %v2150_v26  ;;  %v6175_v26 = vld [vmem:[#allocation72_spill] sm:$0xff]  ;;  %v6187_v10 = vld [vmem:[#allocation49_spill] sm:$0xff] }
 0x3a6   :  { %6165 = vst [vmem:[#allocation10_spill] sm:$0xff] %v5293_v6  ;;  %6166 = vst [vmem:[#allocation9_spill] sm:$0xff] %v5295_v59  ;;  %v2176_v27 = vmul.f32 %v5239_v47, %v6168_v38  ;;  %v2178_v48 = vmul.f32 %v5239_v47, %v6169_v46  ;;  %v2180_v0 = vmul.f32 %v5239_v47, %v6170_v44  ;;  %v6184_v59 = vld [vmem:[#allocation46_spill] sm:$0xff]  ;;  %v6185_v6 = vld [vmem:[#allocation47_spill] sm:$0xff] }
 0x3a7   :  { %v2182_v61 = vmul.f32 %v5239_v47, %v6171_v57  ;;  %v2184_v2 = vmul.f32 %v5239_v47, %v6172_v53  ;;  %v2186_v33 = vmul.f32 %v5239_v47, %v6173_v35  ;;  %v2188_v8 = vmul.f32 %v5239_v47, %v6174_v7  ;;  %v6186_v29 = vld [vmem:[#allocation48_spill] sm:$0xff]  ;;  %v6189_v43 = vld [vmem:[#allocation51_spill] sm:$0xff]  ;;  %v6194_v5 = vld [vmem:[#allocation22_spill] sm:$0xff] }
 0x3a8   :  { %v2190_v38 = vmul.f32 %v5239_v47, %v6175_v26  ;;  %v2192_v46 = vmul.f32 %v5239_v47, %v6176_v32  ;;  %v2194_v44 = vmul.f32 %v5239_v47, %v6177_v60  ;;  %v2196_v57 = vmul.f32 %v5239_v47, %v6178_v13  ;;  %v6191_v45 = vld [vmem:[#allocation52_spill] sm:$0xff] }
 0x3a9   :  { %v2198_v53 = vmul.f32 %v5239_v47, %v6179_v62  ;;  %v2200_v35 = vmul.f32 %v5239_v47, %v6180_v56  ;;  %v2202_v7 = vmul.f32 %v5239_v47, %v6181_v18  ;;  %v2204_v26 = vmul.f32 %v5239_v47, %v6182_v54 }
 0x3aa   :  { %v2206_v32 = vmul.f32 %v5239_v47, %v6183_v49  ;;  %v2208_v60 = vmul.f32 %v5239_v47, %v6184_v59  ;;  %v2210_v13 = vmul.f32 %v5239_v47, %v6185_v6  ;;  %v2212_v62 = vmul.f32 %v5239_v47, %v6186_v29 }
 0x3ab   :  { %v2214_v56 = vmul.f32 %v5239_v47, %v6187_v10  ;;  %v2216_v18 = vmul.f32 %v5239_v47, %v6188_v40  ;;  %v2218_v54 = vmul.f32 %v5239_v47, %v6189_v43  ;;  %v6190_v49 = vsub.s32 3, %v6151_v20 }
 0x3ac   :  { %v2220_v59 = vmul.f32 %v5239_v47, %v6191_v45  ;;  %v2222_v6 = vmul.f32 %v5239_v47, %v6192_v19  ;;  %v2224_v29 = vmul.f32 %v5239_v47, %v6193_v17  ;;  %v2226_v10 = vmul.f32 %v5239_v47, %v6194_v5 }
 0x3ad   :  { %v2234_v55 = vrot.slane %v2154_v11, %v6190_v49 }
 0x3af   :  { %v5405_v9 = vadd.f32 %v2234_v55, %v2164_v28  ;;  %v5407_v40 = vadd.f32 %v2234_v55, %v2166_v12  ;;  %v5409_v43 = vadd.f32 %v2234_v55, %v2168_v39  ;;  %v5411_v20 = vadd.f32 %v2234_v55, %v2170_v1 }
 0x3b0   :  { %v5413_v11 = vadd.f32 %v2234_v55, %v2172_v4  ;;  %v5415_v45 = vadd.f32 %v2234_v55, %v2174_v34  ;;  %v5417_v49 = vadd.f32 %v2234_v55, %v2176_v27  ;;  %v5419_v19 = vadd.f32 %v2234_v55, %v2178_v48 }
 0x3b1   :  { %v5421_v17 = vadd.f32 %v2234_v55, %v2180_v0  ;;  %v5423_v24 = vadd.f32 %v2234_v55, %v2182_v61  ;;  %v5425_v47 = vadd.f32 %v2234_v55, %v2184_v2  ;;  %v5427_v5 = vadd.f32 %v2234_v55, %v2186_v33 }
 0x3b2   :  { %v5429_v28 = vadd.f32 %v2234_v55, %v2188_v8  ;;  %v5431_v12 = vadd.f32 %v2234_v55, %v2190_v38  ;;  %v5433_v4 = vadd.f32 %v2234_v55, %v2192_v46  ;;  %v5435_v34 = vadd.f32 %v2234_v55, %v2194_v44 }
 0x3b3   :  { %v5437_v39 = vadd.f32 %v2234_v55, %v2196_v57  ;;  %v5439_v1 = vadd.f32 %v2234_v55, %v2198_v53  ;;  %v5441_v27 = vadd.f32 %v2234_v55, %v2200_v35  ;;  %v5443_v48 = vadd.f32 %v2234_v55, %v2202_v7 }
 0x3b4   :  { %v5445_v0 = vadd.f32 %v2234_v55, %v2204_v26  ;;  %v5447_v61 = vadd.f32 %v2234_v55, %v2206_v32  ;;  %v5449_v2 = vadd.f32 %v2234_v55, %v2208_v60  ;;  %v5451_v33 = vadd.f32 %v2234_v55, %v2210_v13 }
 0x3b5   :  { %v5453_v8 = vadd.f32 %v2234_v55, %v2212_v62  ;;  %v5455_v38 = vadd.f32 %v2234_v55, %v2214_v56  ;;  %v5457_v46 = vadd.f32 %v2234_v55, %v2216_v18  ;;  %v5459_v44 = vadd.f32 %v2234_v55, %v2218_v54 }
 0x3b6   :  { %v2292_v57 = vadd.f32 %v2234_v55, %v2220_v59  ;;  %v2294_v53 = vadd.f32 %v2234_v55, %v2222_v6  ;;  %v5461_v35 = vadd.f32 %v2234_v55, %v2224_v29  ;;  %v5463_v7 = vadd.f32 %v2234_v55, %v2226_v10 }
 0x3b7   :  { %v2300_v26 = vmax.f32 %v5405_v9, 0.0  ;;  %v2302_v32 = vmax.f32 %v5407_v40, 0.0  ;;  %v2304_v60 = vmax.f32 %v5409_v43, 0.0  ;;  %v2348_v40 = vmax.f32 %v5453_v8, 0.0 }
 0x3b8   :  { %v2354_v54 = vmax.f32 %v5459_v44, 0.0  ;;  %v2356_v62 = vmax.f32 %v2292_v57, 0.0  ;;  %v2358_v59 = vmax.f32 %v2294_v53, 0.0  ;;  %v2360_v55 = vmax.f32 %v5461_v35, 0.0 }
 0x3b9   :  { %v2362_v9 = vmax.f32 %v5463_v7, 0.0 }
 0x3ba   :  { %3092 = dma.done.wait [#allocation4 + $0x1], 2048 }
 0x3bb   :  { %3093 = vsyncadd [#allocation4 + $0x1], 4294965248  ;;  %v2367_v6 = vpack.c.bf16 %v2302_v32, %v2300_v26  ;;  %v2395_v29 = vpack.c.bf16 %v2358_v59, %v2356_v62  ;;  %v3074_v10 = vld [vmem:[#allocation3 + $0x78] sm:$0xff]   ;;  %v3076_v56 = vld [vmem:[#allocation3 + $0x70] sm:$0xff]   ;;  %v6204_v43 = vmax.f32 %v5413_v11, 0.0  ;;  %v6211_v11 = vmax.f32 %v5255_v50, 0.0 }
 0x3bc   :  { %v3075_v13 = vld [vmem:[#allocation3 + $0x38] sm:$0xff]   ;;  %2869 = vmatprep.subr.bf16.mxu0 %v3074_v10  ;;  %2981 = vmatprep.subr.bf16.mxu1 %v3074_v10  ;;  %v3077_v18 = vld [vmem:[#allocation3 + $0x30] sm:$0xff]   ;;  %v3078_v57 = vld [vmem:[#allocation3 + $0x68] sm:$0xff]   ;;  %v6196_v10 = vmax.f32 %v5243_v22, 0.0  ;;  %v6201_v22 = vmax.f32 %v5247_v52, 0.0  ;;  %v6208_v52 = vmax.f32 %v5417_v49, 0.0 }
 0x3bd   :  { %2562 = vmatprep.mubr.bf16.mxu0 %v2367_v6  ;;  %2674 = vmatprep.mubr.bf16.mxu1 %v2395_v29  ;;  %v3079_v53 = vld [vmem:[#allocation3 + $0x28] sm:$0xff]   ;;  %v3080_v35 = vld [vmem:[#allocation3 + $0x60] sm:$0xff]   ;;  %v3082_v26 = vld [vmem:[#allocation3 + $0x58] sm:$0xff]   ;;  %v6195_v29 = vmax.f32 %v5241_v21, 0.0  ;;  %v6200_v21 = vmax.f32 %v5245_v58, 0.0  ;;  %v6207_v58 = vmax.f32 %v5251_v16, 0.0 }
 0x3be   :  { %2870 = vmatpush3.bf16.msra.mxu0 %v3075_v13  ;;  %2989 = vmatpush3.bf16.msra.mxu1 %v3075_v13  ;;  %v3081_v7 = vld [vmem:[#allocation3 + $0x20] sm:$0xff]   ;;  %v3083_v32 = vld [vmem:[#allocation3 + $0x18] sm:$0xff]   ;;  %v3084_v13 = vld [vmem:[#allocation3 + $0x50] sm:$0xff]   ;;  %v6214_v16 = vmax.f32 %v5257_v30, 0.0  ;;  %v6215_v49 = vmax.f32 %v5259_v36, 0.0  ;;  %v6218_v50 = vmax.f32 %v5261_v31, 0.0 }
 0x3bf   :  { %2871 = vmatprep.subr.bf16.mxu0 %v3076_v56  ;;  %2982 = vmatprep.subr.bf16.mxu1 %v3076_v56  ;;  %v3085_v62 = vld [vmem:[#allocation3 + $0x10] sm:$0xff]   ;;  %v3086_v56 = vld [vmem:[#allocation3 + $0x48] sm:$0xff]   ;;  %v3088_v59 = vld [vmem:[#allocation3 + $0x40] sm:$0xff]   ;;  %v6222_v36 = vmax.f32 %v5265_v23, 0.0 }
 0x3c0   :  { %v3089_v6 = vld [vmem:[#allocation3] sm:$0xff]  }
 0x3c1   :  { %v6261_v8 = vld [vmem:[#allocation9_spill] sm:$0xff] }
 0x3c2   :  { %2872 = vmatpush3.bf16.msra.mxu0 %v3077_v18  ;;  %2990 = vmatpush3.bf16.msra.mxu1 %v3077_v18  ;;  %v3087_v18 = vld [vmem:[#allocation3 + $0x8] sm:$0xff]  }
 0x3c3   :  { %2873 = vmatprep.subr.bf16.mxu0 %v3078_v57  ;;  %2983 = vmatprep.subr.bf16.mxu1 %v3078_v57  ;;  %v2366_v57 = vpack.c.bf16 %v6196_v10, %v6195_v29  ;;  %v6216_v29 = vmax.f32 %v5425_v47, 0.0  ;;  %v6217_v10 = vmax.f32 %v5427_v5, 0.0  ;;  %v6223_v47 = vmax.f32 %v5267_v14, 0.0  ;;  %v6231_v14 = vld [vmem:[#allocation20_spill] sm:$0xff] }
 0x3c5   :  { %v2378_v5 = vpack.c.bf16 %v6223_v47, %v6222_v36 }
 0x3c6   :  { %2874 = vmatpush3.bf16.msra.mxu0 %v3079_v53  ;;  %2991 = vmatpush3.bf16.msra.mxu1 %v3079_v53  ;;  %v6197_v53 = vmax.f32 %v5297_v51, 0.0  ;;  %v2368_v51 = vpack.c.bf16 %v6201_v22, %v6200_v21  ;;  %v6232_v21 = vmax.f32 %v6231_v14, 0.0 }
 0x3c7   :  { %2875 = vmatprep.subr.bf16.mxu0 %v3080_v35  ;;  %2984 = vmatprep.subr.bf16.mxu1 %v3080_v35  ;;  %v6198_v35 = vmax.f32 %v5299_v15, 0.0  ;;  %v6202_v15 = vmax.f32 %v5301_v25, 0.0  ;;  %v6209_v25 = vmax.f32 %v5419_v19, 0.0  ;;  %v2374_v19 = vpack.c.bf16 %v6215_v49, %v6214_v16  ;;  %v6254_v16 = vld [vmem:[#allocation12_spill] sm:$0xff] }
 0x3c8   :  { %v6255_v49 = vmax.f32 %v6254_v16, 0.0 }
 0x3ca   :  { %2876 = vmatpush3.bf16.msra.mxu0 %v3081_v7  ;;  %2992 = vmatpush3.bf16.msra.mxu1 %v3081_v7  ;;  %v2394_v7 = vpack.c.bf16 %v6198_v35, %v6197_v53  ;;  %v6221_v53 = vmax.f32 %v5431_v12, 0.0  ;;  %v6224_v35 = vmax.f32 %v5433_v4, 0.0  ;;  %v6233_v4 = vld [vmem:[#allocation19_spill] sm:$0xff] }
 0x3cb   :  { %2877 = vmatprep.subr.bf16.mxu0 %v3082_v26  ;;  %2985 = vmatprep.subr.bf16.mxu1 %v3082_v26  ;;  %v6199_v26 = vmax.f32 %v5411_v20, 0.0  ;;  %v6205_v20 = vmax.f32 %v5415_v45, 0.0  ;;  %v6234_v22 = vmax.f32 %v6233_v4, 0.0 }
 0x3ce   :  { %2878 = vmatpush3.bf16.msra.mxu0 %v3083_v32  ;;  %2993 = vmatpush3.bf16.msra.mxu1 %v3083_v32  ;;  %v2369_v32 = vpack.c.bf16 %v6199_v26, %v2304_v60  ;;  %v2371_v60 = vpack.c.bf16 %v6205_v20, %v6204_v43  ;;  %v6241_v20 = vmax.f32 %v5445_v0, 0.0  ;;  %v6251_v0 = vld [vmem:[#allocation13_spill] sm:$0xff] }
 0x3cf   :  { %2879 = vmatprep.subr.bf16.mxu0 %v3084_v13  ;;  %2986 = vmatprep.subr.bf16.mxu1 %v3084_v13  ;;  %v2397_v13 = vpack.c.bf16 %v2362_v9, %v2360_v55  ;;  %v6206_v55 = vmax.f32 %v5249_v63, 0.0 }
 0x3d1   :  { %v2370_v9 = vpack.c.bf16 %v6207_v58, %v6206_v55  ;;  %v6243_v58 = vld [vmem:[#allocation16_spill] sm:$0xff] }
 0x3d2   :  { %2880 = vmatpush3.bf16.msra.mxu0 %v3085_v62  ;;  %2994 = vmatpush3.bf16.msra.mxu1 %v3085_v62  ;;  %v6203_v62 = vmax.f32 %v5303_v37, 0.0  ;;  %v6210_v37 = vmax.f32 %v5253_v42, 0.0  ;;  %v2377_v42 = vpack.c.bf16 %v6217_v10, %v6216_v29  ;;  %v6258_v29 = vmax.f32 %v5457_v46, 0.0 }
 0x3d3   :  { %2881 = vmatprep.subr.bf16.mxu0 %v3086_v56  ;;  %2987 = vmatprep.subr.bf16.mxu1 %v3086_v56 }
 0x3d4   :  { %v2396_v56 = vpack.c.bf16 %v6203_v62, %v6202_v15  ;;  %v2372_v45 = vpack.c.bf16 %v6211_v11, %v6210_v37  ;;  %v6236_v15 = vmax.f32 %v5443_v48, 0.0  ;;  %v6237_v62 = vld [vmem:[#allocation18_spill] sm:$0xff]  ;;  %v2393_v10 = vpack.c.bf16 %v2354_v54, %v6258_v29 }
 0x3d5   :  { %v6249_v11 = vld [vmem:[#allocation14_spill] sm:$0xff] }
 0x3d6   :  { %2882 = vmatpush3.bf16.msra.mxu0 %v3087_v18  ;;  %2995 = vmatpush3.bf16.msra.mxu1 %v3087_v18  ;;  %v2373_v18 = vpack.c.bf16 %v6209_v25, %v6208_v52  ;;  %v6247_v25 = vmax.f32 %v5449_v2, 0.0  ;;  %v6256_v2 = vld [vmem:[#allocation11_spill] sm:$0xff] }
 0x3d7   :  { %2883 = vmatprep.subr.bf16.mxu0 %v3088_v59  ;;  %2988 = vmatprep.subr.bf16.mxu1 %v3088_v59  ;;  %v6212_v59 = vmax.f32 %v5421_v17, 0.0  ;;  %v6219_v17 = vmax.f32 %v5263_v3, 0.0  ;;  %v6226_v3 = vmax.f32 %v5269_v41, 0.0 }
 0x3da   :  { %2884 = vmatpush3.bf16.msra.mxu0 %v3089_v6  ;;  %2996 = vmatpush3.bf16.msra.mxu1 %v3089_v6  ;;  %v6213_v6 = vmax.f32 %v5423_v24, 0.0  ;;  %v2376_v24 = vpack.c.bf16 %v6219_v17, %v6218_v50  ;;  %v6262_v17 = vmax.f32 %v6261_v8, 0.0 }
 0x3dc   :  { %v2375_v63 = vpack.c.bf16 %v6213_v6, %v6212_v59  ;;  %v6252_v59 = vmax.f32 %v6251_v0, 0.0  ;;  %v6253_v6 = vmax.f32 %v5455_v38, 0.0 }
 0x3dd   :  { %2563 = vmatmul.mubr.bf16.vlgmr.msra.gmra.mxu0 %v2366_v57  ;;  %2675 = vmatmul.mubr.bf16.vlgmr.msra.gmra.mxu1 %v2394_v7  ;;  %v6220_v57 = vmax.f32 %v5429_v28, 0.0  ;;  %v6225_v7 = vmax.f32 %v5435_v34, 0.0  ;;  %v6227_v28 = vld [vmem:[#allocation21_spill] sm:$0xff]  ;;  %v2382_v34 = vpack.c.bf16 %v6234_v22, %v6232_v21 }
 0x3de   :  { %2570 = vmatprep.mubr.bf16.mxu0 %v2369_v32  ;;  %2682 = vmatprep.mubr.bf16.mxu1 %v2397_v13  ;;  %v6228_v26 = vmax.f32 %v6227_v28, 0.0  ;;  %v6229_v32 = vmax.f32 %v5437_v39, 0.0  ;;  %v6230_v13 = vmax.f32 %v5439_v1, 0.0  ;;  %v6239_v39 = vld [vmem:[#allocation17_spill] sm:$0xff] }
 0x3df   :  { %v2379_v30 = vpack.c.bf16 %v6221_v53, %v6220_v57  ;;  %v2381_v31 = vpack.c.bf16 %v6225_v7, %v6224_v35  ;;  %v6240_v43 = vmax.f32 %v6239_v39, 0.0 }
 0x3e0   :  { %v2380_v12 = vpack.c.bf16 %v6228_v26, %v6226_v3  ;;  %v2383_v23 = vpack.c.bf16 %v6230_v13, %v6229_v32 }
 0x3e5   :  { %2571 = vmatmul.mubr.bf16.gmra.mxu0 %v2368_v51  ;;  %2683 = vmatmul.mubr.bf16.gmra.mxu1 %v2396_v56  ;;  %v6235_v51 = vmax.f32 %v5441_v27, 0.0  ;;  %v6238_v56 = vmax.f32 %v6237_v62, 0.0  ;;  %v6245_v27 = vld [vmem:[#allocation15_spill] sm:$0xff] }
 0x3e6   :  { %2578 = vmatprep.mubr.bf16.mxu0 %v2371_v60  ;;  %v6242_v60 = vmax.f32 %v5447_v61, 0.0  ;;  %v6246_v52 = vmax.f32 %v6245_v27, 0.0 }
 0x3e7   :  { %v2385_v41 = vpack.c.bf16 %v6236_v15, %v6235_v51  ;;  %v2384_v1 = vpack.c.bf16 %v6240_v43, %v6238_v56 }
 0x3e8   :  { %v2387_v55 = vpack.c.bf16 %v6242_v60, %v6241_v20 }
 0x3ed   :  { %2579 = vmatmul.mubr.bf16.gmra.mxu0 %v2370_v9  ;;  %v6244_v9 = vmax.f32 %v6243_v58, 0.0 }
 0x3ee   :  { %2586 = vmatprep.mubr.bf16.mxu0 %v2373_v18  ;;  %v6248_v18 = vmax.f32 %v5451_v33, 0.0 }
 0x3ef   :  { %v2386_v48 = vpack.c.bf16 %v6246_v52, %v6244_v9 }
 0x3f0   :  { %v2389_v37 = vpack.c.bf16 %v6248_v18, %v6247_v25 }
 0x3f5   :  { %2587 = vmatmul.mubr.bf16.gmra.mxu0 %v2372_v45  ;;  %v6250_v45 = vmax.f32 %v6249_v11, 0.0 }
 0x3f6   :  { %2594 = vmatprep.mubr.bf16.mxu0 %v2375_v63  ;;  %v2391_v63 = vpack.c.bf16 %v6253_v6, %v2348_v40  ;;  %v6263_v40 = vld [vmem:[#allocation53_spill] sm:$0xff] }
 0x3f7   :  { %v2388_v61 = vpack.c.bf16 %v6252_v59, %v6250_v45 }
 0x3fd   :  { %2595 = vmatmul.mubr.bf16.gmra.mxu0 %v2374_v19  ;;  %v6257_v19 = vmax.f32 %v6256_v2, 0.0 }
 0x3fe   :  { %2602 = vmatprep.mubr.bf16.mxu0 %v2377_v42  ;;  %v6259_v42 = vld [vmem:[#allocation10_spill] sm:$0xff] }
 0x3ff   :  { %v2390_v33 = vpack.c.bf16 %v6257_v19, %v6255_v49  ;;  %v6260_v50 = vmax.f32 %v6259_v42, 0.0 }
 0x401   :  { %v2392_v38 = vpack.c.bf16 %v6262_v17, %v6260_v50 }
 0x405   :  { %2603 = vmatmul.mubr.bf16.gmra.mxu0 %v2376_v24  ;;  %v2432_v24 = vsub.s32 4, %v6263_v40 }
 0x406   :  { %2610 = vmatprep.mubr.bf16.mxu0 %v2379_v30  ;;  %v6264_v30 = vld [vmem:[#allocation54_spill] sm:$0xff] }
 0x407   :  { %v5613_v36 = vrot.slane %v6264_v30, %v2432_v24 }
 0x40d   :  { %2611 = vmatmul.mubr.bf16.gmra.mxu0 %v2378_v5 }
 0x40e   :  { %2618 = vmatprep.mubr.bf16.mxu0 %v2381_v31 }
 0x415   :  { %2619 = vmatmul.mubr.bf16.gmra.mxu0 %v2380_v12 }
 0x416   :  { %2626 = vmatprep.mubr.bf16.mxu0 %v2383_v23 }
 0x41d   :  { %2627 = vmatmul.mubr.bf16.gmra.mxu0 %v2382_v34 }
 0x41e   :  { %2634 = vmatprep.mubr.bf16.mxu0 %v2385_v41 }
 0x425   :  { %2635 = vmatmul.mubr.bf16.gmra.mxu0 %v2384_v1 }
 0x426   :  { %2642 = vmatprep.mubr.bf16.mxu0 %v2387_v55 }
 0x42d   :  { %2643 = vmatmul.mubr.bf16.gmra.mxu0 %v2386_v48 }
 0x42e   :  { %2650 = vmatprep.mubr.bf16.mxu0 %v2389_v37 }
 0x435   :  { %2651 = vmatmul.mubr.bf16.gmra.mxu0 %v2388_v61 }
 0x436   :  { %2658 = vmatprep.mubr.bf16.mxu0 %v2391_v63 }
 0x43d   :  { %2659 = vmatmul.mubr.bf16.gmra.mxu0 %v2390_v33 }
 0x43e   :  { %2666 = vmatprep.mubr.bf16.mxu0 %v2393_v10 }
 0x445   :  { %2667 = vmatmul.mubr.bf16.gmra.mxu0 %v2392_v38 }
 0x49d   :  { %v2885_v57 = vpop.f32.mrf.mxu0  ;;  %v2969_v53 = vpop.f32.mrf.mxu1 }
 0x49f   :  { %v2886_v47 = vpop.f32.mrf.mxu0  ;;  %v2970_v46 = vpop.f32.mrf.mxu1 }
 0x4a0   :  { %v2887_v5 = vadd.f32 %v2886_v47, %v2885_v57  ;;  %v2971_v44 = vadd.f32 %v2970_v46, %v2969_v53 }
 0x4a1   :  { %v2888_v54 = vpop.f32.mrf.mxu0  ;;  %v2972_v35 = vpop.f32.mrf.mxu1 }
 0x4a2   :  { %v2565_v7 = vadd.f32 %v2887_v5, %v5613_v36  ;;  %v2677_v31 = vadd.f32 %v2971_v44, %v5613_v36 }
 0x4a3   :  { %v2889_v3 = vpop.f32.mrf.mxu0  ;;  %v2973_v28 = vpop.f32.mrf.mxu1 }
 0x4a4   :  { %2691 = vst [vmem:[%s5748_s5] sm:$0xff] %v2565_v7  ;;  %v2890_v26 = vadd.f32 %v2889_v3, %v2888_v54  ;;  %2719 = vst [vmem:[%s5748_s5 + $0xe0] sm:$0xff] %v2677_v31  ;;  %v2974_v12 = vadd.f32 %v2973_v28, %v2972_v35 }
 0x4a5   :  { %v2891_v32 = vpop.f32.mrf.mxu0  ;;  %v2975_v13 = vpop.f32.mrf.mxu1 }
 0x4a6   :  { %v2568_v23 = vadd.f32 %v2890_v26, %v5613_v36  ;;  %v2680_v14 = vadd.f32 %v2974_v12, %v5613_v36 }
 0x4a7   :  { %v2892_v21 = vpop.f32.mrf.mxu0  ;;  %v2976_v4 = vpop.f32.mrf.mxu1 }
 0x4a8   :  { %2692 = vst [vmem:[%s5748_s5 + $0x8] sm:$0xff] %v2568_v23  ;;  %v2893_v22 = vadd.f32 %v2892_v21, %v2891_v32  ;;  %2720 = vst [vmem:[%s5748_s5 + $0xe8] sm:$0xff] %v2680_v14  ;;  %v2977_v34 = vadd.f32 %v2976_v4, %v2975_v13 }
 0x4a9   :  { %v2894_v51 = vpop.f32.mrf.mxu0  ;;  %v2978_v15 = vpop.f32.mrf.mxu1 }
 0x4aa   :  { %v2573_v41 = vadd.f32 %v2893_v22, %v5613_v36  ;;  %v2685_v62 = vadd.f32 %v2977_v34, %v5613_v36 }
 0x4ab   :  { %v2895_v56 = vpop.f32.mrf.mxu0  ;;  %v2979_v39 = vpop.f32.mrf.mxu1 }
 0x4ac   :  { %2693 = vst [vmem:[%s5748_s5 + $0x10] sm:$0xff] %v2573_v41  ;;  %v2896_v43 = vadd.f32 %v2895_v56, %v2894_v51  ;;  %2721 = vst [vmem:[%s5748_s5 + $0xf0] sm:$0xff] %v2685_v62  ;;  %v2980_v1 = vadd.f32 %v2979_v39, %v2978_v15 }
 0x4ad   :  { %v2897_v20 = vpop.f32.mrf.mxu0 }
 0x4ae   :  { %v2576_v60 = vadd.f32 %v2896_v43, %v5613_v36  ;;  %v2688_v55 = vadd.f32 %v2980_v1, %v5613_v36 }
 0x4af   :  { %v2898_v58 = vpop.f32.mrf.mxu0 }
 0x4b0   :  { %2694 = vst [vmem:[%s5748_s5 + $0x18] sm:$0xff] %v2576_v60  ;;  %v2899_v9 = vadd.f32 %v2898_v58, %v2897_v20  ;;  %2722 = vst [vmem:[%s5748_s5 + $0xf8] sm:$0xff] %v2688_v55 }
 0x4b1   :  { %v2900_v27 = vpop.f32.mrf.mxu0 }
 0x4b2   :  { %v2581_v52 = vadd.f32 %v2899_v9, %v5613_v36 }
 0x4b3   :  { %v2901_v48 = vpop.f32.mrf.mxu0 }
 0x4b4   :  { %2695 = vst [vmem:[%s5748_s5 + $0x20] sm:$0xff] %v2581_v52  ;;  %v2902_v25 = vadd.f32 %v2901_v48, %v2900_v27 }
 0x4b5   :  { %v2903_v18 = vpop.f32.mrf.mxu0 }
 0x4b6   :  { %v2584_v37 = vadd.f32 %v2902_v25, %v5613_v36 }
 0x4b7   :  { %v2904_v11 = vpop.f32.mrf.mxu0 }
 0x4b8   :  { %2696 = vst [vmem:[%s5748_s5 + $0x28] sm:$0xff] %v2584_v37  ;;  %v2905_v45 = vadd.f32 %v2904_v11, %v2903_v18 }
 0x4b9   :  { %v2906_v0 = vpop.f32.mrf.mxu0 }
 0x4ba   :  { %v2589_v59 = vadd.f32 %v2905_v45, %v5613_v36 }
 0x4bb   :  { %v2907_v61 = vpop.f32.mrf.mxu0 }
 0x4bc   :  { %2697 = vst [vmem:[%s5748_s5 + $0x30] sm:$0xff] %v2589_v59  ;;  %v2908_v6 = vadd.f32 %v2907_v61, %v2906_v0 }
 0x4bd   :  { %v2909_v63 = vpop.f32.mrf.mxu0 }
 0x4be   :  { %v2592_v16 = vadd.f32 %v2908_v6, %v5613_v36 }
 0x4bf   :  { %v2910_v49 = vpop.f32.mrf.mxu0 }
 0x4c0   :  { %2698 = vst [vmem:[%s5748_s5 + $0x38] sm:$0xff] %v2592_v16  ;;  %v2911_v2 = vadd.f32 %v2910_v49, %v2909_v63 }
 0x4c1   :  { %v2912_v19 = vpop.f32.mrf.mxu0 }
 0x4c2   :  { %v2597_v33 = vadd.f32 %v2911_v2, %v5613_v36 }
 0x4c3   :  { %v2913_v29 = vpop.f32.mrf.mxu0 }
 0x4c4   :  { %2699 = vst [vmem:[%s5748_s5 + $0x40] sm:$0xff] %v2597_v33  ;;  %v2914_v10 = vadd.f32 %v2913_v29, %v2912_v19 }
 0x4c5   :  { %v2915_v42 = vpop.f32.mrf.mxu0 }
 0x4c6   :  { %v2600_v50 = vadd.f32 %v2914_v10, %v5613_v36 }
 0x4c7   :  { %v2916_v8 = vpop.f32.mrf.mxu0 }
 0x4c8   :  { %2700 = vst [vmem:[%s5748_s5 + $0x48] sm:$0xff] %v2600_v50  ;;  %v2917_v17 = vadd.f32 %v2916_v8, %v2915_v42 }
 0x4c9   :  { %v2918_v38 = vpop.f32.mrf.mxu0 }
 0x4ca   :  { %v2605_v40 = vadd.f32 %v2917_v17, %v5613_v36 }
 0x4cb   :  { %v2919_v24 = vpop.f32.mrf.mxu0 }
 0x4cc   :  { %2701 = vst [vmem:[%s5748_s5 + $0x50] sm:$0xff] %v2605_v40  ;;  %v2920_v57 = vadd.f32 %v2919_v24, %v2918_v38 }
 0x4cd   :  { %v2921_v53 = vpop.f32.mrf.mxu0 }
 0x4ce   :  { %v2608_v30 = vadd.f32 %v2920_v57, %v5613_v36 }
 0x4cf   :  { %v2922_v47 = vpop.f32.mrf.mxu0 }
 0x4d0   :  { %2702 = vst [vmem:[%s5748_s5 + $0x58] sm:$0xff] %v2608_v30  ;;  %v2923_v46 = vadd.f32 %v2922_v47, %v2921_v53 }
 0x4d1   :  { %v2924_v5 = vpop.f32.mrf.mxu0 }
 0x4d2   :  { %v2613_v44 = vadd.f32 %v2923_v46, %v5613_v36 }
 0x4d3   :  { %v2925_v54 = vpop.f32.mrf.mxu0 }
 0x4d4   :  { %2703 = vst [vmem:[%s5748_s5 + $0x60] sm:$0xff] %v2613_v44  ;;  %v2926_v35 = vadd.f32 %v2925_v54, %v2924_v5 }
 0x4d5   :  { %v2927_v7 = vpop.f32.mrf.mxu0 }
 0x4d6   :  { %v2616_v31 = vadd.f32 %v2926_v35, %v5613_v36 }
 0x4d7   :  { %v2928_v3 = vpop.f32.mrf.mxu0 }
 0x4d8   :  { %2704 = vst [vmem:[%s5748_s5 + $0x68] sm:$0xff] %v2616_v31  ;;  %v2929_v28 = vadd.f32 %v2928_v3, %v2927_v7 }
 0x4d9   :  { %v2930_v26 = vpop.f32.mrf.mxu0 }
 0x4da   :  { %v2621_v12 = vadd.f32 %v2929_v28, %v5613_v36 }
 0x4db   :  { %v2931_v32 = vpop.f32.mrf.mxu0 }
 0x4dc   :  { %2705 = vst [vmem:[%s5748_s5 + $0x70] sm:$0xff] %v2621_v12  ;;  %v2932_v13 = vadd.f32 %v2931_v32, %v2930_v26 }
 0x4dd   :  { %v2933_v23 = vpop.f32.mrf.mxu0 }
 0x4de   :  { %v2624_v14 = vadd.f32 %v2932_v13, %v5613_v36 }
 0x4df   :  { %v2934_v21 = vpop.f32.mrf.mxu0 }
 0x4e0   :  { %2706 = vst [vmem:[%s5748_s5 + $0x78] sm:$0xff] %v2624_v14  ;;  %v2935_v4 = vadd.f32 %v2934_v21, %v2933_v23 }
 0x4e1   :  { %v2936_v22 = vpop.f32.mrf.mxu0 }
 0x4e2   :  { %v2629_v34 = vadd.f32 %v2935_v4, %v5613_v36 }
 0x4e3   :  { %v2937_v51 = vpop.f32.mrf.mxu0 }
 0x4e4   :  { %2707 = vst [vmem:[%s5748_s5 + $0x80] sm:$0xff] %v2629_v34  ;;  %v2938_v15 = vadd.f32 %v2937_v51, %v2936_v22 }
 0x4e5   :  { %v2939_v41 = vpop.f32.mrf.mxu0 }
 0x4e6   :  { %v2632_v62 = vadd.f32 %v2938_v15, %v5613_v36 }
 0x4e7   :  { %v2940_v56 = vpop.f32.mrf.mxu0 }
 0x4e8   :  { %2708 = vst [vmem:[%s5748_s5 + $0x88] sm:$0xff] %v2632_v62  ;;  %v2941_v39 = vadd.f32 %v2940_v56, %v2939_v41 }
 0x4e9   :  { %v2942_v43 = vpop.f32.mrf.mxu0 }
 0x4ea   :  { %v2637_v1 = vadd.f32 %v2941_v39, %v5613_v36 }
 0x4eb   :  { %v2943_v20 = vpop.f32.mrf.mxu0 }
 0x4ec   :  { %2709 = vst [vmem:[%s5748_s5 + $0x90] sm:$0xff] %v2637_v1  ;;  %v2944_v60 = vadd.f32 %v2943_v20, %v2942_v43 }
 0x4ed   :  { %v2945_v55 = vpop.f32.mrf.mxu0 }
 0x4ee   :  { %v2640_v58 = vadd.f32 %v2944_v60, %v5613_v36 }
 0x4ef   :  { %v2946_v9 = vpop.f32.mrf.mxu0 }
 0x4f0   :  { %2710 = vst [vmem:[%s5748_s5 + $0x98] sm:$0xff] %v2640_v58  ;;  %v2947_v27 = vadd.f32 %v2946_v9, %v2945_v55 }
 0x4f1   :  { %v2948_v52 = vpop.f32.mrf.mxu0 }
 0x4f2   :  { %v2645_v48 = vadd.f32 %v2947_v27, %v5613_v36 }
 0x4f3   :  { %v2949_v25 = vpop.f32.mrf.mxu0 }
 0x4f4   :  { %2711 = vst [vmem:[%s5748_s5 + $0xa0] sm:$0xff] %v2645_v48  ;;  %v2950_v18 = vadd.f32 %v2949_v25, %v2948_v52 }
 0x4f5   :  { %v2951_v37 = vpop.f32.mrf.mxu0 }
 0x4f6   :  { %v2648_v11 = vadd.f32 %v2950_v18, %v5613_v36 }
 0x4f7   :  { %v2952_v45 = vpop.f32.mrf.mxu0 }
 0x4f8   :  { %2712 = vst [vmem:[%s5748_s5 + $0xa8] sm:$0xff] %v2648_v11  ;;  %v2953_v0 = vadd.f32 %v2952_v45, %v2951_v37 }
 0x4f9   :  { %v2954_v59 = vpop.f32.mrf.mxu0 }
 0x4fa   :  { %v2653_v61 = vadd.f32 %v2953_v0, %v5613_v36 }
 0x4fb   :  { %v2955_v6 = vpop.f32.mrf.mxu0 }
 0x4fc   :  { %2713 = vst [vmem:[%s5748_s5 + $0xb0] sm:$0xff] %v2653_v61  ;;  %v2956_v63 = vadd.f32 %v2955_v6, %v2954_v59 }
 0x4fd   :  { %v2957_v16 = vpop.f32.mrf.mxu0 }
 0x4fe   :  { %v2656_v49 = vadd.f32 %v2956_v63, %v5613_v36 }
 0x4ff   :  { %v2958_v2 = vpop.f32.mrf.mxu0 }
 0x500   :  { %2714 = vst [vmem:[%s5748_s5 + $0xb8] sm:$0xff] %v2656_v49  ;;  %v2959_v19 = vadd.f32 %v2958_v2, %v2957_v16 }
 0x501   :  { %v2960_v33 = vpop.f32.mrf.mxu0 }
 0x502   :  { %v2661_v29 = vadd.f32 %v2959_v19, %v5613_v36 }
 0x503   :  { %v2961_v10 = vpop.f32.mrf.mxu0 }
 0x504   :  { %2715 = vst [vmem:[%s5748_s5 + $0xc0] sm:$0xff] %v2661_v29  ;;  %v2962_v42 = vadd.f32 %v2961_v10, %v2960_v33 }
 0x505   :  { %v2963_v50 = vpop.f32.mrf.mxu0 }
 0x506   :  { %v2664_v8 = vadd.f32 %v2962_v42, %v5613_v36 }
 0x507   :  { %v2964_v17 = vpop.f32.mrf.mxu0 }
 0x508   :  { %2716 = vst [vmem:[%s5748_s5 + $0xc8] sm:$0xff] %v2664_v8  ;;  %v2965_v38 = vadd.f32 %v2964_v17, %v2963_v50 }
 0x509   :  { %v2966_v40 = vpop.f32.mrf.mxu0 }
 0x50a   :  { %v2669_v24 = vadd.f32 %v2965_v38, %v5613_v36 }
 0x50b   :  { %v2967_v57 = vpop.f32.mrf.mxu0 }
 0x50c   :  { %2717 = vst [vmem:[%s5748_s5 + $0xd0] sm:$0xff] %v2669_v24  ;;  %v2968_v53 = vadd.f32 %v2967_v57, %v2966_v40 }
 0x50e   :  { %v2672_v30 = vadd.f32 %v2968_v53, %v5613_v36 }
 0x510   :  { %2718 = vst [vmem:[%s5748_s5 + $0xd8] sm:$0xff] %v2672_v30 }
 0x511   :  { %2727 = vsyncmov [#allocation4] }
 0x514   :  { %s2728_s22 = vpop.sfrf %2727 }
 0x515   :  { %p2867_p0 = scmp.ne.s32.totalorder %s2728_s22, 0 }
 0x517   :  { %2732 = shalt.err (%p2867_p0)  }
 0x518   :  { %2734 = vsyncmov [#allocation4 + $0x1] }
 0x51b   :  { %s2735_s23 = vpop.sfrf %2734 }
 0x51c   :  { %p2868_p1 = scmp.ne.s32.totalorder %s2735_s23, 0 }
 0x51e   :  { %2739 = shalt.err (%p2868_p1)  }

</bundles_post_ra>
